<compile_context>
chip_gen: v6e
topology: v6e:2x2x1
jax: 0.10.0
libtpu: 0.0.40
codegen_flags: <defaults>
</compile_context>

<pallas_src>
import numpy as np
import jax
import jax.numpy as jnp
from jax import lax
from jax.experimental import pallas as pl
from jax.experimental.pallas import tpu as pltpu

K = 3                          # k_size
STRIDE = 2
DIL = 1
PAD = (K + DIL - 1) // 2       # = 1
OUT_PAD = 1
BN_EPS = 1e-5


# --------------------------------------------------------------------------
# Pallas kernel: one (batch, row-tile) step.
# --------------------------------------------------------------------------
def _trconv_bn_kernel(x_ref, xh_ref, w_ref, b_ref, s_ref, t_ref, o_ref):
    """ConvTranspose2d(k=3,s=2,p=1,op=1) + bias -> relu -> BN(eval), sub-pixel form.

    x_ref  : (1, Ht, W, Cin)      input row tile (caller dtype; cast to bf16 here)
    xh_ref : (1, 1,  W, Cin)      next input row (bottom halo); clamped index,
                                  zeroed in-kernel on the last row tile
    w_ref  : (4*Cin, 4*Cout) bf16 sub-pixel weight, rows [dh,dw,cin], cols [pr,pc,co]
    b_ref  : (1, 4*Cout) f32      conv bias, tiled over parities
    s_ref  : (1, 4*Cout) f32      BN scale (gamma / sqrt(var+eps))
    t_ref  : (1, 4*Cout) f32      BN shift (beta - mean*scale)
    o_ref  : (1, 2*Ht, 2*W*Cout) bf16   rows = 2h+pr, lanes = [w, pc, co]
    """
    Ht, W, Cin = x_ref.shape[1], x_ref.shape[2], x_ref.shape[3]
    C4 = w_ref.shape[1]
    Cout = C4 // 4

    # Bottom halo row: the first row of the next tile for all but the last
    # tile; zero (bottom boundary / output_padding=1) on the last tile.
    not_last = (pl.program_id(1) + 1 < pl.num_programs(1)).astype(jnp.bfloat16)
    xm = x_ref[0].astype(jnp.bfloat16)                      # (Ht, W, Cin)
    hrow = xh_ref[0].astype(jnp.bfloat16) * not_last        # (1, W, Cin)

    # Assemble the (Ht+1, W+1, Cin) window with a zero right column (right
    # boundary / output_padding=1) entirely in VMEM - no wrapper-side pad.
    xv = jnp.concatenate([xm, hrow], axis=0)                          # (Ht+1, W, Cin)
    zcol = jnp.zeros((Ht + 1, 1, Cin), jnp.bfloat16)
    xv = jnp.concatenate([xv, zcol], axis=1)                          # (Ht+1, W+1, Cin)

    # Four shifted taps on the contraction (lane) axis; order matches w_ref rows:
    # (dh, dw) in [(0,0), (0,1), (1,0), (1,1)].
    x4 = jnp.concatenate(
        [xv[dh:dh + Ht, dw:dw + W, :].reshape(Ht * W, Cin)
         for dh in (0, 1) for dw in (0, 1)], axis=-1)                 # (Ht*W, 4*Cin)

    # Single MXU matmul, f32 accumulation; bias + relu + BN(eval) epilogue.
    acc = jnp.dot(x4, w_ref[...], preferred_element_type=jnp.float32)  # (Ht*W, 4*Cout)
    z = jnp.maximum(acc + b_ref[...], 0.0)
    z = z * s_ref[...] + t_ref[...]                                    # f32

    # Parity interleave in VMEM -> lane-dense (2*Ht, 2*W*Cout) slab:
    #   output row 2h+pr, lane index w*(2*Cout) + pc*Cout + c.
    zr = z.reshape(Ht, W, C4)
    row_even = jnp.concatenate(
        [zr[:, wi:wi + 1, 0:2 * Cout] for wi in range(W)], axis=-1)    # (Ht, 1, 2*W*Cout)
    row_odd = jnp.concatenate(
        [zr[:, wi:wi + 1, 2 * Cout:C4] for wi in range(W)], axis=-1)   # (Ht, 1, 2*W*Cout)
    zi = jnp.concatenate([row_even, row_odd], axis=1)                  # (Ht, 2, 2*W*Cout)
    o_ref[0] = zi.reshape(2 * Ht, 2 * W * Cout).astype(o_ref.dtype)


# --------------------------------------------------------------------------
# Wrapper glue (XLA): sub-pixel weight build, tile selection, pallas_call.
# --------------------------------------------------------------------------
def _build_subpixel_weight(w):
    """w: (Cin, Cout, K, K) PyTorch ConvTranspose2d layout -> (4*Cin, 4*Cout).

    out[2r+pr, 2c+pc, co] = sum_{dh,dw in {0,1}} x[r+dh, c+dw, :] @ w[:, co, kh, kw]
    with kh = 1 + pr - 2*dh, kw = 1 + pc - 2*dw (taps outside [0, K) are zero).
    Row blocks: input shift (dh, dw); column blocks: output parity (pr, pc).
    """
    Cin, Cout = w.shape[0], w.shape[1]
    zero = jnp.zeros((Cin, Cout), w.dtype)
    rows = []
    for dh in (0, 1):
        for dw in (0, 1):
            cols = []
            for pr in (0, 1):
                for pc in (0, 1):
                    kh = 1 + pr - 2 * dh
                    kw = 1 + pc - 2 * dw
                    ok = (0 <= kh < K) and (0 <= kw < K)
                    cols.append(w[:, :, kh, kw] if ok else zero)
            rows.append(jnp.concatenate(cols, axis=1))
    return jnp.concatenate(rows, axis=0)             # (4*Cin, 4*Cout)


def _pick_row_tile(H, W, Cin, Cout, x_itemsize, vmem_budget=24 << 20):
    """Row-tile height: a divisor of H (8-aligned, or H itself) targeting
    >=1024 matmul rows and >=0.5 MiB output blocks, within a VMEM budget."""
    # TODO(synk): awkward (e.g. prime) H falls back to whole-image tiles; a
    #             cdiv + masked-tail scheme would bound VMEM for huge prime H.
    divs = [d for d in range(1, H + 1) if H % d == 0 and (d % 8 == 0 or d == H)]

    def step_bytes(ht):
        inp = 2 * ht * W * Cin * x_itemsize          # 2x-buffered input block
        out = 2 * 8 * ht * W * Cout                  # 2x-buffered bf16 output block
        tmp = ht * W * (8 * Cin + 16 * Cout)         # x4 (bf16) + acc (f32)
        tmp += 3 * 16 * ht * W * Cout                # interleave temporaries (f32)
        return inp + out + tmp

    fitting = [d for d in divs if step_bytes(d) <= vmem_budget] or divs[:1]
    big = [d for d in fitting if d * W >= 1024 and 8 * d * W * Cout >= (1 << 19)]
    return big[0] if big else fitting[-1]


def trconv_forward(x, params):
    """TrConv forward.  x: (N, H, W, Cin) NHWC -> (N, 2H, 2W, Cout) bf16."""
    w, b, gamma, beta, rmean, rvar = params          # w: (Cin, Cout, K, K)
    N, H, W, Cin = x.shape
    Cout = w.shape[1]

    Ht = _pick_row_tile(H, W, Cin, Cout, x.dtype.itemsize)
    nT = H // Ht

    w4 = _build_subpixel_weight(w.astype(jnp.bfloat16))        # (4*Cin, 4*Cout)
    scale = gamma / jnp.sqrt(rvar + BN_EPS)
    shift = beta - rmean * scale
    b4 = jnp.tile(b.astype(jnp.float32), 4).reshape(1, 4 * Cout)
    s4 = jnp.tile(scale.astype(jnp.float32), 4).reshape(1, 4 * Cout)
    t4 = jnp.tile(shift.astype(jnp.float32), 4).reshape(1, 4 * Cout)

    # Bottom-halo row = first row of the next tile; clamped on the last tile
    # (the kernel zeroes it there).
    halo_map = lambda n, i, Ht=Ht, H=H: (n, jnp.minimum((i + 1) * Ht, H - 1), 0, 0)

    out_flat = pl.pallas_call(
        _trconv_bn_kernel,
        out_shape=jax.ShapeDtypeStruct((N, 2 * H, 2 * W * Cout), jnp.bfloat16),
        grid=(N, nT),
        in_specs=[
            pl.BlockSpec((1, Ht, W, Cin), lambda n, i: (n, i, 0, 0)),
            pl.BlockSpec((1, 1, W, Cin), halo_map),
            pl.BlockSpec((4 * Cin, 4 * Cout), lambda n, i: (0, 0)),
            pl.BlockSpec((1, 4 * Cout), lambda n, i: (0, 0)),
            pl.BlockSpec((1, 4 * Cout), lambda n, i: (0, 0)),
            pl.BlockSpec((1, 4 * Cout), lambda n, i: (0, 0)),
        ],
        out_specs=pl.BlockSpec((1, 2 * Ht, 2 * W * Cout), lambda n, i: (n, i, 0)),
        compiler_params=pltpu.CompilerParams(
            dimension_semantics=("parallel", "parallel"),
            vmem_limit_bytes=48 * 1024 * 1024),
    )(x, x, w4, b4, s4, t4)

    # Metadata-only reshape: lanes [w, pc, c] -> dims (2W, Cout).
    return out_flat.reshape(N, 2 * H, 2 * W, Cout)


# --------------------------------------------------------------------------
# Pure-JAX reference (same bf16 operand quantization as the kernel).
# --------------------------------------------------------------------------
def _ref_trconv(x, params):
    w, b, gamma, beta, rmean, rvar = params
    xq = x.astype(jnp.bfloat16).astype(jnp.float32)
    wq = w.astype(jnp.bfloat16).astype(jnp.float32)
    wf = jnp.flip(wq, axis=(2, 3)).transpose(2, 3, 0, 1)       # (K, K, Cin, Cout)
    z = lax.conv_general_dilated(
        xq, wf, window_strides=(1, 1),
        padding=((K - 1 - PAD, K - 1 - PAD + OUT_PAD),) * 2,
        lhs_dilation=(STRIDE, STRIDE),
        dimension_numbers=('NHWC', 'HWIO', 'NHWC'),
        precision=lax.Precision.HIGHEST)
    z = jnp.maximum(z + b.reshape(1, 1, 1, -1), 0.0)
    scale = gamma / jnp.sqrt(rvar + BN_EPS)
    shift = beta - rmean * scale
    return z * scale + shift


if __name__ == "__main__":
    # TrConv(inch=32, ch=16, k_size=3, stride=2, dilation=1, bias=True), eval-mode BN.
    N, H, W = 2, 16, 16
    Cin, Cout = 32, 16

    key = jax.random.PRNGKey(0)
    key, kx, kw_, kb_, kg_, kbe_, km_, kv_ = jax.random.split(key, 8)
    x = jax.random.normal(kx, (N, H, W, Cin), jnp.float32)               # NHWC
    w = 0.1 * jax.random.normal(kw_, (Cin, Cout, K, K), jnp.float32)     # PyTorch layout
    b = 0.1 * jax.random.normal(kb_, (Cout,), jnp.float32)
    gamma = 1.0 + 0.1 * jax.random.normal(kg_, (Cout,), jnp.float32)
    beta = 0.1 * jax.random.normal(kbe_, (Cout,), jnp.float32)
    rmean = 0.1 * jax.random.normal(km_, (Cout,), jnp.float32)
    rvar = 1.0 + 0.1 * jax.random.uniform(kv_, (Cout,), jnp.float32)
    params = (w, b, gamma, beta, rmean, rvar)

    fwd = jax.jit(trconv_forward)
    out = jax.block_until_ready(fwd(x, params))
    assert out.shape == (N, 2 * H, 2 * W, Cout)

    ref = _ref_trconv(x, params)
    np.testing.assert_allclose(np.asarray(out.astype(jnp.float32)),
                               np.asarray(ref), rtol=2e-2, atol=2e-2)

    print("KERNEL_OK")
</pallas_src>

<mosaic_0001>
module attributes {stable_mosaic.version = 11 : i64} {
  func.func @_trconv_bn_kernel(%arg0: i32, %arg1: i32, %arg2: memref<1x16x16x32xf32, #tpu.memory_space<vmem>>, %arg3: memref<1x1x16x32xf32, #tpu.memory_space<vmem>>, %arg4: memref<128x64xbf16, #tpu.memory_space<vmem>>, %arg5: memref<1x64xf32, #tpu.memory_space<vmem>>, %arg6: memref<1x64xf32, #tpu.memory_space<vmem>>, %arg7: memref<1x64xf32, #tpu.memory_space<vmem>>, %arg8: memref<1x32x512xbf16, #tpu.memory_space<vmem>>) attributes {dimension_semantics = [#tpu.dimension_semantics<parallel>, #tpu.dimension_semantics<parallel>], iteration_bounds = array<i64: 2, 1>, scalar_prefetch = 0 : i64, scratch_operands = 0 : i64, tpu.core_type = #tpu.core_type<tc>, window_params = [{transform_indices = @transform_0, window_bounds = array<i64: 1, 16, 16, 32>}, {transform_indices = @transform_1, window_bounds = array<i64: 1, 1, 16, 32>}, {pipeline_mode = #tpu.pipeline_mode<synchronous>, transform_indices = @transform_2, window_bounds = array<i64: 128, 64>}, {pipeline_mode = #tpu.pipeline_mode<synchronous>, transform_indices = @transform_3, window_bounds = array<i64: 1, 64>}, {pipeline_mode = #tpu.pipeline_mode<synchronous>, transform_indices = @transform_4, window_bounds = array<i64: 1, 64>}, {pipeline_mode = #tpu.pipeline_mode<synchronous>, transform_indices = @transform_5, window_bounds = array<i64: 1, 64>}, {transform_indices = @transform_6, window_bounds = array<i64: 1, 32, 512>}]} {
    %c1_i32 = arith.constant 1 : i32
    %0 = arith.addi %arg1, %c1_i32 : i32
    %c1_i32_0 = arith.constant 1 : i32
    %1 = arith.cmpi slt, %0, %c1_i32_0 : i32
    %2 = arith.extui %1 : i1 to i32
    %3 = arith.sitofp %2 : i32 to f32
    %4 = arith.truncf %3 : f32 to bf16
    %c0 = arith.constant 0 : index
    %c0_1 = arith.constant 0 : index
    %c0_2 = arith.constant 0 : index
    %c0_3 = arith.constant 0 : index
    %5 = vector.load %arg2[%c0, %c0_1, %c0_2, %c0_3] : memref<1x16x16x32xf32, #tpu.memory_space<vmem>>, vector<1x16x16x32xf32>
    %6 = vector.shape_cast %5 : vector<1x16x16x32xf32> to vector<16x16x32xf32>
    %7 = arith.truncf %6 : vector<16x16x32xf32> to vector<16x16x32xbf16>
    %c0_4 = arith.constant 0 : index
    %c0_5 = arith.constant 0 : index
    %c0_6 = arith.constant 0 : index
    %c0_7 = arith.constant 0 : index
    %8 = vector.load %arg3[%c0_4, %c0_5, %c0_6, %c0_7] : memref<1x1x16x32xf32, #tpu.memory_space<vmem>>, vector<1x1x16x32xf32>
    %9 = vector.shape_cast %8 : vector<1x1x16x32xf32> to vector<1x16x32xf32>
    %10 = arith.truncf %9 : vector<1x16x32xf32> to vector<1x16x32xbf16>
    %11 = vector.broadcast %4 : bf16 to vector<1x16x32xbf16>
    %12 = arith.mulf %10, %11 : vector<1x16x32xbf16>
    %13 = tpu.concatenate %7, %12 in 0 : vector<16x16x32xbf16>, vector<1x16x32xbf16> -> vector<17x16x32xbf16>
    %cst = arith.constant 0.000000e+00 : bf16
    %14 = vector.broadcast %cst : bf16 to vector<17x1x32xbf16>
    %15 = tpu.concatenate %13, %14 in 1 : vector<17x16x32xbf16>, vector<17x1x32xbf16> -> vector<17x17x32xbf16>
    %16 = vector.extract_strided_slice %15 {offsets = [0, 0, 0], sizes = [16, 16, 32], strides = [1, 1, 1]} : vector<17x17x32xbf16> to vector<16x16x32xbf16>
    %17 = vector.shape_cast %16 : vector<16x16x32xbf16> to vector<256x32xbf16>
    %18 = vector.extract_strided_slice %15 {offsets = [0, 1, 0], sizes = [16, 16, 32], strides = [1, 1, 1]} : vector<17x17x32xbf16> to vector<16x16x32xbf16>
    %19 = vector.shape_cast %18 : vector<16x16x32xbf16> to vector<256x32xbf16>
    %20 = vector.extract_strided_slice %15 {offsets = [1, 0, 0], sizes = [16, 16, 32], strides = [1, 1, 1]} : vector<17x17x32xbf16> to vector<16x16x32xbf16>
    %21 = vector.shape_cast %20 : vector<16x16x32xbf16> to vector<256x32xbf16>
    %22 = vector.extract_strided_slice %15 {offsets = [1, 1, 0], sizes = [16, 16, 32], strides = [1, 1, 1]} : vector<17x17x32xbf16> to vector<16x16x32xbf16>
    %23 = vector.shape_cast %22 : vector<16x16x32xbf16> to vector<256x32xbf16>
    %24 = tpu.concatenate %17, %19, %21, %23 in 1 : vector<256x32xbf16>, vector<256x32xbf16>, vector<256x32xbf16>, vector<256x32xbf16> -> vector<256x128xbf16>
    %c0_8 = arith.constant 0 : index
    %c0_9 = arith.constant 0 : index
    %25 = vector.load %arg4[%c0_8, %c0_9] : memref<128x64xbf16, #tpu.memory_space<vmem>>, vector<128x64xbf16>
    %cst_10 = arith.constant dense<0.000000e+00> : vector<256x64xf32>
    %26 = tpu.matmul %24, %25, %cst_10 {dimension_numbers = #tpu.dot_dimension_numbers<[1], [0], [0], [1], [0, 0, 1, 1], [], []>} : vector<256x128xbf16>, vector<128x64xbf16>, vector<256x64xf32> -> vector<256x64xf32>
    %c0_11 = arith.constant 0 : index
    %c0_12 = arith.constant 0 : index
    %27 = vector.load %arg5[%c0_11, %c0_12] : memref<1x64xf32, #tpu.memory_space<vmem>>, vector<1x64xf32>
    %28 = vector.broadcast %27 : vector<1x64xf32> to vector<256x64xf32>
    %29 = arith.addf %26, %28 : vector<256x64xf32>
    %cst_13 = arith.constant 0.000000e+00 : f32
    %30 = vector.broadcast %cst_13 : f32 to vector<256x64xf32>
    %31 = arith.maximumf %29, %30 : vector<256x64xf32>
    %c0_14 = arith.constant 0 : index
    %c0_15 = arith.constant 0 : index
    %32 = vector.load %arg6[%c0_14, %c0_15] : memref<1x64xf32, #tpu.memory_space<vmem>>, vector<1x64xf32>
    %33 = vector.broadcast %32 : vector<1x64xf32> to vector<256x64xf32>
    %34 = arith.mulf %31, %33 : vector<256x64xf32>
    %c0_16 = arith.constant 0 : index
    %c0_17 = arith.constant 0 : index
    %35 = vector.load %arg7[%c0_16, %c0_17] : memref<1x64xf32, #tpu.memory_space<vmem>>, vector<1x64xf32>
    %36 = vector.broadcast %35 : vector<1x64xf32> to vector<256x64xf32>
    %37 = arith.addf %34, %36 : vector<256x64xf32>
    %38 = vector.shape_cast %37 : vector<256x64xf32> to vector<16x16x64xf32>
    %39 = vector.extract_strided_slice %38 {offsets = [0, 0, 0], sizes = [16, 1, 32], strides = [1, 1, 1]} : vector<16x16x64xf32> to vector<16x1x32xf32>
    %40 = vector.extract_strided_slice %38 {offsets = [0, 1, 0], sizes = [16, 1, 32], strides = [1, 1, 1]} : vector<16x16x64xf32> to vector<16x1x32xf32>
    %41 = vector.extract_strided_slice %38 {offsets = [0, 2, 0], sizes = [16, 1, 32], strides = [1, 1, 1]} : vector<16x16x64xf32> to vector<16x1x32xf32>
    %42 = vector.extract_strided_slice %38 {offsets = [0, 3, 0], sizes = [16, 1, 32], strides = [1, 1, 1]} : vector<16x16x64xf32> to vector<16x1x32xf32>
    %43 = vector.extract_strided_slice %38 {offsets = [0, 4, 0], sizes = [16, 1, 32], strides = [1, 1, 1]} : vector<16x16x64xf32> to vector<16x1x32xf32>
    %44 = vector.extract_strided_slice %38 {offsets = [0, 5, 0], sizes = [16, 1, 32], strides = [1, 1, 1]} : vector<16x16x64xf32> to vector<16x1x32xf32>
    %45 = vector.extract_strided_slice %38 {offsets = [0, 6, 0], sizes = [16, 1, 32], strides = [1, 1, 1]} : vector<16x16x64xf32> to vector<16x1x32xf32>
    %46 = vector.extract_strided_slice %38 {offsets = [0, 7, 0], sizes = [16, 1, 32], strides = [1, 1, 1]} : vector<16x16x64xf32> to vector<16x1x32xf32>
    %47 = vector.extract_strided_slice %38 {offsets = [0, 8, 0], sizes = [16, 1, 32], strides = [1, 1, 1]} : vector<16x16x64xf32> to vector<16x1x32xf32>
    %48 = vector.extract_strided_slice %38 {offsets = [0, 9, 0], sizes = [16, 1, 32], strides = [1, 1, 1]} : vector<16x16x64xf32> to vector<16x1x32xf32>
    %49 = vector.extract_strided_slice %38 {offsets = [0, 10, 0], sizes = [16, 1, 32], strides = [1, 1, 1]} : vector<16x16x64xf32> to vector<16x1x32xf32>
    %50 = vector.extract_strided_slice %38 {offsets = [0, 11, 0], sizes = [16, 1, 32], strides = [1, 1, 1]} : vector<16x16x64xf32> to vector<16x1x32xf32>
    %51 = vector.extract_strided_slice %38 {offsets = [0, 12, 0], sizes = [16, 1, 32], strides = [1, 1, 1]} : vector<16x16x64xf32> to vector<16x1x32xf32>
    %52 = vector.extract_strided_slice %38 {offsets = [0, 13, 0], sizes = [16, 1, 32], strides = [1, 1, 1]} : vector<16x16x64xf32> to vector<16x1x32xf32>
    %53 = vector.extract_strided_slice %38 {offsets = [0, 14, 0], sizes = [16, 1, 32], strides = [1, 1, 1]} : vector<16x16x64xf32> to vector<16x1x32xf32>
    %54 = vector.extract_strided_slice %38 {offsets = [0, 15, 0], sizes = [16, 1, 32], strides = [1, 1, 1]} : vector<16x16x64xf32> to vector<16x1x32xf32>
    %55 = tpu.concatenate %39, %40, %41, %42, %43, %44, %45, %46, %47, %48, %49, %50, %51, %52, %53, %54 in 2 : vector<16x1x32xf32>, vector<16x1x32xf32>, vector<16x1x32xf32>, vector<16x1x32xf32>, vector<16x1x32xf32>, vector<16x1x32xf32>, vector<16x1x32xf32>, vector<16x1x32xf32>, vector<16x1x32xf32>, vector<16x1x32xf32>, vector<16x1x32xf32>, vector<16x1x32xf32>, vector<16x1x32xf32>, vector<16x1x32xf32>, vector<16x1x32xf32>, vector<16x1x32xf32> -> vector<16x1x512xf32>
    %56 = vector.extract_strided_slice %38 {offsets = [0, 0, 32], sizes = [16, 1, 32], strides = [1, 1, 1]} : vector<16x16x64xf32> to vector<16x1x32xf32>
    %57 = vector.extract_strided_slice %38 {offsets = [0, 1, 32], sizes = [16, 1, 32], strides = [1, 1, 1]} : vector<16x16x64xf32> to vector<16x1x32xf32>
    %58 = vector.extract_strided_slice %38 {offsets = [0, 2, 32], sizes = [16, 1, 32], strides = [1, 1, 1]} : vector<16x16x64xf32> to vector<16x1x32xf32>
    %59 = vector.extract_strided_slice %38 {offsets = [0, 3, 32], sizes = [16, 1, 32], strides = [1, 1, 1]} : vector<16x16x64xf32> to vector<16x1x32xf32>
    %60 = vector.extract_strided_slice %38 {offsets = [0, 4, 32], sizes = [16, 1, 32], strides = [1, 1, 1]} : vector<16x16x64xf32> to vector<16x1x32xf32>
    %61 = vector.extract_strided_slice %38 {offsets = [0, 5, 32], sizes = [16, 1, 32], strides = [1, 1, 1]} : vector<16x16x64xf32> to vector<16x1x32xf32>
    %62 = vector.extract_strided_slice %38 {offsets = [0, 6, 32], sizes = [16, 1, 32], strides = [1, 1, 1]} : vector<16x16x64xf32> to vector<16x1x32xf32>
    %63 = vector.extract_strided_slice %38 {offsets = [0, 7, 32], sizes = [16, 1, 32], strides = [1, 1, 1]} : vector<16x16x64xf32> to vector<16x1x32xf32>
    %64 = vector.extract_strided_slice %38 {offsets = [0, 8, 32], sizes = [16, 1, 32], strides = [1, 1, 1]} : vector<16x16x64xf32> to vector<16x1x32xf32>
    %65 = vector.extract_strided_slice %38 {offsets = [0, 9, 32], sizes = [16, 1, 32], strides = [1, 1, 1]} : vector<16x16x64xf32> to vector<16x1x32xf32>
    %66 = vector.extract_strided_slice %38 {offsets = [0, 10, 32], sizes = [16, 1, 32], strides = [1, 1, 1]} : vector<16x16x64xf32> to vector<16x1x32xf32>
    %67 = vector.extract_strided_slice %38 {offsets = [0, 11, 32], sizes = [16, 1, 32], strides = [1, 1, 1]} : vector<16x16x64xf32> to vector<16x1x32xf32>
    %68 = vector.extract_strided_slice %38 {offsets = [0, 12, 32], sizes = [16, 1, 32], strides = [1, 1, 1]} : vector<16x16x64xf32> to vector<16x1x32xf32>
    %69 = vector.extract_strided_slice %38 {offsets = [0, 13, 32], sizes = [16, 1, 32], strides = [1, 1, 1]} : vector<16x16x64xf32> to vector<16x1x32xf32>
    %70 = vector.extract_strided_slice %38 {offsets = [0, 14, 32], sizes = [16, 1, 32], strides = [1, 1, 1]} : vector<16x16x64xf32> to vector<16x1x32xf32>
    %71 = vector.extract_strided_slice %38 {offsets = [0, 15, 32], sizes = [16, 1, 32], strides = [1, 1, 1]} : vector<16x16x64xf32> to vector<16x1x32xf32>
    %72 = tpu.concatenate %56, %57, %58, %59, %60, %61, %62, %63, %64, %65, %66, %67, %68, %69, %70, %71 in 2 : vector<16x1x32xf32>, vector<16x1x32xf32>, vector<16x1x32xf32>, vector<16x1x32xf32>, vector<16x1x32xf32>, vector<16x1x32xf32>, vector<16x1x32xf32>, vector<16x1x32xf32>, vector<16x1x32xf32>, vector<16x1x32xf32>, vector<16x1x32xf32>, vector<16x1x32xf32>, vector<16x1x32xf32>, vector<16x1x32xf32>, vector<16x1x32xf32>, vector<16x1x32xf32> -> vector<16x1x512xf32>
    %73 = tpu.concatenate %55, %72 in 1 : vector<16x1x512xf32>, vector<16x1x512xf32> -> vector<16x2x512xf32>
    %74 = vector.shape_cast %73 : vector<16x2x512xf32> to vector<32x512xf32>
    %75 = arith.truncf %74 : vector<32x512xf32> to vector<32x512xbf16>
    %c0_18 = arith.constant 0 : index
    %c0_19 = arith.constant 0 : index
    %c0_20 = arith.constant 0 : index
    %76 = vector.load %arg8[%c0_18, %c0_19, %c0_20] : memref<1x32x512xbf16, #tpu.memory_space<vmem>>, vector<1x32x512xbf16>
    %77 = vector.shape_cast %76 : vector<1x32x512xbf16> to vector<32x512xbf16>
    %78 = vector.shape_cast %75 : vector<32x512xbf16> to vector<1x32x512xbf16>
    tpu.vector_store %arg8[%c0_18, %c0_19, %c0_20], %78 {strides = array<i32>} : memref<1x32x512xbf16, #tpu.memory_space<vmem>>, vector<1x32x512xbf16>,
    return
  }
  func.func @transform_0(%arg0: i32, %arg1: i32) -> (i32, i32, i32, i32) {
    %c0_i32 = arith.constant 0 : i32
    %c0_i32_0 = arith.constant 0 : i32
    %c0_i32_1 = arith.constant 0 : i32
    return %arg0, %arg1, %c0_i32, %c0_i32_0 : i32, i32, i32, i32
  }
  func.func @transform_1(%arg0: i32, %arg1: i32) -> (i32, i32, i32, i32) {
    %c1_i32 = arith.constant 1 : i32
    %0 = arith.addi %arg1, %c1_i32 : i32
    %c16_i32 = arith.constant 16 : i32
    %1 = arith.muli %0, %c16_i32 : i32
    %c15_i32 = arith.constant 15 : i32
    %2 = arith.minsi %1, %c15_i32 : i32
    %c0_i32 = arith.constant 0 : i32
    %c0_i32_0 = arith.constant 0 : i32
    %c0_i32_1 = arith.constant 0 : i32
    return %arg0, %2, %c0_i32, %c0_i32_0 : i32, i32, i32, i32
  }
  func.func @transform_2(%arg0: i32, %arg1: i32) -> (i32, i32) {
    %c0_i32 = arith.constant 0 : i32
    %c0_i32_0 = arith.constant 0 : i32
    %c0_i32_1 = arith.constant 0 : i32
    return %c0_i32, %c0_i32_0 : i32, i32
  }
  func.func @transform_3(%arg0: i32, %arg1: i32) -> (i32, i32) {
    %c0_i32 = arith.constant 0 : i32
    %c0_i32_0 = arith.constant 0 : i32
    %c0_i32_1 = arith.constant 0 : i32
    return %c0_i32, %c0_i32_0 : i32, i32
  }
  func.func @transform_4(%arg0: i32, %arg1: i32) -> (i32, i32) {
    %c0_i32 = arith.constant 0 : i32
    %c0_i32_0 = arith.constant 0 : i32
    %c0_i32_1 = arith.constant 0 : i32
    return %c0_i32, %c0_i32_0 : i32, i32
  }
  func.func @transform_5(%arg0: i32, %arg1: i32) -> (i32, i32) {
    %c0_i32 = arith.constant 0 : i32
    %c0_i32_0 = arith.constant 0 : i32
    %c0_i32_1 = arith.constant 0 : i32
    return %c0_i32, %c0_i32_0 : i32, i32
  }
  func.func @transform_6(%arg0: i32, %arg1: i32) -> (i32, i32, i32) {
    %c0_i32 = arith.constant 0 : i32
    %c0_i32_0 = arith.constant 0 : i32
    return %arg0, %arg1, %c0_i32 : i32, i32, i32
  }
}

</mosaic_0001>

<bundles_post_ra>
// kernel: tile.29
= control target key start
LH: loop header
LB: loop body
LE: loop exit
PB: predicated region body
PF: predicated region fallthrough
CT: control target
= control target key end

     0   :  { %vm8_vm0 = vcmask 130048   ;;  %s40_s8 = smov 16   ;;  %s41_s9 = smov 32   ;;  %vm14_vm1 = vcmask 523648   ;;  %vm20_vm2 = vcmask 392448   ;;  %vm26_vm3 = vcmask 261248   ;;  %s58_s0 = inlined_call_operand.vmem [shape: f32[4,16], index: 0, kind: input, shape index: {}]   ;;  %s59_s1 = inlined_call_operand.vmem [shape: f32[1,64], index: 1, kind: output, shape index: {}]  }
   0x1   :  { %v5_v0 = vld [vmem:[%s58_s0] sm:$0xf]  ;;  %s39_s0 = smov 48  }
   0x2   :  { %6 = vst [vmem:[#allocation1] sm:$0xf] %v5_v0 }
   0x9   :  { %v11_v1 = vld [vmem:[#allocation1 + $0x3] sm:$0x1]   ;;  %v23_v2 = vld [vmem:[#allocation1 + $0x1] sm:$0x1]   ;;  %v7_v3 = vld [vmem:[#allocation1] sm:$0x1]  }
   0xa   :  { %12 = vrot.lane.b32.xlu0 %v11_v1, %s39_s0  ;;  %24 = vrot.lane.b32.xlu1 %v23_v2, %s40_s8  ;;  %v17_v4 = vld [vmem:[#allocation1 + $0x2] sm:$0x1]   ;;  %9 = vst.msk [vmem:[#allocation0] sm:$0x1] %vm8_vm0, %v7_v3  }
   0xe   :  { %18 = vrot.lane.b32.xlu0 %v17_v4, %s41_s9 }
  0x7c   :  { %v13_v5 = vpop.permute.xlu0 %12   ;;  %v25_v6 = vpop.permute.xlu1 %24  }
  0x7d   :  { %15 = vst.msk [vmem:[#allocation0] sm:$0x1] %vm14_vm1, %v13_v5  }
  0x80   :  { %v19_v7 = vpop.permute.xlu0 %18  }
  0x81   :  { %21 = vst.msk [vmem:[#allocation0] sm:$0x1] %vm20_vm2, %v19_v7  }
  0x82   :  { %27 = vst.msk [vmem:[#allocation0] sm:$0x1] %vm26_vm3, %v25_v6  }
  0x89   :  { %v32_v8 = vld [vmem:[#allocation0] sm:$0x1] }
  0x8a   :  { %35 = vst [vmem:[%s59_s1] sm:$0x1] %v32_v8 }

// kernel: tile.28
= control target key start
LH: loop header
LB: loop body
LE: loop exit
PB: predicated region body
PF: predicated region fallthrough
CT: control target
= control target key end

     0   :  { %s22_s0 = inlined_call_operand.vmem [shape: f32[16], index: 0, kind: input, shape index: {}]   ;;  %s23_s1 = inlined_call_operand.vmem [shape: f32[4,16], index: 1, kind: output, shape index: {}]  }
   0x1   :  { %v4_v0 = vld [vmem:[%s22_s0] ss:$0 sm:$0xff] }
   0x2   :  { %5 = vst [vmem:[%s23_s1] sm:$0xf] %v4_v0 }

// kernel: trconv_forward.1
= control target key start
LH: loop header
LB: loop body
LE: loop exit
PB: predicated region body
PF: predicated region fallthrough
CT: control target
= control target key end

     0   :  { %s4203_s21 = smov 0   ;;  %s4205_s22 = smov 0   ;;  %s8143_s0 = inlined_call_operand.vmem [shape: f32[2,16,16,32], index: 0, kind: input, shape index: {}, may-alias: {0,1}]   ;;  %s8144_s1 = inlined_call_operand.vmem [shape: f32[2,16,16,32], index: 1, kind: input, shape index: {}, may-alias: {0,1}]   ;;  %s8145_s2 = inlined_call_operand.vmem [shape: bf16[128,64], index: 2, kind: input, shape index: {}]   ;;  %s8146_s3 = inlined_call_operand.vmem [shape: f32[1,64], index: 3, kind: input, shape index: {}]   ;;  %s8147_s4 = inlined_call_operand.vmem [shape: f32[1,64], index: 4, kind: input, shape index: {}]   ;;  %s8148_s5 = inlined_call_operand.vmem [shape: f32[1,64], index: 5, kind: input, shape index: {}]   ;;  %s8149_s6 = inlined_call_operand.vmem [shape: bf16[2,32,512], index: 6, kind: output, shape index: {}]  }
   0x1   :  { %s4207_s23 = smov 0  }
   0x2 LB: > { %s28_s24 = sadd.s32 1, %s4157_s22  ;;  %p3957_p0 = scmp.ge.s32.totalorder %s4161_s23, 1  ;;  %s4161_s23 = sphi %s4207_s23, %s16_s23   ;;  %s4157_s22 = sphi %s4205_s22, %s9282_s22   ;;  %s4153_s21 = sphi %s4203_s21, %s9281_s21  }
   0x3   : > { %p30_p1 = scmp.ge.s32.totalorder %s28_s24, 2  ;;  %p266_p2 = scmp.lt.s32.totalorder %s4161_s23, 3 }
   0x5   : > { %s9284_s24 = smov (%p30_p1, %s28_s24), 0  ;;  %p267_p3 = pnand %p3957_p0, %p266_p2 }
   0x7   : > { %270 = sbr.rel (%p267_p3) target bundleno = 1357 (0x54d), region = 44 }
   0xc   : > { %p320_p4 = scmp.lt.s32.totalorder %s4153_s21, 1  ;;  %vm429_vm0 = vsmask.f32 7424  ;;  %v4163_v12 = vmov 0   ;;  %s4164_s29 = smov 32   ;;  %vm682_vm1 = vcmask 261120  }
   0xd   : > { %v4246_v13 = vrot.slane %v4163_v12, 1  ;;  %s4165_s16 = smov 64   ;;  %s4166_s8 = smov 96   ;;  %vm715_vm2 = vcmask 523264   ;;  %vm748_vm3 = vcmask 785408   ;;  %vm3219_vm4 = vcmask 1040384  }
   0xe   : > { %s9286_s21 = smov (!%p320_p4, %s4153_s21), 1 }
   0xf   : > { %s4001_s25 = sshll.u32 %s9286_s21, 8  ;;  %s4004_s15 = sshll.u32 %s9286_s21, 6 }
  0x10   : > { %s4229_s28 = scalar_lea.vmem %s8143_s0, %s4001_s25  ;;  %s4003_s30 = sadd.s32 240, %s4001_s25 }
  0x11   : > { %v377_v0 = vld [vmem:[%s4229_s28 + $0x20] sm:$0xff]  ;;  %v378_v1 = vld [vmem:[%s4229_s28 + $0x28] sm:$0xff]  ;;  %v379_v5 = vld [vmem:[%s4229_s28 + $0x30] sm:$0xff]  ;;  %s342_s9 = scalar_lea.vmem %s8144_s1, %s4003_s30  ;;  %s7180_s18 = scalar_lea.vmem %s8149_s6, %s4004_s15 }
  0x12   : > { %v373_v2 = vld [vmem:[%s4229_s28] sm:$0xff]  ;;  %v4234_v3 = vpack.c.bf16 %v378_v1, %v377_v0  ;;  %v374_v4 = vld [vmem:[%s4229_s28 + $0x8] sm:$0xff]  ;;  %v380_v6 = vld [vmem:[%s4229_s28 + $0x38] sm:$0xff] }
  0x13   : > { %v4239_v7 = vpack.c.bf16 %v374_v4, %v373_v2  ;;  %v4241_v8 = vpack.c.bf16 %v380_v6, %v379_v5  ;;  %v375_v9 = vld [vmem:[%s4229_s28 + $0x10] sm:$0xff]  ;;  %v376_v10 = vld [vmem:[%s4229_s28 + $0x18] sm:$0xff]  ;;  %v381_v18 = vld [vmem:[%s4229_s28 + $0x40] sm:$0xff] }
  0x14   : > { %v383_v11 = vld [vmem:[%s4229_s28 + $0x50] sm:$0xff]  ;;  %v451_v14 = vshrl.u32 %v4234_v3, 16  ;;  %v453_v15 = vshll.u32 %v4234_v3, 16  ;;  %v4250_v16 = vpack.c.bf16 %v376_v10, %v375_v9  ;;  %v384_v17 = vld [vmem:[%s4229_s28 + $0x58] sm:$0xff]  ;;  %v382_v19 = vld [vmem:[%s4229_s28 + $0x48] sm:$0xff] }
  0x15   : > { %v431_v20 = vshrl.u32 %v4239_v7, 16  ;;  %v433_v21 = vshll.u32 %v4239_v7, 16  ;;  %v459_v22 = vshrl.u32 %v4241_v8, 16  ;;  %v461_v23 = vshll.u32 %v4241_v8, 16  ;;  %v387_v24 = vld [vmem:[%s4229_s28 + $0x70] sm:$0xff]  ;;  %v388_v25 = vld [vmem:[%s4229_s28 + $0x78] sm:$0xff] }
  0x16   : > { %v455_v26 = vrot.slane %v453_v15, 1  ;;  %v443_v27 = vshrl.u32 %v4250_v16, 16  ;;  %v445_v28 = vshll.u32 %v4250_v16, 16  ;;  %v4263_v29 = vpack.c.bf16 %v384_v17, %v383_v11  ;;  %v385_v38 = vld [vmem:[%s4229_s28 + $0x60] sm:$0xff]  ;;  %v386_v39 = vld [vmem:[%s4229_s28 + $0x68] sm:$0xff]  ;;  %v391_v44 = vld [vmem:[%s4229_s28 + $0x90] sm:$0xff] }
  0x17   : > { %v435_v30 = vrot.slane %v433_v21, 1  ;;  %v463_v31 = vrot.slane %v461_v23, 1  ;;  %v4265_v32 = vpack.c.bf16 %v382_v19, %v381_v18  ;;  %v4267_v33 = vpack.c.bf16 %v388_v25, %v387_v24  ;;  %v392_v45 = vld [vmem:[%s4229_s28 + $0x98] sm:$0xff]  ;;  %v389_v46 = vld [vmem:[%s4229_s28 + $0x80] sm:$0xff]  ;;  %v390_v51 = vld [vmem:[%s4229_s28 + $0x88] sm:$0xff] }
  0x18   : > { %v456_v34 = vor.u32 %v455_v26, %v451_v14  ;;  %v447_v35 = vrot.slane %v445_v28, 1  ;;  %v475_v36 = vshrl.u32 %v4263_v29, 16  ;;  %v477_v37 = vshll.u32 %v4263_v29, 16  ;;  %v395_v52 = vld [vmem:[%s4229_s28 + $0xb0] sm:$0xff]  ;;  %v396_v53 = vld [vmem:[%s4229_s28 + $0xb8] sm:$0xff]  ;;  %v393_v62 = vld [vmem:[%s4229_s28 + $0xa0] sm:$0xff] }
  0x19   : > { %v436_v40 = vor.u32 %v435_v30, %v431_v20  ;;  %v464_v41 = vor.u32 %v463_v31, %v459_v22  ;;  %v467_v42 = vshrl.u32 %v4265_v32, 16  ;;  %v469_v43 = vshll.u32 %v4265_v32, 16  ;;  %v394_v63 = vld [vmem:[%s4229_s28 + $0xa8] sm:$0xff]  ;;  %v399_v0 = vld [vmem:[%s4229_s28 + $0xd0] sm:$0xff]  ;;  %v400_v6 = vld [vmem:[%s4229_s28 + $0xd8] sm:$0xff] }
  0x1a   : > { %v4280_v47 = vsel %vm429_vm0, %v456_v34, %v4246_v13  ;;  %v448_v48 = vor.u32 %v447_v35, %v443_v27  ;;  %v479_v49 = vrot.slane %v477_v37, 1  ;;  %v491_v50 = vshrl.u32 %v4267_v33, 16  ;;  %v397_v11 = vld [vmem:[%s4229_s28 + $0xc0] sm:$0xff]  ;;  %v398_v12 = vld [vmem:[%s4229_s28 + $0xc8] sm:$0xff]  ;;  %v404_v37 = vld [vmem:[%s4229_s28 + $0xf8] sm:$0xff] }
  0x1b   : > { %574 = vrot.lane.b32.xlu1 %v4280_v47, %s4164_s29  ;;  %v441_v54 = vsel %vm429_vm0, %v436_v40, %v4246_v13  ;;  %v4292_v55 = vsel %vm429_vm0, %v464_v41, %v4246_v13  ;;  %v471_v56 = vrot.slane %v469_v43, 1  ;;  %v493_v57 = vshll.u32 %v4267_v33, 16  ;;  %v402_v43 = vld [vmem:[%s4229_s28 + $0xe8] sm:$0xff] }
  0x1c   : > { %570 = vrot.lane.b32.xlu0 %v441_v54, %s4164_s29  ;;  %v4298_v58 = vsel %vm429_vm0, %v448_v48, %v4246_v13  ;;  %v480_v59 = vor.u32 %v479_v49, %v475_v36  ;;  %v4300_v60 = vpack.c.bf16 %v386_v39, %v385_v38  ;;  %v4302_v61 = vpack.c.bf16 %v392_v45, %v391_v44  ;;  %v403_v36 = vld [vmem:[%s4229_s28 + $0xf0] sm:$0xff]  ;;  %v401_v38 = vld [vmem:[%s4229_s28 + $0xe0] sm:$0xff]  ;;  %v422_v45 = vld [vmem:[%s342_s9 + $0x8] sm:$0xff] }
  0x1d   : > { %v472_v1 = vor.u32 %v471_v56, %v467_v42  ;;  %v495_v2 = vrot.slane %v493_v57, 1  ;;  %v4309_v4 = vpack.c.bf16 %v390_v51, %v389_v46  ;;  %v4311_v5 = vpack.c.bf16 %v396_v53, %v395_v52  ;;  %v421_v44 = vld [vmem:[%s342_s9] sm:$0xff] }
  0x1e   : > { %v483_v9 = vshrl.u32 %v4300_v60, 16  ;;  %v485_v10 = vshll.u32 %v4300_v60, 16  ;;  %v4322_v14 = vsel %vm429_vm0, %v480_v59, %v4246_v13  ;;  %v507_v17 = vshrl.u32 %v4302_v61, 16 }
  0x1f   : > { %576 = vrot.lane.b32.xlu1 %v4292_v55, %s4164_s29  ;;  %v4326_v15 = vsel %vm429_vm0, %v472_v1, %v4246_v13  ;;  %v509_v18 = vshll.u32 %v4302_v61, 16  ;;  %v496_v19 = vor.u32 %v495_v2, %v491_v50  ;;  %v501_v21 = vshll.u32 %v4309_v4, 16 }
  0x20   : > { %572 = vrot.lane.b32.xlu0 %v4298_v58, %s4164_s29  ;;  %v487_v20 = vrot.slane %v485_v10, 1  ;;  %v525_v22 = vshll.u32 %v4311_v5, 16  ;;  %v499_v24 = vshrl.u32 %v4309_v4, 16  ;;  %v4335_v25 = vpack.c.bf16 %v394_v63, %v393_v62 }
  0x21   : > { %v511_v23 = vrot.slane %v509_v18, 1  ;;  %v4337_v26 = vpack.c.bf16 %v400_v6, %v399_v0  ;;  %v503_v28 = vrot.slane %v501_v21, 1  ;;  %v4342_v30 = vpack.c.bf16 %v398_v12, %v397_v11 }
  0x22   : > { %v488_v27 = vor.u32 %v487_v20, %v483_v9  ;;  %v523_v31 = vshrl.u32 %v4311_v5, 16  ;;  %v527_v34 = vrot.slane %v525_v22, 1  ;;  %v517_v35 = vshll.u32 %v4335_v25, 16 }
  0x23   : > { %580 = vrot.lane.b32.xlu1 %v4322_v14, %s4164_s29  ;;  %v4355_v39 = vsel %vm429_vm0, %v496_v19, %v4246_v13  ;;  %v512_v40 = vor.u32 %v511_v23, %v507_v17  ;;  %v515_v41 = vshrl.u32 %v4335_v25, 16  ;;  %v541_v42 = vshll.u32 %v4337_v26, 16 }
  0x24   : > { %578 = vrot.lane.b32.xlu0 %v4326_v15, %s4164_s29  ;;  %v4362_v46 = vsel %vm429_vm0, %v488_v27, %v4246_v13  ;;  %v504_v48 = vor.u32 %v503_v28, %v499_v24  ;;  %v519_v49 = vrot.slane %v517_v35, 1  ;;  %v533_v50 = vshll.u32 %v4342_v30, 16  ;;  %v4131_v27 = vld [vmem:[%s8145_s2 + $0x38] sm:$0xff]  }
  0x25   : > { %v539_v51 = vshrl.u32 %v4337_v26, 16  ;;  %v4366_v52 = vpack.c.bf16 %v404_v37, %v403_v36  ;;  %v528_v53 = vor.u32 %v527_v34, %v523_v31  ;;  %v543_v54 = vrot.slane %v541_v42, 1  ;;  %4038 = vmatprep.subr.bf16.mxu0 %v4131_v27  ;;  %4086 = vmatprep.subr.bf16.mxu1 %v4131_v27  ;;  %v4133_v42 = vld [vmem:[%s8145_s2 + $0x28] sm:$0xff]  }
  0x26   : > { %v4370_v56 = vpack.c.bf16 %v402_v43, %v401_v38  ;;  %v423_v57 = vpack.c.bf16 %v422_v45, %v421_v44  ;;  %v4376_v59 = vsel %vm429_vm0, %v512_v40, %v4246_v13  ;;  %v531_v62 = vshrl.u32 %v4342_v30, 16  ;;  %4039 = vmatpush3.bf16.msra.mxu0 %v4131_v27  ;;  %4094 = vmatpush3.bf16.msra.mxu1 %v4131_v27  ;;  %v4132_v38 = vld [vmem:[%s8145_s2 + $0x30] sm:$0xff]   ;;  %v4135_v43 = vld [vmem:[%s8145_s2 + $0x18] sm:$0xff]   ;;  %v4137_v45 = vld [vmem:[%s8145_s2 + $0x8] sm:$0xff]  }
  0x27   : > { %584 = vrot.lane.b32.xlu1 %v4355_v39, %s4164_s29  ;;  %v557_v63 = vshll.u32 %v4366_v52, 16  ;;  %v4382_v0 = vsel %vm429_vm0, %v504_v48, %v4246_v13  ;;  %v520_v1 = vor.u32 %v519_v49, %v515_v41  ;;  %v535_v2 = vrot.slane %v533_v50, 1  ;;  %4040 = vmatprep.subr.bf16.mxu0 %v4132_v38  ;;  %v4136_v44 = vld [vmem:[%s8145_s2 + $0x10] sm:$0xff]   ;;  %v4138_v48 = vld [vmem:[%s8145_s2] sm:$0xff]  }
  0x28   : > { %582 = vrot.lane.b32.xlu0 %v4362_v46, %s4164_s29  ;;  %v549_v6 = vshll.u32 %v4370_v56, 16  ;;  %v4385_v9 = vmul.bf16 0.0, %v423_v57  ;;  %v4391_v10 = vsel %vm429_vm0, %v528_v53, %v4246_v13  ;;  %v544_v11 = vor.u32 %v543_v54, %v539_v51  ;;  %4087 = vmatprep.subr.bf16.mxu1 %v4132_v38 }
  0x29   : > { %v555_v12 = vshrl.u32 %v4366_v52, 16  ;;  %v559_v17 = vrot.slane %v557_v63, 1  ;;  %v4400_v20 = vsel %vm429_vm0, %v520_v1, %v4246_v13  ;;  %v536_v21 = vor.u32 %v535_v2, %v531_v62 }
  0x2a   : > { %v565_v18 = vshll.u32 %v4385_v9, 16  ;;  %v563_v19 = vshrl.u32 %v4385_v9, 16  ;;  %v547_v22 = vshrl.u32 %v4370_v56, 16  ;;  %v551_v23 = vrot.slane %v549_v6, 1  ;;  %4041 = vmatpush3.bf16.msra.mxu0 %v4132_v38  ;;  %4095 = vmatpush3.bf16.msra.mxu1 %v4132_v38 }
  0x2b   : > { %588 = vrot.lane.b32.xlu1 %v4376_v59, %s4164_s29  ;;  %v4412_v28 = vsel %vm429_vm0, %v544_v11, %v4246_v13  ;;  %v560_v31 = vor.u32 %v559_v17, %v555_v12  ;;  %v4416_v35 = vsel %vm429_vm0, %v536_v21, %v4246_v13  ;;  %4042 = vmatprep.subr.bf16.mxu0 %v4133_v42 }
  0x2c   : > { %586 = vrot.lane.b32.xlu0 %v4382_v0, %s4164_s29  ;;  %v567_v24 = vrot.slane %v565_v18, 1  ;;  %v552_v36 = vor.u32 %v551_v23, %v547_v22  ;;  %4088 = vmatprep.subr.bf16.mxu1 %v4133_v42 }
  0x2d   : > { %v4431_v40 = vsel %vm429_vm0, %v560_v31, %v4246_v13 }
  0x2e   : > { %v568_v34 = vor.u32 %v567_v24, %v563_v19  ;;  %v4435_v41 = vsel %vm429_vm0, %v552_v36, %v4246_v13  ;;  %4043 = vmatpush3.bf16.msra.mxu0 %v4133_v42  ;;  %4096 = vmatpush3.bf16.msra.mxu1 %v4133_v42 }
  0x2f   : > { %592 = vrot.lane.b32.xlu1 %v4391_v10, %s4164_s29 }
  0x30   : > { %590 = vrot.lane.b32.xlu0 %v4400_v20, %s4164_s29  ;;  %v4420_v37 = vsel %vm429_vm0, %v568_v34, %v4246_v13  ;;  %v4134_v13 = vld [vmem:[%s8145_s2 + $0x20] sm:$0xff]  }
  0x31   : > { %4044 = vmatprep.subr.bf16.mxu0 %v4134_v13  ;;  %4089 = vmatprep.subr.bf16.mxu1 %v4134_v13 }
  0x32   : > { %4045 = vmatpush3.bf16.msra.mxu0 %v4134_v13  ;;  %4097 = vmatpush3.bf16.msra.mxu1 %v4134_v13 }
  0x33   : > { %596 = vrot.lane.b32.xlu1 %v4412_v28, %s4164_s29  ;;  %4046 = vmatprep.subr.bf16.mxu0 %v4135_v43 }
  0x34   : > { %594 = vrot.lane.b32.xlu0 %v4416_v35, %s4164_s29  ;;  %4090 = vmatprep.subr.bf16.mxu1 %v4135_v43 }
  0x36   : > { %4047 = vmatpush3.bf16.msra.mxu0 %v4135_v43  ;;  %4098 = vmatpush3.bf16.msra.mxu1 %v4135_v43 }
  0x37   : > { %600 = vrot.lane.b32.xlu1 %v4431_v40, %s4164_s29  ;;  %4048 = vmatprep.subr.bf16.mxu0 %v4136_v44 }
  0x38   : > { %598 = vrot.lane.b32.xlu0 %v4435_v41, %s4164_s29  ;;  %4091 = vmatprep.subr.bf16.mxu1 %v4136_v44 }
  0x3a   : > { %4049 = vmatpush3.bf16.msra.mxu0 %v4136_v44  ;;  %4099 = vmatpush3.bf16.msra.mxu1 %v4136_v44 }
  0x3b   : > { %620 = vrot.lane.b32.xlu1 %v4234_v3, %s4165_s16  ;;  %4050 = vmatprep.subr.bf16.mxu0 %v4137_v45 }
  0x3c   : > { %618 = vrot.lane.b32.xlu0 %v4250_v16, %s4165_s16  ;;  %4092 = vmatprep.subr.bf16.mxu1 %v4137_v45 }
  0x3e   : > { %4051 = vmatpush3.bf16.msra.mxu0 %v4137_v45  ;;  %4100 = vmatpush3.bf16.msra.mxu1 %v4137_v45 }
  0x3f   : > { %624 = vrot.lane.b32.xlu1 %v4265_v32, %s4165_s16  ;;  %4052 = vmatprep.subr.bf16.mxu0 %v4138_v48 }
  0x40   : > { %622 = vrot.lane.b32.xlu0 %v4241_v8, %s4165_s16  ;;  %4093 = vmatprep.subr.bf16.mxu1 %v4138_v48 }
  0x42   : > { %4053 = vmatpush3.bf16.msra.mxu0 %v4138_v48  ;;  %4101 = vmatpush3.bf16.msra.mxu1 %v4138_v48 }
  0x43   : > { %628 = vrot.lane.b32.xlu1 %v4300_v60, %s4165_s16 }
  0x44   : > { %626 = vrot.lane.b32.xlu0 %v4263_v29, %s4165_s16 }
  0x47   : > { %632 = vrot.lane.b32.xlu1 %v4309_v4, %s4165_s16 }
  0x48   : > { %630 = vrot.lane.b32.xlu0 %v4267_v33, %s4165_s16 }
  0x4b   : > { %636 = vrot.lane.b32.xlu1 %v4335_v25, %s4165_s16 }
  0x4c   : > { %634 = vrot.lane.b32.xlu0 %v4302_v61, %s4165_s16 }
  0x4f   : > { %640 = vrot.lane.b32.xlu1 %v4342_v30, %s4165_s16 }
  0x50   : > { %638 = vrot.lane.b32.xlu0 %v4311_v5, %s4165_s16 }
  0x53   : > { %644 = vrot.lane.b32.xlu1 %v4370_v56, %s4165_s16 }
  0x54   : > { %642 = vrot.lane.b32.xlu0 %v4337_v26, %s4165_s16 }
  0x57   : > { %648 = vrot.lane.b32.xlu1 %v4385_v9, %s4165_s16 }
  0x58   : > { %646 = vrot.lane.b32.xlu0 %v4366_v52, %s4165_s16 }
  0x5b   : > { %652 = vrot.lane.b32.xlu1 %v4280_v47, %s4166_s8 }
  0x5c   : > { %650 = vrot.lane.b32.xlu0 %v4298_v58, %s4166_s8 }
  0x5f   : > { %656 = vrot.lane.b32.xlu1 %v4326_v15, %s4166_s8 }
  0x60   : > { %654 = vrot.lane.b32.xlu0 %v4292_v55, %s4166_s8 }
  0x63   : > { %660 = vrot.lane.b32.xlu1 %v4362_v46, %s4166_s8 }
  0x64   : > { %658 = vrot.lane.b32.xlu0 %v4322_v14, %s4166_s8 }
  0x67   : > { %664 = vrot.lane.b32.xlu1 %v4382_v0, %s4166_s8 }
  0x68   : > { %662 = vrot.lane.b32.xlu0 %v4355_v39, %s4166_s8 }
  0x6b   : > { %668 = vrot.lane.b32.xlu1 %v4400_v20, %s4166_s8 }
  0x6c   : > { %666 = vrot.lane.b32.xlu0 %v4376_v59, %s4166_s8 }
  0x6f   : > { %672 = vrot.lane.b32.xlu1 %v4416_v35, %s4166_s8 }
  0x70   : > { %670 = vrot.lane.b32.xlu0 %v4391_v10, %s4166_s8 }
  0x73   : > { %676 = vrot.lane.b32.xlu1 %v4435_v41, %s4166_s8 }
  0x74   : > { %674 = vrot.lane.b32.xlu0 %v4412_v28, %s4166_s8 }
  0x77   : > { %680 = vrot.lane.b32.xlu1 %v4420_v37, %s4166_s8 }
  0x78   : > { %678 = vrot.lane.b32.xlu0 %v4431_v40, %s4166_s8 }
  0x8d   : > { %v575_v47 = vpop.permute.xlu1 %574 }
  0x8e   : > { %v571_v55 = vpop.permute.xlu0 %570  ;;  %v688_v40 = vsel %vm682_vm1, %v4234_v3, %v575_v47 }
  0x8f   : > { %v684_v28 = vsel %vm682_vm1, %v4239_v7, %v571_v55 }
  0x91   : > { %v577_v58 = vpop.permute.xlu1 %576 }
  0x92   : > { %v573_v14 = vpop.permute.xlu0 %572  ;;  %v690_v43 = vsel %vm682_vm1, %v4241_v8, %v577_v58 }
  0x93   : > { %v686_v27 = vsel %vm682_vm1, %v4250_v16, %v573_v14 }
  0x95   : > { %v4523_v15 = vpop.permute.xlu1 %580 }
  0x96   : > { %v579_v39 = vpop.permute.xlu0 %578 }
  0x97   : > { %v692_v45 = vsel %vm682_vm1, %v4265_v32, %v579_v39  ;;  %v694_v39 = vsel %vm682_vm1, %v4263_v29, %v4523_v15 }
  0x99   : > { %v4525_v46 = vpop.permute.xlu1 %584 }
  0x9a   : > { %v4527_v49 = vpop.permute.xlu0 %582 }
  0x9d   : > { %v589_v50 = vpop.permute.xlu1 %588 }
  0x9e   : > { %v587_v51 = vpop.permute.xlu0 %586 }
  0x9f   : > { %v700_v8 = vsel %vm682_vm1, %v4309_v4, %v587_v51 }
  0xa1   : > { %v4529_v53 = vpop.permute.xlu1 %592 }
  0xa2   : > { %v4531_v54 = vpop.permute.xlu0 %590 }
  0xa3   : > { %v704_v29 = vsel %vm682_vm1, %v4335_v25, %v4531_v54  ;;  %v706_v25 = vsel %vm682_vm1, %v4311_v5, %v4529_v53 }
  0xa5   : > { %v4533_v57 = vpop.permute.xlu1 %596 }
  0xa6   : > { %v4535_v59 = vpop.permute.xlu0 %594 }
  0xa9   : > { %v4537_v62 = vpop.permute.xlu1 %600 }
  0xaa   : > { %v4539_v63 = vpop.permute.xlu0 %598 }
  0xad   : > { %v621_v0 = vpop.permute.xlu1 %620 }
  0xae   : > { %v619_v1 = vpop.permute.xlu0 %618  ;;  %v719_v31 = vsel %vm715_vm2, %v686_v27, %v621_v0  ;;  %v696_v27 = vsel %vm682_vm1, %v4300_v60, %v4527_v49 }
  0xaf   : > { %v717_v35 = vsel %vm715_vm2, %v684_v28, %v619_v1  ;;  %v702_v1 = vsel %vm682_vm1, %v4302_v61, %v589_v50 }
  0xb1   : > { %v625_v2 = vpop.permute.xlu1 %624 }
  0xb2   : > { %v623_v6 = vpop.permute.xlu0 %622  ;;  %v723_v48 = vsel %vm715_vm2, %v690_v43, %v625_v2 }
  0xb3   : > { %v721_v16 = vsel %vm715_vm2, %v688_v40, %v623_v6 }
  0xb5   : > { %v629_v9 = vpop.permute.xlu1 %628 }
  0xb6   : > { %v627_v10 = vpop.permute.xlu0 %626  ;;  %v727_v61 = vsel %vm715_vm2, %v694_v39, %v629_v9 }
  0xb7   : > { %v725_v3 = vsel %vm715_vm2, %v692_v45, %v627_v10 }
  0xb9   : > { %v4541_v11 = vpop.permute.xlu1 %632 }
  0xba   : > { %v631_v12 = vpop.permute.xlu0 %630 }
  0xbb   : > { %v729_v50 = vsel %vm715_vm2, %v696_v27, %v631_v12  ;;  %v698_v12 = vsel %vm682_vm1, %v4267_v33, %v4525_v46 }
  0xbd   : > { %v637_v17 = vpop.permute.xlu1 %636 }
  0xbe   : > { %v635_v18 = vpop.permute.xlu0 %634  ;;  %v735_v32 = vsel %vm715_vm2, %v702_v1, %v637_v17 }
  0xbf   : > { %v733_v2 = vsel %vm715_vm2, %v700_v8, %v635_v18  ;;  %v708_v18 = vsel %vm682_vm1, %v4342_v30, %v4535_v59  ;;  %v710_v30 = vsel %vm682_vm1, %v4337_v26, %v4533_v57  ;;  %v714_v26 = vsel %vm682_vm1, %v4366_v52, %v4537_v62 }
  0xc1   : > { %v4543_v19 = vpop.permute.xlu1 %640 }
  0xc2   : > { %v639_v20 = vpop.permute.xlu0 %638  ;;  %v739_v28 = vsel %vm715_vm2, %v706_v25, %v4543_v19 }
  0xc3   : > { %v737_v17 = vsel %vm715_vm2, %v704_v29, %v639_v20  ;;  %v731_v20 = vsel %vm715_vm2, %v698_v12, %v4541_v11  ;;  %v712_v11 = vsel %vm682_vm1, %v4370_v56, %v4539_v63  ;;  %v4635_v63 = vld [vmem:[%s8146_s3] ss:$0 sm:$0xff] }
  0xc5   : > { %v4545_v21 = vpop.permute.xlu1 %644 }
  0xc6   : > { %v4547_v22 = vpop.permute.xlu0 %642  ;;  %v743_v19 = vsel %vm715_vm2, %v710_v30, %v4545_v21 }
  0xc9   : > { %v4549_v23 = vpop.permute.xlu1 %648 }
  0xca   : > { %v4551_v24 = vpop.permute.xlu0 %646  ;;  %v747_v56 = vsel %vm715_vm2, %v714_v26, %v4549_v23 }
  0xcd   : > { %v653_v34 = vpop.permute.xlu1 %652 }
  0xce   : > { %v651_v36 = vpop.permute.xlu0 %650  ;;  %v753_v37 = vsel %vm748_vm3, %v719_v31, %v653_v34  ;;  %v741_v31 = vsel %vm715_vm2, %v708_v18, %v4547_v22  ;;  %v745_v22 = vsel %vm715_vm2, %v712_v11, %v4551_v24 }
  0xcf   : > { %v750_v38 = vsel %vm748_vm3, %v717_v35, %v651_v36 }
  0xd0   : > { %4054 = vmatprep.mubr.bf16.mxu0 %v750_v38  ;;  %v4647_v38 = vld [vmem:[%s8148_s5] ss:$0 sm:$0xff] }
  0xd1   : > { %4055 = vmatmul.mubr.bf16.vlgmr.msra.gmra.mxu0 %v753_v37  ;;  %v657_v41 = vpop.permute.xlu1 %656  ;;  %v4641_v37 = vld [vmem:[%s8147_s4] ss:$0 sm:$0xff] }
  0xd2   : > { %v655_v42 = vpop.permute.xlu0 %654  ;;  %v759_v47 = vsel %vm748_vm3, %v723_v48, %v657_v41 }
  0xd3   : > { %v756_v7 = vsel %vm748_vm3, %v721_v16, %v655_v42 }
  0xd4   : > { %4058 = vmatprep.mubr.bf16.mxu0 %v756_v7 }
  0xd5   : > { %v661_v13 = vpop.permute.xlu1 %660 }
  0xd6   : > { %v659_v44 = vpop.permute.xlu0 %658  ;;  %v765_v51 = vsel %vm748_vm3, %v727_v61, %v661_v13 }
  0xd7   : > { %v762_v14 = vsel %vm748_vm3, %v725_v3, %v659_v44 }
  0xd9   : > { %4059 = vmatmul.mubr.bf16.gmra.mxu0 %v759_v47  ;;  %v665_v55 = vpop.permute.xlu1 %664 }
  0xda   : > { %4062 = vmatprep.mubr.bf16.mxu0 %v762_v14  ;;  %v663_v0 = vpop.permute.xlu0 %662  ;;  %v771_v33 = vsel %vm748_vm3, %v731_v20, %v665_v55 }
  0xdb   : > { %v768_v15 = vsel %vm748_vm3, %v729_v50, %v663_v0 }
  0xdd   : > { %v669_v58 = vpop.permute.xlu1 %668 }
  0xde   : > { %v667_v6 = vpop.permute.xlu0 %666  ;;  %v777_v10 = vsel %vm748_vm3, %v735_v32, %v669_v58 }
  0xdf   : > { %v774_v4 = vsel %vm748_vm3, %v733_v2, %v667_v6 }
  0xe0   : > { %4070 = vmatprep.mubr.bf16.mxu1 %v774_v4 }
  0xe1   : > { %4063 = vmatmul.mubr.bf16.gmra.mxu0 %v765_v51  ;;  %4071 = vmatmul.mubr.bf16.vlgmr.msra.gmra.mxu1 %v777_v10  ;;  %v673_v9 = vpop.permute.xlu1 %672 }
  0xe2   : > { %4066 = vmatprep.mubr.bf16.mxu0 %v768_v15  ;;  %v671_v60 = vpop.permute.xlu0 %670  ;;  %v783_v46 = vsel %vm748_vm3, %v739_v28, %v673_v9 }
  0xe3   : > { %v780_v49 = vsel %vm748_vm3, %v737_v17, %v671_v60 }
  0xe4   : > { %4074 = vmatprep.mubr.bf16.mxu1 %v780_v49 }
  0xe5   : > { %v677_v53 = vpop.permute.xlu1 %676 }
  0xe6   : > { %v675_v54 = vpop.permute.xlu0 %674  ;;  %v789_v34 = vsel %vm748_vm3, %v743_v19, %v677_v53 }
  0xe7   : > { %v786_v5 = vsel %vm748_vm3, %v741_v31, %v675_v54 }
  0xe9   : > { %4067 = vmatmul.mubr.bf16.gmra.mxu0 %v771_v33  ;;  %4075 = vmatmul.mubr.bf16.gmra.mxu1 %v783_v46  ;;  %v681_v36 = vpop.permute.xlu1 %680 }
  0xea   : > { %4078 = vmatprep.mubr.bf16.mxu1 %v786_v5  ;;  %v679_v59 = vpop.permute.xlu0 %678  ;;  %v795_v57 = vsel %vm748_vm3, %v747_v56, %v681_v36 }
  0xeb   : > { %v792_v35 = vsel %vm748_vm3, %v745_v22, %v679_v59 }
  0xf1   : > { %4079 = vmatmul.mubr.bf16.gmra.mxu1 %v789_v34 }
  0xf2   : > { %4082 = vmatprep.mubr.bf16.mxu1 %v792_v35 }
  0xf9   : > { %4083 = vmatmul.mubr.bf16.gmra.mxu1 %v795_v57 }
 0x191   : > { %v4056_v21 = vpop.f32.mrf.mxu0 }
 0x192   : > { %v911_v24 = vadd.f32 %v4056_v21, %v4635_v63 }
 0x193   : > { %v902_v52 = vpop.f32.mrf.mxu0 }
 0x194   : > { %v1031_v62 = vmax.f32 %v911_v24, 0.0  ;;  %v903_v23 = vadd.f32 %v4635_v63, %v902_v52 }
 0x195   : > { %v4649_v40 = vpop.f32.mrf.mxu0 }
 0x196   : > { %v1070_v41 = vmul.f32 %v4641_v37, %v1031_v62  ;;  %v1029_v16 = vmax.f32 %v903_v23, 0.0 }
 0x197   : > { %v905_v42 = vpop.f32.mrf.mxu0 }
 0x198   : > { %v4653_v7 = vadd.f32 %v4647_v38, %v1070_v41  ;;  %v1068_v13 = vmul.f32 %v4641_v37, %v1029_v16  ;;  %v906_v43 = vadd.f32 %v4635_v63, %v905_v42 }
 0x199   : > { %v4060_v44 = vpop.f32.mrf.mxu0 }
 0x19a   : > { %v4658_v45 = vadd.f32 %v4647_v38, %v1068_v13  ;;  %v1030_v48 = vmax.f32 %v906_v43, 0.0  ;;  %v927_v3 = vadd.f32 %v4060_v44, %v4635_v63  ;;  %v8169_v55 = vrot.slane %v4653_v7, 1 }
 0x19b   : > { %v918_v47 = vpop.f32.mrf.mxu0  ;;  %v8232_v26 = vrot.slane %v4653_v7, 2 }
 0x19c   : > { %v1069_v14 = vmul.f32 %v4641_v37, %v1030_v48  ;;  %v1035_v0 = vmax.f32 %v927_v3, 0.0  ;;  %v919_v1 = vadd.f32 %v4635_v63, %v918_v47  ;;  %1173 = vrot.lane.b32.xlu1 %v8169_v55, %s4164_s29  ;;  %v8167_v32 = vrot.slane %v4658_v45, 1 }
 0x19d   : > { %v4061_v8 = vpop.f32.mrf.mxu0 }
 0x19e   : > { %v4669_v58 = vadd.f32 %v4647_v38, %v1069_v14  ;;  %v1074_v39 = vmul.f32 %v4641_v37, %v1035_v0  ;;  %v1033_v2 = vmax.f32 %v919_v1, 0.0  ;;  %v930_v6 = vadd.f32 %v4061_v8, %v4635_v63  ;;  %1171 = vrot.lane.b32.xlu0 %v8167_v32, %s4164_s29 }
 0x19f   : > { %v921_v10 = vpop.f32.mrf.mxu0 }
 0x1a0   : > { %8413 = vst [vmem:[#allocation2_spill] sm:$0xff] %v4669_v58  ;;  %v4677_v27 = vadd.f32 %v4647_v38, %v1074_v39  ;;  %v1072_v61 = vmul.f32 %v4641_v37, %v1033_v2  ;;  %v1036_v4 = vmax.f32 %v930_v6, 0.0  ;;  %v922_v50 = vadd.f32 %v4635_v63, %v921_v10 }
 0x1a1   : > { %v4064_v51 = vpop.f32.mrf.mxu0  ;;  %v4072_v29 = vpop.f32.mrf.mxu1 }
 0x1a2   : > { %v4682_v15 = vadd.f32 %v4647_v38, %v1072_v61  ;;  %v1075_v17 = vmul.f32 %v4641_v37, %v1036_v4  ;;  %v1034_v60 = vmax.f32 %v922_v50, 0.0  ;;  %v943_v49 = vadd.f32 %v4064_v51, %v4635_v63 }
 0x1a3   : > { %v975_v9 = vadd.f32 %v4072_v29, %v4635_v63  ;;  %v934_v12 = vpop.f32.mrf.mxu0  ;;  %v966_v25 = vpop.f32.mrf.mxu1 }
 0x1a4   : > { %v4688_v54 = vadd.f32 %v4647_v38, %v1075_v17  ;;  %v1073_v18 = vmul.f32 %v4641_v37, %v1034_v60  ;;  %v1039_v20 = vmax.f32 %v943_v49, 0.0  ;;  %v935_v28 = vadd.f32 %v4635_v63, %v934_v12 }
 0x1a5   : > { %v1047_v31 = vmax.f32 %v975_v9, 0.0  ;;  %v967_v33 = vadd.f32 %v4635_v63, %v966_v25  ;;  %v4065_v46 = vpop.f32.mrf.mxu0  ;;  %v4073_v5 = vpop.f32.mrf.mxu1  ;;  %v8171_v32 = vrot.slane %v4682_v15, 5 }
 0x1a6   : > { %8414 = vst [vmem:[#allocation3_spill] sm:$0xff] %v4688_v54  ;;  %v4694_v53 = vadd.f32 %v4647_v38, %v1073_v18  ;;  %v1078_v30 = vmul.f32 %v4641_v37, %v1039_v20  ;;  %v1037_v59 = vmax.f32 %v935_v28, 0.0  ;;  %v946_v11 = vadd.f32 %v4065_v46, %v4635_v63 }
 0x1a7   : > { %v1086_v19 = vmul.f32 %v4641_v37, %v1047_v31  ;;  %v1045_v22 = vmax.f32 %v967_v33, 0.0  ;;  %v978_v34 = vadd.f32 %v4073_v5, %v4635_v63  ;;  %v937_v35 = vpop.f32.mrf.mxu0  ;;  %v969_v36 = vpop.f32.mrf.mxu1 }
 0x1a8   : > { %8415 = vst [vmem:[#allocation4_spill] sm:$0xff] %v4694_v53  ;;  %v4702_v56 = vadd.f32 %v4647_v38, %v1078_v30  ;;  %v1076_v57 = vmul.f32 %v4641_v37, %v1037_v59  ;;  %v1040_v21 = vmax.f32 %v946_v11, 0.0  ;;  %v938_v24 = vadd.f32 %v4635_v63, %v937_v35 }
 0x1a9   : > { %v4707_v52 = vadd.f32 %v4647_v38, %v1086_v19  ;;  %v1084_v62 = vmul.f32 %v4641_v37, %v1045_v22  ;;  %v1048_v23 = vmax.f32 %v978_v34, 0.0  ;;  %v970_v41 = vadd.f32 %v4635_v63, %v969_v36  ;;  %v4068_v16 = vpop.f32.mrf.mxu0  ;;  %v4076_v42 = vpop.f32.mrf.mxu1 }
 0x1aa   : > { %8416 = vst [vmem:[#allocation5_spill] sm:$0xff] %v4702_v56  ;;  %v4712_v13 = vadd.f32 %v4647_v38, %v1076_v57  ;;  %v1079_v43 = vmul.f32 %v4641_v37, %v1040_v21  ;;  %v1038_v44 = vmax.f32 %v938_v24, 0.0  ;;  %v959_v48 = vadd.f32 %v4068_v16, %v4635_v63 }
 0x1ab   : > { %8417 = vst [vmem:[#allocation6_spill] sm:$0xff] %v4707_v52  ;;  %v4717_v3 = vadd.f32 %v4647_v38, %v1084_v62  ;;  %v1087_v47 = vmul.f32 %v4641_v37, %v1048_v23  ;;  %v1046_v14 = vmax.f32 %v970_v41, 0.0  ;;  %v991_v0 = vadd.f32 %v4076_v42, %v4635_v63  ;;  %v950_v1 = vpop.f32.mrf.mxu0  ;;  %v982_v8 = vpop.f32.mrf.mxu1 }
 0x1ac   : > { %v4722_v39 = vadd.f32 %v4647_v38, %v1079_v43  ;;  %v1077_v2 = vmul.f32 %v4641_v37, %v1038_v44  ;;  %v1043_v6 = vmax.f32 %v959_v48, 0.0  ;;  %v951_v10 = vadd.f32 %v4635_v63, %v950_v1 }
 0x1ad   : > { %8418 = vst [vmem:[#allocation7_spill] sm:$0xff] %v4717_v3  ;;  %v4727_v61 = vadd.f32 %v4647_v38, %v1087_v47  ;;  %v1085_v4 = vmul.f32 %v4641_v37, %v1046_v14  ;;  %v1051_v50 = vmax.f32 %v991_v0, 0.0  ;;  %v983_v51 = vadd.f32 %v4635_v63, %v982_v8  ;;  %v4069_v29 = vpop.f32.mrf.mxu0  ;;  %v4077_v17 = vpop.f32.mrf.mxu1 }
 0x1ae   : > { %8419 = vst [vmem:[#allocation8_spill] sm:$0xff] %v4722_v39  ;;  %v4732_v60 = vadd.f32 %v4647_v38, %v1077_v2  ;;  %v1082_v49 = vmul.f32 %v4641_v37, %v1043_v6  ;;  %v1041_v9 = vmax.f32 %v951_v10, 0.0  ;;  %v8163_v12 = vrot.slane %v4707_v52, 1 }
 0x1af   : > { %8420 = vst [vmem:[#allocation9_spill] sm:$0xff] %v4727_v61  ;;  %v4737_v25 = vadd.f32 %v4647_v38, %v1085_v4  ;;  %v1090_v18 = vmul.f32 %v4641_v37, %v1051_v50  ;;  %v1049_v20 = vmax.f32 %v983_v51, 0.0  ;;  %v962_v28 = vadd.f32 %v4069_v29, %v4635_v63  ;;  %v953_v31 = vpop.f32.mrf.mxu0  ;;  %v985_v33 = vpop.f32.mrf.mxu1 }
 0x1b0   : > { %8421 = vst [vmem:[#allocation10_spill] sm:$0xff] %v4732_v60  ;;  %v4742_v46 = vadd.f32 %v4647_v38, %v1082_v49  ;;  %v1080_v5 = vmul.f32 %v4641_v37, %v1041_v9  ;;  %1189 = vrot.lane.b32.xlu1 %v8163_v12, %s4164_s29  ;;  %v994_v30 = vadd.f32 %v4077_v17, %v4635_v63  ;;  %v8160_v59 = vrot.slane %v4717_v3, 1 }
 0x1b1   : > { %8422 = vst [vmem:[#allocation11_spill] sm:$0xff] %v4737_v25  ;;  %v4751_v11 = vadd.f32 %v4647_v38, %v1090_v18  ;;  %v1088_v19 = vmul.f32 %v4641_v37, %v1049_v20  ;;  %v1044_v22 = vmax.f32 %v962_v28, 0.0  ;;  %v954_v34 = vadd.f32 %v4635_v63, %v953_v31  ;;  %v4080_v35 = vpop.f32.mrf.mxu1 }
 0x1b2   : > { %v4756_v36 = vadd.f32 %v4647_v38, %v1080_v5  ;;  %v1052_v57 = vmax.f32 %v994_v30, 0.0  ;;  %1187 = vrot.lane.b32.xlu0 %v8160_v59, %s4164_s29  ;;  %v986_v21 = vadd.f32 %v4635_v63, %v985_v33  ;;  %v1007_v24 = vadd.f32 %v4080_v35, %v4635_v63 }
 0x1b3   : > { %8423 = vst [vmem:[#allocation12_spill] sm:$0xff] %v4751_v11  ;;  %v4764_v62 = vadd.f32 %v4647_v38, %v1088_v19  ;;  %v1083_v23 = vmul.f32 %v4641_v37, %v1044_v22  ;;  %v1042_v41 = vmax.f32 %v954_v34, 0.0  ;;  %v8229_v16 = vrot.slane %v4658_v45, 2  ;;  %v998_v42 = vpop.f32.mrf.mxu1 }
 0x1b4   : > { %8424 = vst [vmem:[#allocation13_spill] sm:$0xff] %v4756_v36  ;;  %v1091_v43 = vmul.f32 %v4641_v37, %v1052_v57  ;;  %v1050_v44 = vmax.f32 %v986_v21, 0.0  ;;  %1237 = vrot.lane.b32.xlu1 %v8232_v26, %s4165_s16  ;;  %v1055_v48 = vmax.f32 %v1007_v24, 0.0  ;;  %v999_v47 = vadd.f32 %v4635_v63, %v998_v42 }
 0x1b5   : > { %8425 = vst [vmem:[#allocation14_spill] sm:$0xff] %v4764_v62  ;;  %v4774_v14 = vadd.f32 %v4647_v38, %v1083_v23  ;;  %v1081_v0 = vmul.f32 %v4641_v37, %v1042_v41  ;;  %v8220_v1 = vrot.slane %v4707_v52, 2  ;;  %v4081_v8 = vpop.f32.mrf.mxu1  ;;  %v8218_v29 = vrot.slane %v4717_v3, 2 }
 0x1b6   : > { %v4779_v2 = vadd.f32 %v4647_v38, %v1091_v43  ;;  %v1089_v6 = vmul.f32 %v4641_v37, %v1050_v44  ;;  %v1094_v10 = vmul.f32 %v4641_v37, %v1055_v48  ;;  %1235 = vrot.lane.b32.xlu0 %v8229_v16, %s4165_s16  ;;  %v1053_v4 = vmax.f32 %v999_v47, 0.0 }
 0x1b7   : > { %8426 = vst [vmem:[#allocation15_spill] sm:$0xff] %v4774_v14  ;;  %v4787_v50 = vadd.f32 %v4647_v38, %v1081_v0  ;;  %v1010_v51 = vadd.f32 %v4081_v8, %v4635_v63  ;;  %v1001_v17 = vpop.f32.mrf.mxu1  ;;  %v8213_v30 = vrot.slane %v4653_v7, 3  ;;  %v8212_v21 = vrot.slane %v4658_v45, 3 }
 0x1b8   : > { %8427 = vst [vmem:[#allocation16_spill] sm:$0xff] %v4779_v2  ;;  %v4792_v49 = vadd.f32 %v4647_v38, %v1089_v6  ;;  %v4795_v9 = vadd.f32 %v4647_v38, %v1094_v10  ;;  %v1092_v18 = vmul.f32 %v4641_v37, %v1053_v4  ;;  %1253 = vrot.lane.b32.xlu1 %v8220_v1, %s4165_s16  ;;  %v8208_v41 = vrot.slane %v4707_v52, 3 }
 0x1b9   : > { %8428 = vst [vmem:[#allocation17_spill] sm:$0xff] %v4787_v50  ;;  %v1002_v20 = vadd.f32 %v4635_v63, %v1001_v17  ;;  %v1056_v28 = vmax.f32 %v1010_v51, 0.0  ;;  %v4084_v31 = vpop.f32.mrf.mxu1  ;;  %v8205_v0 = vrot.slane %v4717_v3, 3  ;;  %v8211_v59 = vrot.slane %v4677_v27, 3 }
 0x1ba   : > { %8429 = vst [vmem:[#allocation18_spill] sm:$0xff] %v4792_v49  ;;  %8430 = vst [vmem:[#allocation19_spill] sm:$0xff] %v4795_v9  ;;  %v4803_v33 = vadd.f32 %v4647_v38, %v1092_v18  ;;  %1251 = vrot.lane.b32.xlu0 %v8218_v29, %s4165_s16  ;;  %v1023_v19 = vadd.f32 %v4084_v31, %v4635_v63  ;;  %v8209_v12 = vrot.slane %v4682_v15, 3  ;;  %v8173_v55 = vrot.slane %v4764_v62, 5 }
 0x1bb   : > { %v1054_v5 = vmax.f32 %v1002_v20, 0.0  ;;  %v1095_v22 = vmul.f32 %v4641_v37, %v1056_v28  ;;  %v1014_v34 = vpop.f32.mrf.mxu1  ;;  %v8158_v28 = vrot.slane %v4653_v7, 5  ;;  %v8234_v16 = vrot.slane %v4702_v56, 6 }
 0x1bc   : > { %8431 = vst [vmem:[#allocation20_spill] sm:$0xff] %v4803_v33  ;;  %1301 = vrot.lane.b32.xlu1 %v8213_v30, %s4166_s8  ;;  %v1059_v57 = vmax.f32 %v1023_v19, 0.0  ;;  %v1015_v24 = vadd.f32 %v4635_v63, %v1014_v34  ;;  %v8156_v19 = vrot.slane %v4658_v45, 5  ;;  %v8155_v34 = vrot.slane %v4707_v52, 5 }
 0x1bd   : > { %v1093_v35 = vmul.f32 %v4641_v37, %v1054_v5  ;;  %v4818_v23 = vadd.f32 %v4647_v38, %v1095_v22  ;;  %v4085_v42 = vpop.f32.mrf.mxu1  ;;  %v8219_v30 = vrot.slane %v4702_v56, 3 }
 0x1be   : > { %v1098_v44 = vmul.f32 %v4641_v37, %v1059_v57  ;;  %1299 = vrot.lane.b32.xlu0 %v8212_v21, %s4166_s8  ;;  %v1057_v48 = vmax.f32 %v1015_v24, 0.0  ;;  %v1026_v47 = vadd.f32 %v4085_v42, %v4635_v63  ;;  %v914_v57 = vadd.f32 %v4649_v40, %v4635_v63 }
 0x1bf   : > { %8432 = vst [vmem:[#allocation21_spill] sm:$0xff] %v4818_v23  ;;  %v4822_v43 = vadd.f32 %v4647_v38, %v1093_v35  ;;  %v1017_v8 = vpop.f32.mrf.mxu1  ;;  %v8154_v35 = vrot.slane %v4717_v3, 5  ;;  %v8200_v24 = vrot.slane %v4653_v7, 6  ;;  %v8197_v42 = vrot.slane %v4658_v45, 6 }
 0x1c0   : > { %v4831_v6 = vadd.f32 %v4647_v38, %v1098_v44  ;;  %v1096_v10 = vmul.f32 %v4641_v37, %v1057_v48  ;;  %1317 = vrot.lane.b32.xlu1 %v8208_v41, %s4166_s8  ;;  %v1060_v4 = vmax.f32 %v1026_v47, 0.0  ;;  %v1018_v51 = vadd.f32 %v4635_v63, %v1017_v8 }
 0x1c1   : > { %8433 = vst [vmem:[#allocation22_spill] sm:$0xff] %v4822_v43  ;;  %v1032_v44 = vmax.f32 %v914_v57, 0.0  ;;  %v8192_v48 = vrot.slane %v4707_v52, 6  ;;  %v8189_v63 = vrot.slane %v4717_v3, 6  ;;  %v8183_v47 = vrot.slane %v4653_v7, 7 }
 0x1c2   : > { %8434 = vst [vmem:[#allocation23_spill] sm:$0xff] %v4831_v6  ;;  %v4839_v17 = vadd.f32 %v4647_v38, %v1096_v10  ;;  %v1099_v18 = vmul.f32 %v4641_v37, %v1060_v4  ;;  %1315 = vrot.lane.b32.xlu0 %v8205_v0, %s4166_s8  ;;  %v1058_v20 = vmax.f32 %v1018_v51, 0.0  ;;  %v8180_v8 = vrot.slane %v4658_v45, 7 }
 0x1c3   : > { %v1071_v40 = vmul.f32 %v4641_v37, %v1032_v44  ;;  %v8177_v4 = vrot.slane %v4717_v3, 7  ;;  %v8175_v57 = vrot.slane %v4669_v58, 2  ;;  %v8174_v44 = vrot.slane %v4727_v61, 2 }
 0x1c4   : > { %8435 = vst [vmem:[#allocation24_spill] sm:$0xff] %v4839_v17  ;;  %v4847_v31 = vadd.f32 %v4647_v38, %v1099_v18  ;;  %v1097_v5 = vmul.f32 %v4641_v37, %v1058_v20  ;;  %1397 = vrot.lane.b32.xlu1 %v8158_v28, %s4164_s29  ;;  %v8178_v37 = vrot.slane %v4707_v52, 7  ;;  %v8151_v18 = vrot.slane %v4727_v61, 1 }
 0x1c5   : > { %v4893_v10 = vadd.f32 %v4647_v38, %v1071_v40  ;;  %v8150_v20 = vrot.slane %v4737_v25, 1  ;;  %v8172_v40 = vrot.slane %v4737_v25, 2  ;;  %v8217_v28 = vrot.slane %v4751_v11, 2 }
 0x1c6   : > { %8436 = vst [vmem:[#allocation25_spill] sm:$0xff] %v4847_v31  ;;  %v4855_v22 = vadd.f32 %v4647_v38, %v1097_v5  ;;  %1395 = vrot.lane.b32.xlu0 %v8156_v19, %s4164_s29  ;;  %v8152_v38 = vrot.slane %v4669_v58, 1  ;;  %v8228_v19 = vrot.slane %v4677_v27, 2  ;;  %v8224_v0 = vrot.slane %v4702_v56, 2 }
 0x1c7   : > { %8438 = vst [vmem:[#allocation27_spill] sm:$0xff] %v4893_v10  ;;  %v8153_v51 = vrot.slane %v4893_v10, 1  ;;  %v8176_v5 = vrot.slane %v4893_v10, 2 }
 0x1c8   : > { %8437 = vst [vmem:[#allocation26_spill] sm:$0xff] %v4855_v22  ;;  %1413 = vrot.lane.b32.xlu1 %v8155_v34, %s4164_s29  ;;  %v8164_v34 = vrot.slane %v4682_v15, 1 }
 0x1ca   : > { %1411 = vrot.lane.b32.xlu0 %v8154_v35, %s4164_s29  ;;  %v8159_v35 = vrot.slane %v4751_v11, 1 }
 0x1cc   : > { %1461 = vrot.lane.b32.xlu1 %v8200_v24, %s4165_s16 }
 0x1ce   : > { %1459 = vrot.lane.b32.xlu0 %v8197_v42, %s4165_s16  ;;  %v8203_v42 = vrot.slane %v4702_v56, 1 }
 0x1d0   : > { %1477 = vrot.lane.b32.xlu1 %v8192_v48, %s4165_s16 }
 0x1d2   : > { %1475 = vrot.lane.b32.xlu0 %v8189_v63, %s4165_s16  ;;  %v8195_v63 = vrot.slane %v4779_v2, 2 }
 0x1d4   : > { %1525 = vrot.lane.b32.xlu1 %v8183_v47, %s4166_s8  ;;  %v8190_v47 = vrot.slane %v4694_v53, 1 }
 0x1d6   : > { %1523 = vrot.lane.b32.xlu0 %v8180_v8, %s4166_s8 }
 0x1d8   : > { %1541 = vrot.lane.b32.xlu1 %v8178_v37, %s4166_s8 }
 0x1da   : > { %1539 = vrot.lane.b32.xlu0 %v8177_v4, %s4166_s8  ;;  %v8185_v4 = vrot.slane %v4688_v54, 1 }
 0x1dc   : > { %1605 = vrot.lane.b32.xlu1 %v8153_v51, %s4164_s29  ;;  %v8157_v51 = vrot.slane %v4737_v25, 3 }
 0x1de   : > { %1603 = vrot.lane.b32.xlu0 %v8152_v38, %s4164_s29  ;;  %v8166_v38 = vrot.slane %v4677_v27, 1 }
 0x1e0   : > { %1621 = vrot.lane.b32.xlu1 %v8151_v18, %s4164_s29  ;;  %v8162_v18 = vrot.slane %v4669_v58, 3 }
 0x1e2   : > { %1619 = vrot.lane.b32.xlu0 %v8150_v20, %s4164_s29  ;;  %v8165_v20 = vrot.slane %v4893_v10, 3 }
 0x1e4   : > { %1669 = vrot.lane.b32.xlu1 %v8176_v5, %s4165_s16 }
 0x1e6   : > { %1667 = vrot.lane.b32.xlu0 %v8175_v57, %s4165_s16  ;;  %v8182_v57 = vrot.slane %v4682_v15, 7 }
 0x1e8   : > { %1685 = vrot.lane.b32.xlu1 %v8174_v44, %s4165_s16  ;;  %v8181_v44 = vrot.slane %v4751_v11, 7 }
 0x1ea   : > { %1683 = vrot.lane.b32.xlu0 %v8172_v40, %s4165_s16  ;;  %v8179_v40 = vrot.slane %v4677_v27, 7 }
 0x1ec   : > { %1733 = vrot.lane.b32.xlu1 %v8165_v20, %s4166_s8  ;;  %v8201_v20 = vrot.slane %v4764_v62, 3 }
 0x1ee   : > { %1731 = vrot.lane.b32.xlu0 %v8162_v18, %s4166_s8  ;;  %v8204_v18 = vrot.slane %v4751_v11, 3 }
 0x1f0   : > { %1177 = vrot.lane.b32.xlu1 %v8166_v38, %s4164_s29  ;;  %v8170_v38 = vrot.slane %v4751_v11, 5 }
 0x1f2   : > { %1747 = vrot.lane.b32.xlu0 %v8157_v51, %s4166_s8  ;;  %v8161_v51 = vrot.slane %v4764_v62, 1 }
 0x1f4   : > { %1193 = vrot.lane.b32.xlu1 %v8159_v35, %s4164_s29  ;;  %v8225_v35 = vrot.slane %v4682_v15, 2 }
 0x1f6   : > { %1175 = vrot.lane.b32.xlu0 %v8164_v34, %s4164_s29  ;;  %v8168_v34 = vrot.slane %v4677_v27, 5 }
 0x1f8   : > { %1241 = vrot.lane.b32.xlu1 %v8228_v19, %s4165_s16 }
 0x1fa   : > { %1191 = vrot.lane.b32.xlu0 %v8161_v51, %s4164_s29  ;;  %v8216_v51 = vrot.slane %v4764_v62, 2 }
 0x1fc   : > { %1257 = vrot.lane.b32.xlu1 %v8217_v28, %s4165_s16  ;;  %v8223_v28 = vrot.slane %v4795_v9, 3 }
 0x1fe   : > { %1239 = vrot.lane.b32.xlu0 %v8225_v35, %s4165_s16  ;;  %v8231_v35 = vrot.slane %v4795_v9, 5 }
 0x200   : > { %1305 = vrot.lane.b32.xlu1 %v8211_v59, %s4166_s8  ;;  %v8221_v59 = vrot.slane %v4712_v13, 2 }
 0x202   : > { %1255 = vrot.lane.b32.xlu0 %v8216_v51, %s4165_s16 }
 0x204   : > { %1321 = vrot.lane.b32.xlu1 %v8204_v18, %s4166_s8 }
 0x206   : > { %1303 = vrot.lane.b32.xlu0 %v8209_v12, %s4166_s8  ;;  %v8215_v12 = vrot.slane %v4795_v9, 2 }
 0x208   : > { %1401 = vrot.lane.b32.xlu1 %v8168_v34, %s4164_s29  ;;  %v8196_v34 = vrot.slane %v4677_v27, 6 }
 0x20a   : > { %1319 = vrot.lane.b32.xlu0 %v8201_v20, %s4166_s8  ;;  %v8207_v20 = vrot.slane %v4795_v9, 1 }
 0x20c   : > { %1417 = vrot.lane.b32.xlu1 %v8170_v38, %s4164_s29  ;;  %v8188_v38 = vrot.slane %v4751_v11, 6 }
 0x20e   : > { %1399 = vrot.lane.b32.xlu0 %v8171_v32, %s4164_s29  ;;  %v8193_v32 = vrot.slane %v4682_v15, 6  ;;  %v5039_v5 = vpop.permute.xlu1 %1173 }
 0x210   : > { %1465 = vrot.lane.b32.xlu1 %v8196_v34, %s4165_s16  ;;  %v5045_v37 = vpop.permute.xlu0 %1171 }
 0x212   : > { %1415 = vrot.lane.b32.xlu0 %v8173_v55, %s4164_s29  ;;  %v8184_v55 = vrot.slane %v4764_v62, 6 }
 0x214   : > { %1481 = vrot.lane.b32.xlu1 %v8188_v38, %s4165_s16 }
 0x216   : > { %1463 = vrot.lane.b32.xlu0 %v8193_v32, %s4165_s16  ;;  %v8199_v32 = vrot.slane %v4688_v54, 3 }
 0x218   : > { %1529 = vrot.lane.b32.xlu1 %v8179_v40, %s4166_s8  ;;  %v8186_v40 = vrot.slane %v4764_v62, 7 }
 0x21a   : > { %1479 = vrot.lane.b32.xlu0 %v8184_v55, %s4165_s16 }
 0x21c   : > { %1545 = vrot.lane.b32.xlu1 %v8181_v44, %s4166_s8  ;;  %v8187_v44 = vrot.slane %v4779_v2, 1 }
 0x21e   : > { %1527 = vrot.lane.b32.xlu0 %v8182_v57, %s4166_s8 }
 0x220   : > { %1609 = vrot.lane.b32.xlu1 %v8185_v4, %s4164_s29  ;;  %v8191_v4 = vrot.slane %v4688_v54, 2 }
 0x222   : > { %v5051_v8 = vpop.permute.xlu1 %1189  ;;  %1543 = vrot.lane.b32.xlu0 %v8186_v40, %s4166_s8 }
 0x224   : > { %1625 = vrot.lane.b32.xlu1 %v8187_v44, %s4164_s29  ;;  %v5060_v57 = vpop.permute.xlu0 %1187  ;;  %v8194_v44 = vrot.slane %v4792_v49, 1 }
 0x226   : > { %v5063_v55 = vpop.permute.xlu1 %1237  ;;  %1607 = vrot.lane.b32.xlu0 %v8190_v47, %s4164_s29 }
 0x228   : > { %1673 = vrot.lane.b32.xlu1 %v8191_v4, %s4165_s16  ;;  %v5072_v40 = vpop.permute.xlu0 %1235  ;;  %v8198_v4 = vrot.slane %v4694_v53, 2 }
 0x22a   : > { %v5075_v38 = vpop.permute.xlu1 %1253  ;;  %1623 = vrot.lane.b32.xlu0 %v8194_v44, %s4164_s29 }
 0x22c   : > { %1689 = vrot.lane.b32.xlu1 %v8195_v63, %s4165_s16  ;;  %v5084_v47 = vpop.permute.xlu0 %1251  ;;  %v8202_v63 = vrot.slane %v4792_v49, 2 }
 0x22e   : > { %v5087_v48 = vpop.permute.xlu1 %1301  ;;  %1671 = vrot.lane.b32.xlu0 %v8198_v4, %s4165_s16 }
 0x230   : > { %1737 = vrot.lane.b32.xlu1 %v8199_v32, %s4166_s8  ;;  %v5096_v44 = vpop.permute.xlu0 %1299  ;;  %v8206_v32 = vrot.slane %v4694_v53, 3 }
 0x232   : > { %v5099_v34 = vpop.permute.xlu1 %1317  ;;  %1687 = vrot.lane.b32.xlu0 %v8202_v63, %s4165_s16 }
 0x234   : > { %1181 = vrot.lane.b32.xlu1 %v8203_v42, %s4164_s29  ;;  %v5108_v4 = vpop.permute.xlu0 %1315  ;;  %v8210_v42 = vrot.slane %v4712_v13, 1 }
 0x236   : > { %v5111_v24 = vpop.permute.xlu1 %1397  ;;  %1735 = vrot.lane.b32.xlu0 %v8206_v32, %s4166_s8 }
 0x238   : > { %1197 = vrot.lane.b32.xlu1 %v8207_v20, %s4164_s29  ;;  %v5120_v63 = vpop.permute.xlu0 %1395  ;;  %v8214_v20 = vrot.slane %v4803_v33, 1 }
 0x23a   : > { %v5123_v18 = vpop.permute.xlu1 %1413  ;;  %1179 = vrot.lane.b32.xlu0 %v8210_v42, %s4164_s29 }
 0x23c   : > { %1245 = vrot.lane.b32.xlu1 %v8224_v0, %s4165_s16  ;;  %v5132_v32 = vpop.permute.xlu0 %1411 }
 0x23e   : > { %v5135_v41 = vpop.permute.xlu1 %1461  ;;  %1195 = vrot.lane.b32.xlu0 %v8214_v20, %s4164_s29 }
 0x240   : > { %1261 = vrot.lane.b32.xlu1 %v8215_v12, %s4165_s16  ;;  %v5144_v42 = vpop.permute.xlu0 %1459  ;;  %v8222_v12 = vrot.slane %v4803_v33, 2 }
 0x242   : > { %v5147_v21 = vpop.permute.xlu1 %1477  ;;  %1243 = vrot.lane.b32.xlu0 %v8221_v59, %s4165_s16  ;;  %v8227_v59 = vrot.slane %v4702_v56, 5 }
 0x244   : > { %1309 = vrot.lane.b32.xlu1 %v8219_v30, %s4166_s8  ;;  %v5156_v20 = vpop.permute.xlu0 %1475  ;;  %v8226_v30 = vrot.slane %v4712_v13, 3 }
 0x246   : > { %v5159_v51 = vpop.permute.xlu1 %1525  ;;  %1259 = vrot.lane.b32.xlu0 %v8222_v12, %s4165_s16 }
 0x248   : > { %1325 = vrot.lane.b32.xlu1 %v8223_v28, %s4166_s8  ;;  %v5168_v29 = vpop.permute.xlu0 %1523  ;;  %v8230_v28 = vrot.slane %v4803_v33, 3 }
 0x24a   : > { %v5171_v1 = vpop.permute.xlu1 %1541  ;;  %1307 = vrot.lane.b32.xlu0 %v8226_v30, %s4166_s8 }
 0x24c   : > { %1405 = vrot.lane.b32.xlu1 %v8227_v59, %s4164_s29  ;;  %v5180_v12 = vpop.permute.xlu0 %1539  ;;  %v8233_v59 = vrot.slane %v4712_v13, 5 }
 0x24e   : > { %v5183_v0 = vpop.permute.xlu1 %1605  ;;  %1323 = vrot.lane.b32.xlu0 %v8230_v28, %s4166_s8 }
 0x24f   : > { %8439 = vst [vmem:[#allocation28_spill] sm:$0xff] %v5183_v0 }
 0x250   : > { %1421 = vrot.lane.b32.xlu1 %v8231_v35, %s4164_s29  ;;  %v5192_v30 = vpop.permute.xlu0 %1603  ;;  %v8235_v35 = vrot.slane %v4803_v33, 5 }
 0x251   : > { %8440 = vst [vmem:[#allocation29_spill] sm:$0xff] %v5192_v30 }
 0x252   : > { %v5195_v19 = vpop.permute.xlu1 %1621  ;;  %1403 = vrot.lane.b32.xlu0 %v8233_v59, %s4164_s29 }
 0x253   : > { %8441 = vst [vmem:[#allocation30_spill] sm:$0xff] %v5195_v19  ;;  %v8236_v19 = vrot.slane %v4795_v9, 6 }
 0x254   : > { %1469 = vrot.lane.b32.xlu1 %v8234_v16, %s4165_s16  ;;  %v5204_v28 = vpop.permute.xlu0 %1619  ;;  %v8237_v16 = vrot.slane %v4712_v13, 6 }
 0x255   : > { %8442 = vst [vmem:[#allocation31_spill] sm:$0xff] %v5204_v28 }
 0x256   : > { %v5207_v26 = vpop.permute.xlu1 %1669  ;;  %1419 = vrot.lane.b32.xlu0 %v8235_v35, %s4164_s29 }
 0x257   : > { %8443 = vst [vmem:[#allocation32_spill] sm:$0xff] %v5207_v26  ;;  %v8238_v26 = vrot.slane %v4702_v56, 7 }
 0x258   : > { %1485 = vrot.lane.b32.xlu1 %v8236_v19, %s4165_s16  ;;  %v5216_v59 = vpop.permute.xlu0 %1667  ;;  %v8239_v19 = vrot.slane %v4803_v33, 6 }
 0x259   : > { %8444 = vst [vmem:[#allocation33_spill] sm:$0xff] %v5216_v59 }
 0x25a   : > { %v5219_v30 = vpop.permute.xlu1 %1685  ;;  %1467 = vrot.lane.b32.xlu0 %v8237_v16, %s4165_s16 }
 0x25b   : > { %8445 = vst [vmem:[#allocation34_spill] sm:$0xff] %v5219_v30  ;;  %v8240_v30 = vrot.slane %v4795_v9, 7 }
 0x25c   : > { %1533 = vrot.lane.b32.xlu1 %v8238_v26, %s4166_s8  ;;  %v5228_v35 = vpop.permute.xlu0 %1683  ;;  %v8241_v26 = vrot.slane %v4712_v13, 7 }
 0x25d   : > { %8446 = vst [vmem:[#allocation35_spill] sm:$0xff] %v5228_v35 }
 0x25e   : > { %v5231_v28 = vpop.permute.xlu1 %1733  ;;  %1483 = vrot.lane.b32.xlu0 %v8239_v19, %s4165_s16 }
 0x25f   : > { %8447 = vst [vmem:[#allocation36_spill] sm:$0xff] %v5231_v28  ;;  %v8242_v28 = vrot.slane %v4722_v39, 1 }
 0x260   : > { %1549 = vrot.lane.b32.xlu1 %v8240_v30, %s4166_s8  ;;  %v5240_v16 = vpop.permute.xlu0 %1731  ;;  %v8243_v30 = vrot.slane %v4803_v33, 7 }
 0x261   : > { %8448 = vst [vmem:[#allocation37_spill] sm:$0xff] %v5240_v16  ;;  %v8244_v16 = vrot.slane %v4818_v23, 1 }
 0x262   : > { %v5243_v59 = vpop.permute.xlu1 %1177  ;;  %1531 = vrot.lane.b32.xlu0 %v8241_v26, %s4166_s8 }
 0x263   : > { %8449 = vst [vmem:[#allocation38_spill] sm:$0xff] %v5243_v59  ;;  %v8573_v59 = vrot.slane %v4682_v15, 2 }
 0x264   : > { %1613 = vrot.lane.b32.xlu1 %v8242_v28, %s4164_s29  ;;  %v5252_v19 = vpop.permute.xlu0 %1747  ;;  %v8245_v28 = vrot.slane %v4732_v60, 1 }
 0x265   : > { %8450 = vst [vmem:[#allocation39_spill] sm:$0xff] %v5252_v19  ;;  %v8246_v19 = vrot.slane %v4722_v39, 2 }
 0x266   : > { %v5255_v35 = vpop.permute.xlu1 %1193  ;;  %1547 = vrot.lane.b32.xlu0 %v8243_v30, %s4166_s8 }
 0x267   : > { %8451 = vst [vmem:[#allocation40_spill] sm:$0xff] %v5255_v35 }
 0x268   : > { %1629 = vrot.lane.b32.xlu1 %v8244_v16, %s4164_s29  ;;  %v5264_v26 = vpop.permute.xlu0 %1175  ;;  %v8247_v16 = vrot.slane %v4822_v43, 1 }
 0x269   : > { %8452 = vst [vmem:[#allocation41_spill] sm:$0xff] %v5264_v26 }
 0x26a   : > { %v5267_v0 = vpop.permute.xlu1 %1241  ;;  %1611 = vrot.lane.b32.xlu0 %v8245_v28, %s4164_s29 }
 0x26b   : > { %8453 = vst [vmem:[#allocation42_spill] sm:$0xff] %v5267_v0  ;;  %v8248_v0 = vrot.slane %v4818_v23, 2 }
 0x26c   : > { %1677 = vrot.lane.b32.xlu1 %v8246_v19, %s4165_s16  ;;  %v5276_v30 = vpop.permute.xlu0 %1191  ;;  %v8249_v19 = vrot.slane %v4732_v60, 2 }
 0x26d   : > { %8454 = vst [vmem:[#allocation43_spill] sm:$0xff] %v5276_v30 }
 0x26e   : > { %v5279_v35 = vpop.permute.xlu1 %1257  ;;  %1627 = vrot.lane.b32.xlu0 %v8247_v16, %s4164_s29 }
 0x26f   : > { %8455 = vst [vmem:[#allocation44_spill] sm:$0xff] %v5279_v35  ;;  %v8250_v35 = vrot.slane %v4722_v39, 3 }
 0x270   : > { %1693 = vrot.lane.b32.xlu1 %v8248_v0, %s4165_s16  ;;  %v5288_v28 = vpop.permute.xlu0 %1239  ;;  %v8251_v0 = vrot.slane %v4822_v43, 2 }
 0x271   : > { %8456 = vst [vmem:[#allocation45_spill] sm:$0xff] %v5288_v28 }
 0x272   : > { %v5291_v26 = vpop.permute.xlu1 %1305  ;;  %1675 = vrot.lane.b32.xlu0 %v8249_v19, %s4165_s16 }
 0x273   : > { %8457 = vst [vmem:[#allocation46_spill] sm:$0xff] %v5291_v26  ;;  %v8252_v26 = vrot.slane %v4742_v46, 1 }
 0x274   : > { %1741 = vrot.lane.b32.xlu1 %v8250_v35, %s4166_s8  ;;  %v5300_v16 = vpop.permute.xlu0 %1255  ;;  %v8253_v35 = vrot.slane %v4732_v60, 3 }
 0x275   : > { %8458 = vst [vmem:[#allocation47_spill] sm:$0xff] %v5300_v16 }
 0x276   : > { %v5303_v30 = vpop.permute.xlu1 %1321  ;;  %1691 = vrot.lane.b32.xlu0 %v8251_v0, %s4165_s16 }
 0x277   : > { %8459 = vst [vmem:[#allocation48_spill] sm:$0xff] %v5303_v30  ;;  %v8254_v30 = vrot.slane %v4831_v6, 1 }
 0x278   : > { %1185 = vrot.lane.b32.xlu1 %v8252_v26, %s4164_s29  ;;  %v5312_v19 = vpop.permute.xlu0 %1303  ;;  %v8255_v26 = vrot.slane %v4756_v36, 1 }
 0x279   : > { %8460 = vst [vmem:[#allocation49_spill] sm:$0xff] %v5312_v19 }
 0x27a   : > { %v5315_v28 = vpop.permute.xlu1 %1401  ;;  %1739 = vrot.lane.b32.xlu0 %v8253_v35, %s4166_s8 }
 0x27b   : > { %8461 = vst [vmem:[#allocation50_spill] sm:$0xff] %v5315_v28  ;;  %v8256_v28 = vrot.slane %v4742_v46, 2 }
 0x27c   : > { %1201 = vrot.lane.b32.xlu1 %v8254_v30, %s4164_s29  ;;  %v5324_v0 = vpop.permute.xlu0 %1319  ;;  %v8257_v30 = vrot.slane %v4839_v17, 1 }
 0x27d   : > { %8462 = vst [vmem:[#allocation51_spill] sm:$0xff] %v5324_v0 }
 0x27e   : > { %v5327_v16 = vpop.permute.xlu1 %1417  ;;  %1183 = vrot.lane.b32.xlu0 %v8255_v26, %s4164_s29 }
 0x27f   : > { %8463 = vst [vmem:[#allocation52_spill] sm:$0xff] %v5327_v16  ;;  %v8258_v16 = vrot.slane %v4831_v6, 2 }
 0x280   : > { %1249 = vrot.lane.b32.xlu1 %v8256_v28, %s4165_s16  ;;  %v5336_v35 = vpop.permute.xlu0 %1399  ;;  %v8259_v28 = vrot.slane %v4756_v36, 2 }
 0x281   : > { %8464 = vst [vmem:[#allocation53_spill] sm:$0xff] %v5336_v35 }
 0x282   : > { %v5339_v19 = vpop.permute.xlu1 %1465  ;;  %1199 = vrot.lane.b32.xlu0 %v8257_v30, %s4164_s29 }
 0x283   : > { %8465 = vst [vmem:[#allocation54_spill] sm:$0xff] %v5339_v19  ;;  %v8260_v19 = vrot.slane %v4742_v46, 3 }
 0x284   : > { %1265 = vrot.lane.b32.xlu1 %v8258_v16, %s4165_s16  ;;  %v5348_v26 = vpop.permute.xlu0 %1415  ;;  %v8261_v16 = vrot.slane %v4839_v17, 2 }
 0x285   : > { %8466 = vst [vmem:[#allocation55_spill] sm:$0xff] %v5348_v26 }
 0x286   : > { %v5351_v0 = vpop.permute.xlu1 %1481  ;;  %1247 = vrot.lane.b32.xlu0 %v8259_v28, %s4165_s16 }
 0x287   : > { %8467 = vst [vmem:[#allocation56_spill] sm:$0xff] %v5351_v0  ;;  %v8262_v0 = vrot.slane %v4831_v6, 3 }
 0x288   : > { %1313 = vrot.lane.b32.xlu1 %v8260_v19, %s4166_s8  ;;  %v5360_v30 = vpop.permute.xlu0 %1463  ;;  %v8263_v19 = vrot.slane %v4756_v36, 3 }
 0x289   : > { %8468 = vst [vmem:[#allocation57_spill] sm:$0xff] %v5360_v30 }
 0x28a   : > { %v5363_v35 = vpop.permute.xlu1 %1529  ;;  %1263 = vrot.lane.b32.xlu0 %v8261_v16, %s4165_s16 }
 0x28b   : > { %8469 = vst [vmem:[#allocation58_spill] sm:$0xff] %v5363_v35  ;;  %v8264_v35 = vrot.slane %v4742_v46, 5 }
 0x28c   : > { %1329 = vrot.lane.b32.xlu1 %v8262_v0, %s4166_s8  ;;  %v5372_v28 = vpop.permute.xlu0 %1479  ;;  %v8265_v0 = vrot.slane %v4839_v17, 3 }
 0x28d   : > { %8470 = vst [vmem:[#allocation59_spill] sm:$0xff] %v5372_v28 }
 0x28e   : > { %v5375_v26 = vpop.permute.xlu1 %1545  ;;  %1311 = vrot.lane.b32.xlu0 %v8263_v19, %s4166_s8 }
 0x28f   : > { %8471 = vst [vmem:[#allocation60_spill] sm:$0xff] %v5375_v26  ;;  %v8266_v26 = vrot.slane %v4831_v6, 5 }
 0x290   : > { %1409 = vrot.lane.b32.xlu1 %v8264_v35, %s4164_s29  ;;  %v5384_v16 = vpop.permute.xlu0 %1527  ;;  %v8267_v35 = vrot.slane %v4756_v36, 5 }
 0x291   : > { %8472 = vst [vmem:[#allocation61_spill] sm:$0xff] %v5384_v16 }
 0x292   : > { %v5387_v30 = vpop.permute.xlu1 %1609  ;;  %1327 = vrot.lane.b32.xlu0 %v8265_v0, %s4166_s8 }
 0x293   : > { %8473 = vst [vmem:[#allocation62_spill] sm:$0xff] %v5387_v30  ;;  %v8268_v30 = vrot.slane %v4742_v46, 6 }
 0x294   : > { %1425 = vrot.lane.b32.xlu1 %v8266_v26, %s4164_s29  ;;  %v5396_v19 = vpop.permute.xlu0 %1543  ;;  %v8269_v26 = vrot.slane %v4839_v17, 5 }
 0x295   : > { %8474 = vst [vmem:[#allocation63_spill] sm:$0xff] %v5396_v19 }
 0x296   : > { %v5399_v28 = vpop.permute.xlu1 %1625  ;;  %1407 = vrot.lane.b32.xlu0 %v8267_v35, %s4164_s29 }
 0x297   : > { %8475 = vst [vmem:[#allocation64_spill] sm:$0xff] %v5399_v28  ;;  %v8270_v28 = vrot.slane %v4831_v6, 6 }
 0x298   : > { %1473 = vrot.lane.b32.xlu1 %v8268_v30, %s4165_s16  ;;  %v5408_v0 = vpop.permute.xlu0 %1607  ;;  %v8271_v30 = vrot.slane %v4756_v36, 6 }
 0x299   : > { %8476 = vst [vmem:[#allocation65_spill] sm:$0xff] %v5408_v0 }
 0x29a   : > { %v5411_v16 = vpop.permute.xlu1 %1673  ;;  %1423 = vrot.lane.b32.xlu0 %v8269_v26, %s4164_s29 }
 0x29b   : > { %8477 = vst [vmem:[#allocation66_spill] sm:$0xff] %v5411_v16  ;;  %v8272_v16 = vrot.slane %v4742_v46, 7 }
 0x29c   : > { %1489 = vrot.lane.b32.xlu1 %v8270_v28, %s4165_s16  ;;  %v5420_v35 = vpop.permute.xlu0 %1623  ;;  %v8273_v28 = vrot.slane %v4839_v17, 6 }
 0x29d   : > { %8478 = vst [vmem:[#allocation67_spill] sm:$0xff] %v5420_v35 }
 0x29e   : > { %v5423_v19 = vpop.permute.xlu1 %1689  ;;  %1471 = vrot.lane.b32.xlu0 %v8271_v30, %s4165_s16 }
 0x29f   : > { %8479 = vst [vmem:[#allocation68_spill] sm:$0xff] %v5423_v19  ;;  %v8274_v19 = vrot.slane %v4831_v6, 7 }
 0x2a0   : > { %1537 = vrot.lane.b32.xlu1 %v8272_v16, %s4166_s8  ;;  %v5432_v26 = vpop.permute.xlu0 %1671  ;;  %v8275_v16 = vrot.slane %v4756_v36, 7 }
 0x2a1   : > { %8480 = vst [vmem:[#allocation69_spill] sm:$0xff] %v5432_v26 }
 0x2a2   : > { %v5435_v0 = vpop.permute.xlu1 %1737  ;;  %1487 = vrot.lane.b32.xlu0 %v8273_v28, %s4165_s16 }
 0x2a3   : > { %8481 = vst [vmem:[#allocation70_spill] sm:$0xff] %v5435_v0  ;;  %v8276_v0 = vrot.slane %v4774_v14, 1 }
 0x2a4   : > { %1553 = vrot.lane.b32.xlu1 %v8274_v19, %s4166_s8  ;;  %v5444_v30 = vpop.permute.xlu0 %1687  ;;  %v8277_v19 = vrot.slane %v4839_v17, 7 }
 0x2a5   : > { %8482 = vst [vmem:[#allocation71_spill] sm:$0xff] %v5444_v30  ;;  %v8278_v30 = vrot.slane %v4847_v31, 1 }
 0x2a6   : > { %v5447_v35 = vpop.permute.xlu1 %1181  ;;  %1535 = vrot.lane.b32.xlu0 %v8275_v16, %s4166_s8 }
 0x2a7   : > { %8483 = vst [vmem:[#allocation72_spill] sm:$0xff] %v5447_v35 }
 0x2a8   : > { %1617 = vrot.lane.b32.xlu1 %v8276_v0, %s4164_s29  ;;  %v5456_v28 = vpop.permute.xlu0 %1735  ;;  %v8279_v0 = vrot.slane %v4787_v50, 1 }
 0x2a9   : > { %8484 = vst [vmem:[#allocation73_spill] sm:$0xff] %v5456_v28  ;;  %v8280_v28 = vrot.slane %v4774_v14, 2 }
 0x2aa   : > { %v5459_v26 = vpop.permute.xlu1 %1197  ;;  %1551 = vrot.lane.b32.xlu0 %v8277_v19, %s4166_s8 }
 0x2ab   : > { %8485 = vst [vmem:[#allocation74_spill] sm:$0xff] %v5459_v26 }
 0x2ac   : > { %1633 = vrot.lane.b32.xlu1 %v8278_v30, %s4164_s29  ;;  %v5468_v16 = vpop.permute.xlu0 %1179  ;;  %v8281_v30 = vrot.slane %v4855_v22, 1 }
 0x2ad   : > { %8486 = vst [vmem:[#allocation75_spill] sm:$0xff] %v5468_v16 }
 0x2ae   : > { %v5471_v35 = vpop.permute.xlu1 %1245  ;;  %1615 = vrot.lane.b32.xlu0 %v8279_v0, %s4164_s29 }
 0x2af   : > { %8487 = vst [vmem:[#allocation76_spill] sm:$0xff] %v5471_v35  ;;  %v8282_v35 = vrot.slane %v4847_v31, 2 }
 0x2b0   : > { %1681 = vrot.lane.b32.xlu1 %v8280_v28, %s4165_s16  ;;  %v5480_v19 = vpop.permute.xlu0 %1195  ;;  %v8283_v28 = vrot.slane %v4787_v50, 2 }
 0x2b1   : > { %8488 = vst [vmem:[#allocation77_spill] sm:$0xff] %v5480_v19 }
 0x2b2   : > { %v5483_v26 = vpop.permute.xlu1 %1261  ;;  %1631 = vrot.lane.b32.xlu0 %v8281_v30, %s4164_s29 }
 0x2b3   : > { %8489 = vst [vmem:[#allocation78_spill] sm:$0xff] %v5483_v26  ;;  %v8284_v26 = vrot.slane %v4774_v14, 3 }
 0x2b4   : > { %1697 = vrot.lane.b32.xlu1 %v8282_v35, %s4165_s16  ;;  %v5492_v0 = vpop.permute.xlu0 %1243  ;;  %v8285_v35 = vrot.slane %v4855_v22, 2 }
 0x2b5   : > { %8490 = vst [vmem:[#allocation79_spill] sm:$0xff] %v5492_v0 }
 0x2b6   : > { %v5495_v16 = vpop.permute.xlu1 %1309  ;;  %1679 = vrot.lane.b32.xlu0 %v8283_v28, %s4165_s16 }
 0x2b7   : > { %8491 = vst [vmem:[#allocation80_spill] sm:$0xff] %v5495_v16  ;;  %v8286_v16 = vrot.slane %v4727_v61, 3 }
 0x2b8   : > { %1745 = vrot.lane.b32.xlu1 %v8284_v26, %s4166_s8  ;;  %v5504_v30 = vpop.permute.xlu0 %1259  ;;  %v8287_v26 = vrot.slane %v4787_v50, 3 }
 0x2b9   : > { %8492 = vst [vmem:[#allocation81_spill] sm:$0xff] %v5504_v30 }
 0x2ba   : > { %v5507_v19 = vpop.permute.xlu1 %1325  ;;  %1695 = vrot.lane.b32.xlu0 %v8285_v35, %s4165_s16 }
 0x2bb   : > { %8493 = vst [vmem:[#allocation82_spill] sm:$0xff] %v5507_v19  ;;  %v8288_v19 = vrot.slane %v4779_v2, 3 }
 0x2bc   : > { %1749 = vrot.lane.b32.xlu1 %v8286_v16, %s4166_s8  ;;  %v5516_v28 = vpop.permute.xlu0 %1307  ;;  %v8289_v16 = vrot.slane %v4792_v49, 3 }
 0x2bd   : > { %8494 = vst [vmem:[#allocation83_spill] sm:$0xff] %v5516_v28 }
 0x2be   : > { %v5519_v0 = vpop.permute.xlu1 %1405  ;;  %1743 = vrot.lane.b32.xlu0 %v8287_v26, %s4166_s8 }
 0x2bf   : > { %8495 = vst [vmem:[#allocation84_spill] sm:$0xff] %v5519_v0  ;;  %v8290_v0 = vrot.slane %v4818_v23, 3 }
 0x2c0   : > { %1753 = vrot.lane.b32.xlu1 %v8288_v19, %s4166_s8  ;;  %v5528_v35 = vpop.permute.xlu0 %1323  ;;  %v8291_v19 = vrot.slane %v4822_v43, 3 }
 0x2c1   : > { %8496 = vst [vmem:[#allocation85_spill] sm:$0xff] %v5528_v35 }
 0x2c2   : > { %v5531_v30 = vpop.permute.xlu1 %1421  ;;  %1751 = vrot.lane.b32.xlu0 %v8289_v16, %s4166_s8 }
 0x2c3   : > { %8497 = vst [vmem:[#allocation86_spill] sm:$0xff] %v5531_v30  ;;  %v8292_v30 = vrot.slane %v4847_v31, 3 }
 0x2c4   : > { %1757 = vrot.lane.b32.xlu1 %v8290_v0, %s4166_s8  ;;  %v5540_v26 = vpop.permute.xlu0 %1403  ;;  %v8293_v0 = vrot.slane %v4855_v22, 3 }
 0x2c5   : > { %8498 = vst [vmem:[#allocation87_spill] sm:$0xff] %v5540_v26 }
 0x2c6   : > { %v5543_v28 = vpop.permute.xlu1 %1469  ;;  %1755 = vrot.lane.b32.xlu0 %v8291_v19, %s4166_s8 }
 0x2c7   : > { %8499 = vst [vmem:[#allocation88_spill] sm:$0xff] %v5543_v28  ;;  %v8294_v28 = vrot.slane %v4893_v10, 5 }
 0x2c8   : > { %1761 = vrot.lane.b32.xlu1 %v8292_v30, %s4166_s8  ;;  %v5552_v16 = vpop.permute.xlu0 %1419  ;;  %v8295_v30 = vrot.slane %v4669_v58, 5 }
 0x2c9   : > { %8500 = vst [vmem:[#allocation89_spill] sm:$0xff] %v5552_v16 }
 0x2ca   : > { %v5555_v35 = vpop.permute.xlu1 %1485  ;;  %1759 = vrot.lane.b32.xlu0 %v8293_v0, %s4166_s8 }
 0x2cb   : > { %8501 = vst [vmem:[#allocation90_spill] sm:$0xff] %v5555_v35  ;;  %v8296_v35 = vrot.slane %v4688_v54, 5 }
 0x2cc   : > { %1829 = vrot.lane.b32.xlu1 %v8294_v28, %s4164_s29  ;;  %v5564_v19 = vpop.permute.xlu0 %1467  ;;  %v8297_v28 = vrot.slane %v4694_v53, 5 }
 0x2cd   : > { %8502 = vst [vmem:[#allocation91_spill] sm:$0xff] %v5564_v19 }
 0x2ce   : > { %v5567_v26 = vpop.permute.xlu1 %1533  ;;  %1827 = vrot.lane.b32.xlu0 %v8295_v30, %s4164_s29 }
 0x2cf   : > { %8503 = vst [vmem:[#allocation92_spill] sm:$0xff] %v5567_v26  ;;  %v8298_v26 = vrot.slane %v4722_v39, 5 }
 0x2d0   : > { %1833 = vrot.lane.b32.xlu1 %v8296_v35, %s4164_s29  ;;  %v5576_v0 = vpop.permute.xlu0 %1483  ;;  %v8299_v35 = vrot.slane %v4732_v60, 5 }
 0x2d1   : > { %8504 = vst [vmem:[#allocation93_spill] sm:$0xff] %v5576_v0 }
 0x2d2   : > { %v5579_v16 = vpop.permute.xlu1 %1549  ;;  %1831 = vrot.lane.b32.xlu0 %v8297_v28, %s4164_s29 }
 0x2d3   : > { %8505 = vst [vmem:[#allocation94_spill] sm:$0xff] %v5579_v16  ;;  %v8300_v16 = vrot.slane %v4774_v14, 5 }
 0x2d4   : > { %1837 = vrot.lane.b32.xlu1 %v8298_v26, %s4164_s29  ;;  %v5588_v30 = vpop.permute.xlu0 %1531  ;;  %v8301_v26 = vrot.slane %v4787_v50, 5 }
 0x2d5   : > { %8506 = vst [vmem:[#allocation95_spill] sm:$0xff] %v5588_v30 }
 0x2d6   : > { %v5591_v19 = vpop.permute.xlu1 %1613  ;;  %1835 = vrot.lane.b32.xlu0 %v8299_v35, %s4164_s29 }
 0x2d7   : > { %8507 = vst [vmem:[#allocation96_spill] sm:$0xff] %v5591_v19  ;;  %v8302_v19 = vrot.slane %v4727_v61, 5 }
 0x2d8   : > { %1841 = vrot.lane.b32.xlu1 %v8300_v16, %s4164_s29  ;;  %v5600_v28 = vpop.permute.xlu0 %1547  ;;  %v8303_v16 = vrot.slane %v4737_v25, 5 }
 0x2d9   : > { %8508 = vst [vmem:[#allocation97_spill] sm:$0xff] %v5600_v28 }
 0x2da   : > { %v5603_v0 = vpop.permute.xlu1 %1629  ;;  %1839 = vrot.lane.b32.xlu0 %v8301_v26, %s4164_s29 }
 0x2db   : > { %8509 = vst [vmem:[#allocation98_spill] sm:$0xff] %v5603_v0  ;;  %v8304_v0 = vrot.slane %v4779_v2, 5 }
 0x2dc   : > { %1845 = vrot.lane.b32.xlu1 %v8302_v19, %s4164_s29  ;;  %v5612_v35 = vpop.permute.xlu0 %1611  ;;  %v8305_v19 = vrot.slane %v4792_v49, 5 }
 0x2dd   : > { %8510 = vst [vmem:[#allocation99_spill] sm:$0xff] %v5612_v35 }
 0x2de   : > { %v5615_v30 = vpop.permute.xlu1 %1677  ;;  %1843 = vrot.lane.b32.xlu0 %v8303_v16, %s4164_s29 }
 0x2df   : > { %8511 = vst [vmem:[#allocation100_spill] sm:$0xff] %v5615_v30  ;;  %v8306_v30 = vrot.slane %v4818_v23, 5 }
 0x2e0   : > { %1849 = vrot.lane.b32.xlu1 %v8304_v0, %s4164_s29  ;;  %v5624_v26 = vpop.permute.xlu0 %1627  ;;  %v8307_v0 = vrot.slane %v4822_v43, 5 }
 0x2e1   : > { %8512 = vst [vmem:[#allocation101_spill] sm:$0xff] %v5624_v26 }
 0x2e2   : > { %v5627_v28 = vpop.permute.xlu1 %1693  ;;  %1847 = vrot.lane.b32.xlu0 %v8305_v19, %s4164_s29 }
 0x2e3   : > { %8513 = vst [vmem:[#allocation102_spill] sm:$0xff] %v5627_v28  ;;  %v8308_v28 = vrot.slane %v4847_v31, 5 }
 0x2e4   : > { %1853 = vrot.lane.b32.xlu1 %v8306_v30, %s4164_s29  ;;  %v5636_v16 = vpop.permute.xlu0 %1675  ;;  %v8309_v30 = vrot.slane %v4855_v22, 5 }
 0x2e5   : > { %8514 = vst [vmem:[#allocation103_spill] sm:$0xff] %v5636_v16 }
 0x2e6   : > { %v5639_v35 = vpop.permute.xlu1 %1741  ;;  %1851 = vrot.lane.b32.xlu0 %v8307_v0, %s4164_s29 }
 0x2e7   : > { %8515 = vst [vmem:[#allocation104_spill] sm:$0xff] %v5639_v35  ;;  %v8310_v35 = vrot.slane %v4893_v10, 6 }
 0x2e8   : > { %1857 = vrot.lane.b32.xlu1 %v8308_v28, %s4164_s29  ;;  %v5648_v19 = vpop.permute.xlu0 %1691  ;;  %v8311_v28 = vrot.slane %v4669_v58, 6 }
 0x2e9   : > { %8516 = vst [vmem:[#allocation105_spill] sm:$0xff] %v5648_v19  ;;  %v8312_v19 = vrot.slane %v4688_v54, 6 }
 0x2ea   : > { %v5651_v26 = vpop.permute.xlu1 %1185  ;;  %1855 = vrot.lane.b32.xlu0 %v8309_v30, %s4164_s29 }
 0x2eb   : > { %8517 = vst [vmem:[#allocation106_spill] sm:$0xff] %v5651_v26 }
 0x2ec   : > { %1893 = vrot.lane.b32.xlu1 %v8310_v35, %s4165_s16  ;;  %v5660_v0 = vpop.permute.xlu0 %1739  ;;  %v8313_v35 = vrot.slane %v4694_v53, 6 }
 0x2ed   : > { %8518 = vst [vmem:[#allocation107_spill] sm:$0xff] %v5660_v0  ;;  %v8314_v0 = vrot.slane %v4722_v39, 6 }
 0x2ee   : > { %v5663_v16 = vpop.permute.xlu1 %1201  ;;  %1891 = vrot.lane.b32.xlu0 %v8311_v28, %s4165_s16 }
 0x2ef   : > { %8519 = vst [vmem:[#allocation108_spill] sm:$0xff] %v5663_v16 }
 0x2f0   : > { %1897 = vrot.lane.b32.xlu1 %v8312_v19, %s4165_s16  ;;  %v5672_v30 = vpop.permute.xlu0 %1183  ;;  %v8315_v19 = vrot.slane %v4732_v60, 6 }
 0x2f1   : > { %8520 = vst [vmem:[#allocation109_spill] sm:$0xff] %v5672_v30 }
 0x2f2   : > { %v5675_v26 = vpop.permute.xlu1 %1249  ;;  %1895 = vrot.lane.b32.xlu0 %v8313_v35, %s4165_s16 }
 0x2f3   : > { %8521 = vst [vmem:[#allocation110_spill] sm:$0xff] %v5675_v26  ;;  %v8316_v26 = vrot.slane %v4774_v14, 6 }
 0x2f4   : > { %1901 = vrot.lane.b32.xlu1 %v8314_v0, %s4165_s16  ;;  %v5684_v28 = vpop.permute.xlu0 %1199  ;;  %v8317_v0 = vrot.slane %v4787_v50, 6 }
 0x2f5   : > { %8522 = vst [vmem:[#allocation111_spill] sm:$0xff] %v5684_v28 }
 0x2f6   : > { %v5687_v16 = vpop.permute.xlu1 %1265  ;;  %1899 = vrot.lane.b32.xlu0 %v8315_v19, %s4165_s16 }
 0x2f7   : > { %8523 = vst [vmem:[#allocation112_spill] sm:$0xff] %v5687_v16  ;;  %v8318_v16 = vrot.slane %v4727_v61, 6 }
 0x2f8   : > { %1905 = vrot.lane.b32.xlu1 %v8316_v26, %s4165_s16  ;;  %v5696_v35 = vpop.permute.xlu0 %1247  ;;  %v8319_v26 = vrot.slane %v4737_v25, 6 }
 0x2f9   : > { %8524 = vst [vmem:[#allocation113_spill] sm:$0xff] %v5696_v35 }
 0x2fa   : > { %v5699_v30 = vpop.permute.xlu1 %1313  ;;  %1903 = vrot.lane.b32.xlu0 %v8317_v0, %s4165_s16 }
 0x2fb   : > { %8525 = vst [vmem:[#allocation114_spill] sm:$0xff] %v5699_v30  ;;  %v8320_v30 = vrot.slane %v4779_v2, 6 }
 0x2fc   : > { %1909 = vrot.lane.b32.xlu1 %v8318_v16, %s4165_s16  ;;  %v5708_v19 = vpop.permute.xlu0 %1263  ;;  %v8321_v16 = vrot.slane %v4792_v49, 6 }
 0x2fd   : > { %8526 = vst [vmem:[#allocation115_spill] sm:$0xff] %v5708_v19 }
 0x2fe   : > { %v5711_v28 = vpop.permute.xlu1 %1329  ;;  %1907 = vrot.lane.b32.xlu0 %v8319_v26, %s4165_s16 }
 0x2ff   : > { %8527 = vst [vmem:[#allocation116_spill] sm:$0xff] %v5711_v28  ;;  %v8322_v28 = vrot.slane %v4818_v23, 6 }
 0x300   : > { %1913 = vrot.lane.b32.xlu1 %v8320_v30, %s4165_s16  ;;  %v5720_v0 = vpop.permute.xlu0 %1311  ;;  %v8323_v30 = vrot.slane %v4822_v43, 6 }
 0x301   : > { %8528 = vst [vmem:[#allocation117_spill] sm:$0xff] %v5720_v0 }
 0x302   : > { %v5723_v35 = vpop.permute.xlu1 %1409  ;;  %1911 = vrot.lane.b32.xlu0 %v8321_v16, %s4165_s16 }
 0x303   : > { %8529 = vst [vmem:[#allocation118_spill] sm:$0xff] %v5723_v35  ;;  %v8324_v35 = vrot.slane %v4847_v31, 6 }
 0x304   : > { %1917 = vrot.lane.b32.xlu1 %v8322_v28, %s4165_s16  ;;  %v5732_v26 = vpop.permute.xlu0 %1327  ;;  %v8325_v28 = vrot.slane %v4855_v22, 6 }
 0x305   : > { %8530 = vst [vmem:[#allocation119_spill] sm:$0xff] %v5732_v26 }
 0x306   : > { %v5735_v19 = vpop.permute.xlu1 %1425  ;;  %1915 = vrot.lane.b32.xlu0 %v8323_v30, %s4165_s16 }
 0x307   : > { %8531 = vst [vmem:[#allocation120_spill] sm:$0xff] %v5735_v19  ;;  %v8326_v19 = vrot.slane %v4893_v10, 7 }
 0x308   : > { %1921 = vrot.lane.b32.xlu1 %v8324_v35, %s4165_s16  ;;  %v5744_v16 = vpop.permute.xlu0 %1407  ;;  %v8327_v35 = vrot.slane %v4669_v58, 7 }
 0x309   : > { %8532 = vst [vmem:[#allocation121_spill] sm:$0xff] %v5744_v16 }
 0x30a   : > { %v5747_v0 = vpop.permute.xlu1 %1473  ;;  %1919 = vrot.lane.b32.xlu0 %v8325_v28, %s4165_s16 }
 0x30b   : > { %8533 = vst [vmem:[#allocation122_spill] sm:$0xff] %v5747_v0  ;;  %v8328_v0 = vrot.slane %v4688_v54, 7 }
 0x30c   : > { %1957 = vrot.lane.b32.xlu1 %v8326_v19, %s4166_s8  ;;  %v5756_v30 = vpop.permute.xlu0 %1423  ;;  %v8329_v19 = vrot.slane %v4694_v53, 7 }
 0x30d   : > { %8534 = vst [vmem:[#allocation123_spill] sm:$0xff] %v5756_v30 }
 0x30e   : > { %v5759_v26 = vpop.permute.xlu1 %1489  ;;  %1955 = vrot.lane.b32.xlu0 %v8327_v35, %s4166_s8 }
 0x30f   : > { %8535 = vst [vmem:[#allocation124_spill] sm:$0xff] %v5759_v26  ;;  %v8330_v26 = vrot.slane %v4722_v39, 7 }
 0x310   : > { %1961 = vrot.lane.b32.xlu1 %v8328_v0, %s4166_s8  ;;  %v5768_v28 = vpop.permute.xlu0 %1471  ;;  %v8331_v0 = vrot.slane %v4732_v60, 7 }
 0x311   : > { %8536 = vst [vmem:[#allocation125_spill] sm:$0xff] %v5768_v28 }
 0x312   : > { %v5771_v16 = vpop.permute.xlu1 %1537  ;;  %1959 = vrot.lane.b32.xlu0 %v8329_v19, %s4166_s8 }
 0x313   : > { %8537 = vst [vmem:[#allocation126_spill] sm:$0xff] %v5771_v16  ;;  %v8332_v16 = vrot.slane %v4774_v14, 7 }
 0x314   : > { %1965 = vrot.lane.b32.xlu1 %v8330_v26, %s4166_s8  ;;  %v5780_v35 = vpop.permute.xlu0 %1487  ;;  %v8333_v26 = vrot.slane %v4787_v50, 7 }
 0x315   : > { %8538 = vst [vmem:[#allocation127_spill] sm:$0xff] %v5780_v35 }
 0x316   : > { %v5783_v30 = vpop.permute.xlu1 %1553  ;;  %1963 = vrot.lane.b32.xlu0 %v8331_v0, %s4166_s8 }
 0x317   : > { %8539 = vst [vmem:[#allocation128_spill] sm:$0xff] %v5783_v30  ;;  %v8334_v30 = vrot.slane %v4727_v61, 7 }
 0x318   : > { %1969 = vrot.lane.b32.xlu1 %v8332_v16, %s4166_s8  ;;  %v5792_v19 = vpop.permute.xlu0 %1535  ;;  %v8335_v16 = vrot.slane %v4737_v25, 7 }
 0x319   : > { %8540 = vst [vmem:[#allocation129_spill] sm:$0xff] %v5792_v19 }
 0x31a   : > { %v5795_v28 = vpop.permute.xlu1 %1617  ;;  %1967 = vrot.lane.b32.xlu0 %v8333_v26, %s4166_s8 }
 0x31b   : > { %8541 = vst [vmem:[#allocation130_spill] sm:$0xff] %v5795_v28  ;;  %v8336_v28 = vrot.slane %v4779_v2, 7 }
 0x31c   : > { %1973 = vrot.lane.b32.xlu1 %v8334_v30, %s4166_s8  ;;  %v5804_v0 = vpop.permute.xlu0 %1551  ;;  %v8337_v30 = vrot.slane %v4792_v49, 7 }
 0x31d   : > { %8542 = vst [vmem:[#allocation131_spill] sm:$0xff] %v5804_v0 }
 0x31e   : > { %v5807_v35 = vpop.permute.xlu1 %1633  ;;  %1971 = vrot.lane.b32.xlu0 %v8335_v16, %s4166_s8 }
 0x31f   : > { %8543 = vst [vmem:[#allocation132_spill] sm:$0xff] %v5807_v35  ;;  %v8338_v35 = vrot.slane %v4818_v23, 7 }
 0x320   : > { %1977 = vrot.lane.b32.xlu1 %v8336_v28, %s4166_s8  ;;  %v5816_v26 = vpop.permute.xlu0 %1615  ;;  %v8339_v28 = vrot.slane %v4822_v43, 7 }
 0x321   : > { %8544 = vst [vmem:[#allocation133_spill] sm:$0xff] %v5816_v26 }
 0x322   : > { %v5819_v19 = vpop.permute.xlu1 %1681  ;;  %1975 = vrot.lane.b32.xlu0 %v8337_v30, %s4166_s8 }
 0x323   : > { %8545 = vst [vmem:[#allocation134_spill] sm:$0xff] %v5819_v19  ;;  %v8340_v19 = vrot.slane %v4847_v31, 7 }
 0x324   : > { %1981 = vrot.lane.b32.xlu1 %v8338_v35, %s4166_s8  ;;  %v5828_v16 = vpop.permute.xlu0 %1631  ;;  %v8341_v35 = vrot.slane %v4855_v22, 7 }
 0x325   : > { %8546 = vst [vmem:[#allocation135_spill] sm:$0xff] %v5828_v16 }
 0x326   : > { %v5831_v0 = vpop.permute.xlu1 %1697  ;;  %1979 = vrot.lane.b32.xlu0 %v8339_v28, %s4166_s8 }
 0x327   : > { %8547 = vst [vmem:[#allocation136_spill] sm:$0xff] %v5831_v0 }
 0x328   : > { %1985 = vrot.lane.b32.xlu1 %v8340_v19, %s4166_s8  ;;  %v5840_v30 = vpop.permute.xlu0 %1679 }
 0x329   : > { %8548 = vst [vmem:[#allocation137_spill] sm:$0xff] %v5840_v30  ;;  %v8569_v30 = vrot.slane %v4658_v45, 2 }
 0x32a   : > { %v5843_v26 = vpop.permute.xlu1 %1745  ;;  %1983 = vrot.lane.b32.xlu0 %v8341_v35, %s4166_s8 }
 0x32b   : > { %8549 = vst [vmem:[#allocation138_spill] sm:$0xff] %v5843_v26 }
 0x32c   : > { %2197 = vrot.lane.b32.xlu1 %v4653_v7, %s4166_s8  ;;  %v5850_v28 = vpop.permute.xlu0 %1695 }
 0x32d   : > { %8550 = vst [vmem:[#allocation139_spill] sm:$0xff] %v5850_v28 }
 0x32e   : > { %v5852_v0 = vpop.permute.xlu1 %1749  ;;  %2195 = vrot.lane.b32.xlu0 %v4658_v45, %s4166_s8 }
 0x32f   : > { %8551 = vst [vmem:[#allocation140_spill] sm:$0xff] %v5852_v0 }
 0x330   : > { %2201 = vrot.lane.b32.xlu1 %v4677_v27, %s4166_s8  ;;  %v5858_v19 = vpop.permute.xlu0 %1743 }
 0x331   : > { %8552 = vst [vmem:[#allocation141_spill] sm:$0xff] %v5858_v19 }
 0x332   : > { %v5860_v26 = vpop.permute.xlu1 %1753  ;;  %2199 = vrot.lane.b32.xlu0 %v4682_v15, %s4166_s8 }
 0x333   : > { %8553 = vst [vmem:[#allocation142_spill] sm:$0xff] %v5860_v26 }
 0x334   : > { %2205 = vrot.lane.b32.xlu1 %v4702_v56, %s4166_s8  ;;  %v5866_v35 = vpop.permute.xlu0 %1751 }
 0x335   : > { %8554 = vst [vmem:[#allocation143_spill] sm:$0xff] %v5866_v35 }
 0x336   : > { %v5868_v28 = vpop.permute.xlu1 %1757  ;;  %2203 = vrot.lane.b32.xlu0 %v4712_v13, %s4166_s8 }
 0x337   : > { %8555 = vst [vmem:[#allocation144_spill] sm:$0xff] %v5868_v28 }
 0x338   : > { %2209 = vrot.lane.b32.xlu1 %v4742_v46, %s4166_s8  ;;  %v5874_v0 = vpop.permute.xlu0 %1755 }
 0x339   : > { %8556 = vst [vmem:[#allocation145_spill] sm:$0xff] %v5874_v0 }
 0x33a   : > { %v5876_v19 = vpop.permute.xlu1 %1761  ;;  %2207 = vrot.lane.b32.xlu0 %v4756_v36, %s4166_s8 }
 0x33b   : > { %8557 = vst [vmem:[#allocation146_spill] sm:$0xff] %v5876_v19 }
 0x33c   : > { %2213 = vrot.lane.b32.xlu1 %v4707_v52, %s4166_s8  ;;  %v5882_v26 = vpop.permute.xlu0 %1759 }
 0x33d   : > { %8558 = vst [vmem:[#allocation147_spill] sm:$0xff] %v5882_v26 }
 0x33e   : > { %v5884_v35 = vpop.permute.xlu1 %1829  ;;  %2211 = vrot.lane.b32.xlu0 %v4717_v3, %s4166_s8 }
 0x33f   : > { %8559 = vst [vmem:[#allocation148_spill] sm:$0xff] %v5884_v35 }
 0x340   : > { %2217 = vrot.lane.b32.xlu1 %v4751_v11, %s4166_s8  ;;  %v5890_v28 = vpop.permute.xlu0 %1827 }
 0x341   : > { %8560 = vst [vmem:[#allocation149_spill] sm:$0xff] %v5890_v28 }
 0x342   : > { %v5892_v0 = vpop.permute.xlu1 %1833  ;;  %2215 = vrot.lane.b32.xlu0 %v4764_v62, %s4166_s8 }
 0x343   : > { %8561 = vst [vmem:[#allocation150_spill] sm:$0xff] %v5892_v0  ;;  %v8566_v0 = vrot.slane %v4653_v7, 2 }
 0x344   : > { %2221 = vrot.lane.b32.xlu1 %v4795_v9, %s4166_s8  ;;  %v5898_v19 = vpop.permute.xlu0 %1831 }
 0x345   : > { %8562 = vst [vmem:[#allocation151_spill] sm:$0xff] %v5898_v19 }
 0x346   : > { %v5900_v26 = vpop.permute.xlu1 %1837  ;;  %2219 = vrot.lane.b32.xlu0 %v4803_v33, %s4166_s8 }
 0x347   : > { %8563 = vst [vmem:[#allocation152_spill] sm:$0xff] %v5900_v26 }
 0x348   : > { %2225 = vrot.lane.b32.xlu1 %v4831_v6, %s4166_s8  ;;  %v5906_v35 = vpop.permute.xlu0 %1835 }
 0x349   : > { %8564 = vst [vmem:[#allocation153_spill] sm:$0xff] %v5906_v35  ;;  %v8570_v35 = vrot.slane %v4677_v27, 2 }
 0x34a   : > { %v5908_v28 = vpop.permute.xlu1 %1841  ;;  %2223 = vrot.lane.b32.xlu0 %v4839_v17, %s4166_s8 }
 0x34b   : > { %8565 = vst [vmem:[#allocation154_spill] sm:$0xff] %v5908_v28 }
 0x34c   : > { %2261 = vrot.lane.b32.xlu1 %v8566_v0, %s4164_s29  ;;  %v5915_v19 = vpop.permute.xlu0 %1839  ;;  %v8574_v0 = vrot.slane %v4702_v56, 2 }
 0x34d   : > { %8567 = vst [vmem:[#allocation155_spill] sm:$0xff] %v5915_v19 }
 0x34e   : > { %v5917_v26 = vpop.permute.xlu1 %1845  ;;  %2259 = vrot.lane.b32.xlu0 %v8569_v30, %s4164_s29  ;;  %v8577_v30 = vrot.slane %v4712_v13, 2 }
 0x34f   : > { %8568 = vst [vmem:[#allocation156_spill] sm:$0xff] %v5917_v26 }
 0x350   : > { %2265 = vrot.lane.b32.xlu1 %v8570_v35, %s4164_s29  ;;  %v5925_v28 = vpop.permute.xlu0 %1843  ;;  %v8578_v35 = vrot.slane %v4742_v46, 2 }
 0x351   : > { %8571 = vst [vmem:[#allocation157_spill] sm:$0xff] %v5925_v28 }
 0x352   : > { %v5927_v16 = vpop.permute.xlu1 %1849  ;;  %2263 = vrot.lane.b32.xlu0 %v8573_v59, %s4164_s29  ;;  %v8581_v59 = vrot.slane %v4756_v36, 2 }
 0x353   : > { %8572 = vst [vmem:[#allocation158_spill] sm:$0xff] %v5927_v16 }
 0x354   : > { %2269 = vrot.lane.b32.xlu1 %v8574_v0, %s4164_s29  ;;  %v5935_v26 = vpop.permute.xlu0 %1847  ;;  %v8582_v0 = vrot.slane %v4707_v52, 2 }
 0x355   : > { %8575 = vst [vmem:[#allocation159_spill] sm:$0xff] %v5935_v26 }
 0x356   : > { %v5937_v19 = vpop.permute.xlu1 %1853  ;;  %2267 = vrot.lane.b32.xlu0 %v8577_v30, %s4164_s29  ;;  %v8585_v30 = vrot.slane %v4717_v3, 2 }
 0x357   : > { %8576 = vst [vmem:[#allocation160_spill] sm:$0xff] %v5937_v19 }
 0x358   : > { %2273 = vrot.lane.b32.xlu1 %v8578_v35, %s4164_s29  ;;  %v5945_v16 = vpop.permute.xlu0 %1851  ;;  %v8586_v35 = vrot.slane %v4751_v11, 2 }
 0x359   : > { %8579 = vst [vmem:[#allocation161_spill] sm:$0xff] %v5945_v16 }
 0x35a   : > { %v5947_v28 = vpop.permute.xlu1 %1857  ;;  %2271 = vrot.lane.b32.xlu0 %v8581_v59, %s4164_s29  ;;  %v8589_v59 = vrot.slane %v4764_v62, 2 }
 0x35b   : > { %8580 = vst [vmem:[#allocation162_spill] sm:$0xff] %v5947_v28 }
 0x35c   : > { %2277 = vrot.lane.b32.xlu1 %v8582_v0, %s4164_s29  ;;  %v5955_v19 = vpop.permute.xlu0 %1855  ;;  %v8590_v0 = vrot.slane %v4795_v9, 2 }
 0x35d   : > { %8583 = vst [vmem:[#allocation163_spill] sm:$0xff] %v5955_v19 }
 0x35e   : > { %v5957_v26 = vpop.permute.xlu1 %1893  ;;  %2275 = vrot.lane.b32.xlu0 %v8585_v30, %s4164_s29  ;;  %v8593_v30 = vrot.slane %v4803_v33, 2 }
 0x35f   : > { %8584 = vst [vmem:[#allocation164_spill] sm:$0xff] %v5957_v26 }
 0x360   : > { %2281 = vrot.lane.b32.xlu1 %v8586_v35, %s4164_s29  ;;  %v5965_v28 = vpop.permute.xlu0 %1891  ;;  %v8594_v35 = vrot.slane %v4831_v6, 2 }
 0x361   : > { %8587 = vst [vmem:[#allocation165_spill] sm:$0xff] %v5965_v28 }
 0x362   : > { %v5967_v16 = vpop.permute.xlu1 %1897  ;;  %2279 = vrot.lane.b32.xlu0 %v8589_v59, %s4164_s29  ;;  %v8597_v59 = vrot.slane %v4839_v17, 2 }
 0x363   : > { %8588 = vst [vmem:[#allocation166_spill] sm:$0xff] %v5967_v16 }
 0x364   : > { %2285 = vrot.lane.b32.xlu1 %v8590_v0, %s4164_s29  ;;  %v5975_v26 = vpop.permute.xlu0 %1895  ;;  %v8598_v0 = vrot.slane %v4653_v7, 3 }
 0x365   : > { %8591 = vst [vmem:[#allocation167_spill] sm:$0xff] %v5975_v26 }
 0x366   : > { %v5977_v19 = vpop.permute.xlu1 %1901  ;;  %2283 = vrot.lane.b32.xlu0 %v8593_v30, %s4164_s29  ;;  %v8601_v30 = vrot.slane %v4658_v45, 3 }
 0x367   : > { %8592 = vst [vmem:[#allocation168_spill] sm:$0xff] %v5977_v19 }
 0x368   : > { %2289 = vrot.lane.b32.xlu1 %v8594_v35, %s4164_s29  ;;  %v5985_v16 = vpop.permute.xlu0 %1899  ;;  %v8602_v35 = vrot.slane %v4677_v27, 3 }
 0x369   : > { %8595 = vst [vmem:[#allocation169_spill] sm:$0xff] %v5985_v16 }
 0x36a   : > { %v5987_v28 = vpop.permute.xlu1 %1905  ;;  %2287 = vrot.lane.b32.xlu0 %v8597_v59, %s4164_s29  ;;  %v8605_v59 = vrot.slane %v4682_v15, 3 }
 0x36b   : > { %8596 = vst [vmem:[#allocation170_spill] sm:$0xff] %v5987_v28 }
 0x36c   : > { %2309 = vrot.lane.b32.xlu1 %v8598_v0, %s4165_s16  ;;  %v5995_v19 = vpop.permute.xlu0 %1903  ;;  %v8606_v0 = vrot.slane %v4702_v56, 3 }
 0x36d   : > { %8599 = vst [vmem:[#allocation171_spill] sm:$0xff] %v5995_v19 }
 0x36e   : > { %v5997_v26 = vpop.permute.xlu1 %1909  ;;  %2307 = vrot.lane.b32.xlu0 %v8601_v30, %s4165_s16  ;;  %v8609_v30 = vrot.slane %v4712_v13, 3 }
 0x36f   : > { %8600 = vst [vmem:[#allocation172_spill] sm:$0xff] %v5997_v26 }
 0x370   : > { %2313 = vrot.lane.b32.xlu1 %v8602_v35, %s4165_s16  ;;  %v6005_v28 = vpop.permute.xlu0 %1907  ;;  %v8610_v35 = vrot.slane %v4742_v46, 3 }
 0x371   : > { %8603 = vst [vmem:[#allocation173_spill] sm:$0xff] %v6005_v28 }
 0x372   : > { %v6007_v16 = vpop.permute.xlu1 %1913  ;;  %2311 = vrot.lane.b32.xlu0 %v8605_v59, %s4165_s16  ;;  %v8613_v59 = vrot.slane %v4756_v36, 3 }
 0x373   : > { %8604 = vst [vmem:[#allocation174_spill] sm:$0xff] %v6007_v16 }
 0x374   : > { %2317 = vrot.lane.b32.xlu1 %v8606_v0, %s4165_s16  ;;  %v6015_v26 = vpop.permute.xlu0 %1911  ;;  %v8614_v0 = vrot.slane %v4707_v52, 3 }
 0x375   : > { %8607 = vst [vmem:[#allocation175_spill] sm:$0xff] %v6015_v26 }
 0x376   : > { %v6017_v19 = vpop.permute.xlu1 %1917  ;;  %2315 = vrot.lane.b32.xlu0 %v8609_v30, %s4165_s16  ;;  %v8617_v30 = vrot.slane %v4717_v3, 3 }
 0x377   : > { %8608 = vst [vmem:[#allocation176_spill] sm:$0xff] %v6017_v19 }
 0x378   : > { %2321 = vrot.lane.b32.xlu1 %v8610_v35, %s4165_s16  ;;  %v6025_v16 = vpop.permute.xlu0 %1915  ;;  %v8618_v35 = vrot.slane %v4751_v11, 3 }
 0x379   : > { %8611 = vst [vmem:[#allocation177_spill] sm:$0xff] %v6025_v16 }
 0x37a   : > { %v6027_v28 = vpop.permute.xlu1 %1921  ;;  %2319 = vrot.lane.b32.xlu0 %v8613_v59, %s4165_s16  ;;  %v8621_v59 = vrot.slane %v4764_v62, 3 }
 0x37b   : > { %8612 = vst [vmem:[#allocation178_spill] sm:$0xff] %v6027_v28 }
 0x37c   : > { %2325 = vrot.lane.b32.xlu1 %v8614_v0, %s4165_s16  ;;  %v6035_v19 = vpop.permute.xlu0 %1919  ;;  %v8622_v0 = vrot.slane %v4795_v9, 3 }
 0x37d   : > { %8615 = vst [vmem:[#allocation179_spill] sm:$0xff] %v6035_v19 }
 0x37e   : > { %v6037_v26 = vpop.permute.xlu1 %1957  ;;  %2323 = vrot.lane.b32.xlu0 %v8617_v30, %s4165_s16  ;;  %v8625_v30 = vrot.slane %v4803_v33, 3 }
 0x37f   : > { %8616 = vst [vmem:[#allocation180_spill] sm:$0xff] %v6037_v26 }
 0x380   : > { %2329 = vrot.lane.b32.xlu1 %v8618_v35, %s4165_s16  ;;  %v6045_v28 = vpop.permute.xlu0 %1955  ;;  %v8626_v35 = vrot.slane %v4831_v6, 3 }
 0x381   : > { %8619 = vst [vmem:[#allocation181_spill] sm:$0xff] %v6045_v28 }
 0x382   : > { %v6047_v16 = vpop.permute.xlu1 %1961  ;;  %2327 = vrot.lane.b32.xlu0 %v8621_v59, %s4165_s16  ;;  %v8342_v59 = vrot.slane %v4653_v7, 4 }
 0x383   : > { %8620 = vst [vmem:[#allocation182_spill] sm:$0xff] %v6047_v16 }
 0x384   : > { %2333 = vrot.lane.b32.xlu1 %v8622_v0, %s4165_s16  ;;  %v6055_v26 = vpop.permute.xlu0 %1959  ;;  %v8629_v0 = vrot.slane %v4839_v17, 3 }
 0x385   : > { %8623 = vst [vmem:[#allocation183_spill] sm:$0xff] %v6055_v26 }
 0x386   : > { %v6057_v19 = vpop.permute.xlu1 %1965  ;;  %2331 = vrot.lane.b32.xlu0 %v8625_v30, %s4165_s16 }
 0x387   : > { %8624 = vst [vmem:[#allocation184_spill] sm:$0xff] %v6057_v19  ;;  %v8343_v19 = vrot.slane %v4658_v45, 4 }
 0x388   : > { %2337 = vrot.lane.b32.xlu1 %v8626_v35, %s4165_s16  ;;  %v6065_v16 = vpop.permute.xlu0 %1963  ;;  %v8344_v35 = vrot.slane %v4677_v27, 4 }
 0x389   : > { %8627 = vst [vmem:[#allocation185_spill] sm:$0xff] %v6065_v16 }
 0x38a   : > { %v6068_v28 = vpop.permute.xlu1 %1969  ;;  %2335 = vrot.lane.b32.xlu0 %v8629_v0, %s4165_s16 }
 0x38b   : > { %8628 = vst [vmem:[#allocation186_spill] sm:$0xff] %v6068_v28  ;;  %v8345_v28 = vrot.slane %v4682_v15, 4 }
 0x38c   : > { %2357 = vrot.lane.b32.xlu1 %v8342_v59, %s4166_s8  ;;  %v6077_v30 = vpop.permute.xlu0 %1967  ;;  %v8346_v59 = vrot.slane %v4702_v56, 4 }
 0x38d   : > { %8630 = vst [vmem:[#allocation187_spill] sm:$0xff] %v6077_v30 }
 0x38e   : > { %v6080_v26 = vpop.permute.xlu1 %1973  ;;  %2355 = vrot.lane.b32.xlu0 %v8343_v19, %s4166_s8 }
 0x38f   : > { %8631 = vst [vmem:[#allocation188_spill] sm:$0xff] %v6080_v26  ;;  %v8347_v26 = vrot.slane %v4712_v13, 4 }
 0x390   : > { %2361 = vrot.lane.b32.xlu1 %v8344_v35, %s4166_s8  ;;  %v6089_v0 = vpop.permute.xlu0 %1971  ;;  %v8348_v35 = vrot.slane %v4742_v46, 4 }
 0x391   : > { %8632 = vst [vmem:[#allocation189_spill] sm:$0xff] %v6089_v0 }
 0x392   : > { %v6092_v16 = vpop.permute.xlu1 %1977  ;;  %2359 = vrot.lane.b32.xlu0 %v8345_v28, %s4166_s8 }
 0x393   : > { %8633 = vst [vmem:[#allocation190_spill] sm:$0xff] %v6092_v16  ;;  %v8349_v16 = vrot.slane %v4756_v36, 4 }
 0x394   : > { %2365 = vrot.lane.b32.xlu1 %v8346_v59, %s4166_s8  ;;  %v6101_v19 = vpop.permute.xlu0 %1975  ;;  %v8350_v59 = vrot.slane %v4707_v52, 4 }
 0x395   : > { %8634 = vst [vmem:[#allocation191_spill] sm:$0xff] %v6101_v19 }
 0x396   : > { %v6104_v30 = vpop.permute.xlu1 %1981  ;;  %2363 = vrot.lane.b32.xlu0 %v8347_v26, %s4166_s8 }
 0x397   : > { %8635 = vst [vmem:[#allocation192_spill] sm:$0xff] %v6104_v30  ;;  %v8351_v30 = vrot.slane %v4717_v3, 4 }
 0x398   : > { %2369 = vrot.lane.b32.xlu1 %v8348_v35, %s4166_s8  ;;  %v6113_v28 = vpop.permute.xlu0 %1979  ;;  %v8352_v35 = vrot.slane %v4751_v11, 4 }
 0x399   : > { %8636 = vst [vmem:[#allocation193_spill] sm:$0xff] %v6113_v28 }
 0x39a   : > { %v6116_v0 = vpop.permute.xlu1 %1985  ;;  %2367 = vrot.lane.b32.xlu0 %v8349_v16, %s4166_s8 }
 0x39b   : > { %8637 = vst [vmem:[#allocation194_spill] sm:$0xff] %v6116_v0  ;;  %v8353_v0 = vrot.slane %v4764_v62, 4 }
 0x39c   : > { %2373 = vrot.lane.b32.xlu1 %v8350_v59, %s4166_s8  ;;  %v6125_v26 = vpop.permute.xlu0 %1983  ;;  %v8354_v59 = vrot.slane %v4795_v9, 4 }
 0x39d   : > { %8638 = vst [vmem:[#allocation195_spill] sm:$0xff] %v6125_v26  ;;  %v8355_v26 = vrot.slane %v4803_v33, 4 }
 0x39e   : > { %v6128_v19 = vpop.permute.xlu1 %2197  ;;  %2371 = vrot.lane.b32.xlu0 %v8351_v30, %s4166_s8 }
 0x39f   : > { %8639 = vst [vmem:[#allocation196_spill] sm:$0xff] %v6128_v19 }
 0x3a0   : > { %2377 = vrot.lane.b32.xlu1 %v8352_v35, %s4166_s8  ;;  %v6137_v16 = vpop.permute.xlu0 %2195  ;;  %v8356_v35 = vrot.slane %v4831_v6, 4 }
 0x3a1   : > { %8640 = vst [vmem:[#allocation197_spill] sm:$0xff] %v6137_v16 }
 0x3a2   : > { %v6140_v28 = vpop.permute.xlu1 %2201  ;;  %2375 = vrot.lane.b32.xlu0 %v8353_v0, %s4166_s8 }
 0x3a3   : > { %8641 = vst [vmem:[#allocation198_spill] sm:$0xff] %v6140_v28  ;;  %v8357_v28 = vrot.slane %v4839_v17, 4 }
 0x3a4   : > { %2381 = vrot.lane.b32.xlu1 %v8354_v59, %s4166_s8  ;;  %v6149_v30 = vpop.permute.xlu0 %2199  ;;  %v8646_v59 = vrot.slane %v4653_v7, 6 }
 0x3a5   : > { %8642 = vst [vmem:[#allocation199_spill] sm:$0xff] %v6149_v30  ;;  %v8649_v30 = vrot.slane %v4658_v45, 6 }
 0x3a6   : > { %v6152_v19 = vpop.permute.xlu1 %2205  ;;  %2379 = vrot.lane.b32.xlu0 %v8355_v26, %s4166_s8 }
 0x3a7   : > { %8643 = vst [vmem:[#allocation200_spill] sm:$0xff] %v6152_v19 }
 0x3a8   : > { %2385 = vrot.lane.b32.xlu1 %v8356_v35, %s4166_s8  ;;  %v6161_v0 = vpop.permute.xlu0 %2203  ;;  %v8650_v35 = vrot.slane %v4677_v27, 6 }
 0x3a9   : > { %8644 = vst [vmem:[#allocation201_spill] sm:$0xff] %v6161_v0 }
 0x3aa   : > { %v6163_v16 = vpop.permute.xlu1 %2209  ;;  %2383 = vrot.lane.b32.xlu0 %v8357_v28, %s4166_s8  ;;  %v8653_v28 = vrot.slane %v4682_v15, 6 }
 0x3ab   : > { %8645 = vst [vmem:[#allocation202_spill] sm:$0xff] %v6163_v16 }
 0x3ac   : > { %2421 = vrot.lane.b32.xlu1 %v8646_v59, %s4164_s29  ;;  %v6171_v19 = vpop.permute.xlu0 %2207  ;;  %v8654_v59 = vrot.slane %v4702_v56, 6 }
 0x3ad   : > { %8647 = vst [vmem:[#allocation203_spill] sm:$0xff] %v6171_v19 }
 0x3ae   : > { %v6173_v26 = vpop.permute.xlu1 %2213  ;;  %2419 = vrot.lane.b32.xlu0 %v8649_v30, %s4164_s29  ;;  %v8657_v30 = vrot.slane %v4712_v13, 6 }
 0x3af   : > { %8648 = vst [vmem:[#allocation204_spill] sm:$0xff] %v6173_v26 }
 0x3b0   : > { %2425 = vrot.lane.b32.xlu1 %v8650_v35, %s4164_s29  ;;  %v6181_v16 = vpop.permute.xlu0 %2211  ;;  %v8658_v35 = vrot.slane %v4742_v46, 6 }
 0x3b1   : > { %8651 = vst [vmem:[#allocation205_spill] sm:$0xff] %v6181_v16 }
 0x3b2   : > { %v6183_v0 = vpop.permute.xlu1 %2217  ;;  %2423 = vrot.lane.b32.xlu0 %v8653_v28, %s4164_s29  ;;  %v8661_v28 = vrot.slane %v4756_v36, 6 }
 0x3b3   : > { %8652 = vst [vmem:[#allocation206_spill] sm:$0xff] %v6183_v0 }
 0x3b4   : > { %2429 = vrot.lane.b32.xlu1 %v8654_v59, %s4164_s29  ;;  %v6191_v26 = vpop.permute.xlu0 %2215  ;;  %v8662_v59 = vrot.slane %v4707_v52, 6 }
 0x3b5   : > { %8655 = vst [vmem:[#allocation207_spill] sm:$0xff] %v6191_v26 }
 0x3b6   : > { %v6193_v19 = vpop.permute.xlu1 %2221  ;;  %2427 = vrot.lane.b32.xlu0 %v8657_v30, %s4164_s29  ;;  %v8665_v30 = vrot.slane %v4717_v3, 6 }
 0x3b7   : > { %8656 = vst [vmem:[#allocation208_spill] sm:$0xff] %v6193_v19 }
 0x3b8   : > { %2433 = vrot.lane.b32.xlu1 %v8658_v35, %s4164_s29  ;;  %v6201_v0 = vpop.permute.xlu0 %2219  ;;  %v8666_v35 = vrot.slane %v4751_v11, 6 }
 0x3b9   : > { %8659 = vst [vmem:[#allocation209_spill] sm:$0xff] %v6201_v0 }
 0x3ba   : > { %v6203_v16 = vpop.permute.xlu1 %2225  ;;  %2431 = vrot.lane.b32.xlu0 %v8661_v28, %s4164_s29  ;;  %v8669_v28 = vrot.slane %v4764_v62, 6 }
 0x3bb   : > { %8660 = vst [vmem:[#allocation210_spill] sm:$0xff] %v6203_v16 }
 0x3bc   : > { %2437 = vrot.lane.b32.xlu1 %v8662_v59, %s4164_s29  ;;  %v6211_v19 = vpop.permute.xlu0 %2223  ;;  %v8670_v59 = vrot.slane %v4795_v9, 6 }
 0x3bd   : > { %8663 = vst [vmem:[#allocation211_spill] sm:$0xff] %v6211_v19 }
 0x3be   : > { %v6213_v26 = vpop.permute.xlu1 %2261  ;;  %2435 = vrot.lane.b32.xlu0 %v8665_v30, %s4164_s29  ;;  %v8673_v30 = vrot.slane %v4803_v33, 6 }
 0x3bf   : > { %8664 = vst [vmem:[#allocation212_spill] sm:$0xff] %v6213_v26 }
 0x3c0   : > { %2441 = vrot.lane.b32.xlu1 %v8666_v35, %s4164_s29  ;;  %v6221_v16 = vpop.permute.xlu0 %2259  ;;  %v8674_v35 = vrot.slane %v4831_v6, 6 }
 0x3c1   : > { %8667 = vst [vmem:[#allocation213_spill] sm:$0xff] %v6221_v16 }
 0x3c2   : > { %v6223_v0 = vpop.permute.xlu1 %2265  ;;  %2439 = vrot.lane.b32.xlu0 %v8669_v28, %s4164_s29  ;;  %v8677_v28 = vrot.slane %v4839_v17, 6 }
 0x3c3   : > { %8668 = vst [vmem:[#allocation214_spill] sm:$0xff] %v6223_v0 }
 0x3c4   : > { %2445 = vrot.lane.b32.xlu1 %v8670_v59, %s4164_s29  ;;  %v6231_v26 = vpop.permute.xlu0 %2263  ;;  %v8678_v59 = vrot.slane %v4653_v7, 7 }
 0x3c5   : > { %8671 = vst [vmem:[#allocation215_spill] sm:$0xff] %v6231_v26 }
 0x3c6   : > { %v6233_v19 = vpop.permute.xlu1 %2269  ;;  %2443 = vrot.lane.b32.xlu0 %v8673_v30, %s4164_s29  ;;  %v8681_v30 = vrot.slane %v4658_v45, 7 }
 0x3c7   : > { %8672 = vst [vmem:[#allocation216_spill] sm:$0xff] %v6233_v19 }
 0x3c8   : > { %2449 = vrot.lane.b32.xlu1 %v8674_v35, %s4164_s29  ;;  %v6241_v0 = vpop.permute.xlu0 %2267  ;;  %v8682_v35 = vrot.slane %v4677_v27, 7 }
 0x3c9   : > { %8675 = vst [vmem:[#allocation217_spill] sm:$0xff] %v6241_v0 }
 0x3ca   : > { %v6243_v16 = vpop.permute.xlu1 %2273  ;;  %2447 = vrot.lane.b32.xlu0 %v8677_v28, %s4164_s29  ;;  %v8685_v28 = vrot.slane %v4682_v15, 7 }
 0x3cb   : > { %8676 = vst [vmem:[#allocation218_spill] sm:$0xff] %v6243_v16 }
 0x3cc   : > { %2469 = vrot.lane.b32.xlu1 %v8678_v59, %s4165_s16  ;;  %v6251_v19 = vpop.permute.xlu0 %2271  ;;  %v8686_v59 = vrot.slane %v4702_v56, 7 }
 0x3cd   : > { %8679 = vst [vmem:[#allocation219_spill] sm:$0xff] %v6251_v19 }
 0x3ce   : > { %v6253_v26 = vpop.permute.xlu1 %2277  ;;  %2467 = vrot.lane.b32.xlu0 %v8681_v30, %s4165_s16  ;;  %v8689_v30 = vrot.slane %v4712_v13, 7 }
 0x3cf   : > { %8680 = vst [vmem:[#allocation220_spill] sm:$0xff] %v6253_v26 }
 0x3d0   : > { %2473 = vrot.lane.b32.xlu1 %v8682_v35, %s4165_s16  ;;  %v6261_v16 = vpop.permute.xlu0 %2275  ;;  %v8690_v35 = vrot.slane %v4742_v46, 7 }
 0x3d1   : > { %8683 = vst [vmem:[#allocation221_spill] sm:$0xff] %v6261_v16 }
 0x3d2   : > { %v6263_v0 = vpop.permute.xlu1 %2281  ;;  %2471 = vrot.lane.b32.xlu0 %v8685_v28, %s4165_s16  ;;  %v8693_v28 = vrot.slane %v4756_v36, 7 }
 0x3d3   : > { %8684 = vst [vmem:[#allocation222_spill] sm:$0xff] %v6263_v0 }
 0x3d4   : > { %2477 = vrot.lane.b32.xlu1 %v8686_v59, %s4165_s16  ;;  %v6271_v26 = vpop.permute.xlu0 %2279  ;;  %v8694_v59 = vrot.slane %v4707_v52, 7 }
 0x3d5   : > { %8687 = vst [vmem:[#allocation223_spill] sm:$0xff] %v6271_v26 }
 0x3d6   : > { %v6273_v19 = vpop.permute.xlu1 %2285  ;;  %2475 = vrot.lane.b32.xlu0 %v8689_v30, %s4165_s16  ;;  %v8697_v30 = vrot.slane %v4717_v3, 7 }
 0x3d7   : > { %8688 = vst [vmem:[#allocation224_spill] sm:$0xff] %v6273_v19 }
 0x3d8   : > { %2481 = vrot.lane.b32.xlu1 %v8690_v35, %s4165_s16  ;;  %v6281_v0 = vpop.permute.xlu0 %2283  ;;  %v8698_v35 = vrot.slane %v4751_v11, 7 }
 0x3d9   : > { %8691 = vst [vmem:[#allocation225_spill] sm:$0xff] %v6281_v0 }
 0x3da   : > { %v6283_v16 = vpop.permute.xlu1 %2289  ;;  %2479 = vrot.lane.b32.xlu0 %v8693_v28, %s4165_s16  ;;  %v8701_v28 = vrot.slane %v4764_v62, 7 }
 0x3db   : > { %8692 = vst [vmem:[#allocation226_spill] sm:$0xff] %v6283_v16 }
 0x3dc   : > { %2485 = vrot.lane.b32.xlu1 %v8694_v59, %s4165_s16  ;;  %v6291_v19 = vpop.permute.xlu0 %2287  ;;  %v8702_v59 = vrot.slane %v4795_v9, 7 }
 0x3dd   : > { %8695 = vst [vmem:[#allocation227_spill] sm:$0xff] %v6291_v19 }
 0x3de   : > { %v6293_v26 = vpop.permute.xlu1 %2309  ;;  %2483 = vrot.lane.b32.xlu0 %v8697_v30, %s4165_s16  ;;  %v8705_v30 = vrot.slane %v4803_v33, 7 }
 0x3df   : > { %8696 = vst [vmem:[#allocation228_spill] sm:$0xff] %v6293_v26 }
 0x3e0   : > { %2489 = vrot.lane.b32.xlu1 %v8698_v35, %s4165_s16  ;;  %v6301_v16 = vpop.permute.xlu0 %2307  ;;  %v8706_v35 = vrot.slane %v4831_v6, 7 }
 0x3e1   : > { %8699 = vst [vmem:[#allocation229_spill] sm:$0xff] %v6301_v16 }
 0x3e2   : > { %v6303_v0 = vpop.permute.xlu1 %2313  ;;  %2487 = vrot.lane.b32.xlu0 %v8701_v28, %s4165_s16  ;;  %v8709_v28 = vrot.slane %v4839_v17, 7 }
 0x3e3   : > { %8700 = vst [vmem:[#allocation230_spill] sm:$0xff] %v6303_v0 }
 0x3e4   : > { %2493 = vrot.lane.b32.xlu1 %v8702_v59, %s4165_s16  ;;  %v6311_v19 = vpop.permute.xlu0 %2311 }
 0x3e5   : > { %8703 = vst [vmem:[#allocation231_spill] sm:$0xff] %v6311_v19  ;;  %v8773_v19 = vld [vmem:[#allocation57_spill] sm:$0xff] }
 0x3e6   : > { %v6313_v26 = vpop.permute.xlu1 %2317  ;;  %2491 = vrot.lane.b32.xlu0 %v8705_v30, %s4165_s16 }
 0x3e7   : > { %8704 = vst [vmem:[#allocation232_spill] sm:$0xff] %v6313_v26 }
 0x3e8   : > { %2497 = vrot.lane.b32.xlu1 %v8706_v35, %s4165_s16  ;;  %v6321_v0 = vpop.permute.xlu0 %2315 }
 0x3e9   : > { %8707 = vst [vmem:[#allocation233_spill] sm:$0xff] %v6321_v0 }
 0x3ea   : > { %v6323_v16 = vpop.permute.xlu1 %2321  ;;  %2495 = vrot.lane.b32.xlu0 %v8709_v28, %s4165_s16 }
 0x3eb   : > { %8708 = vst [vmem:[#allocation234_spill] sm:$0xff] %v6323_v16  ;;  %v8729_v16 = vrot.slane %v4669_v58, 2 }
 0x3ec   : > { %2517 = vrot.lane.b32.xlu1 %v4893_v10, %s4166_s8  ;;  %v6330_v59 = vpop.permute.xlu0 %2319 }
 0x3ed   : > { %8710 = vst [vmem:[#allocation235_spill] sm:$0xff] %v6330_v59 }
 0x3ee   : > { %v6332_v26 = vpop.permute.xlu1 %2325  ;;  %2515 = vrot.lane.b32.xlu0 %v4669_v58, %s4166_s8 }
 0x3ef   : > { %8711 = vst [vmem:[#allocation236_spill] sm:$0xff] %v6332_v26 }
 0x3f0   : > { %2521 = vrot.lane.b32.xlu1 %v4688_v54, %s4166_s8  ;;  %v6338_v30 = vpop.permute.xlu0 %2323 }
 0x3f1   : > { %8712 = vst [vmem:[#allocation237_spill] sm:$0xff] %v6338_v30 }
 0x3f2   : > { %v6340_v35 = vpop.permute.xlu1 %2329  ;;  %2519 = vrot.lane.b32.xlu0 %v4694_v53, %s4166_s8 }
 0x3f3   : > { %8713 = vst [vmem:[#allocation238_spill] sm:$0xff] %v6340_v35 }
 0x3f4   : > { %2525 = vrot.lane.b32.xlu1 %v4722_v39, %s4166_s8  ;;  %v6346_v28 = vpop.permute.xlu0 %2327 }
 0x3f5   : > { %8714 = vst [vmem:[#allocation239_spill] sm:$0xff] %v6346_v28 }
 0x3f6   : > { %v6348_v59 = vpop.permute.xlu1 %2333  ;;  %2523 = vrot.lane.b32.xlu0 %v4732_v60, %s4166_s8 }
 0x3f7   : > { %8715 = vst [vmem:[#allocation240_spill] sm:$0xff] %v6348_v59 }
 0x3f8   : > { %2529 = vrot.lane.b32.xlu1 %v4774_v14, %s4166_s8  ;;  %v6354_v26 = vpop.permute.xlu0 %2331 }
 0x3f9   : > { %8716 = vst [vmem:[#allocation241_spill] sm:$0xff] %v6354_v26 }
 0x3fa   : > { %v6356_v30 = vpop.permute.xlu1 %2337  ;;  %2527 = vrot.lane.b32.xlu0 %v4787_v50, %s4166_s8 }
 0x3fb   : > { %8717 = vst [vmem:[#allocation242_spill] sm:$0xff] %v6356_v30 }
 0x3fc   : > { %2533 = vrot.lane.b32.xlu1 %v4727_v61, %s4166_s8  ;;  %v6362_v35 = vpop.permute.xlu0 %2335 }
 0x3fd   : > { %8718 = vst [vmem:[#allocation243_spill] sm:$0xff] %v6362_v35 }
 0x3fe   : > { %v6364_v28 = vpop.permute.xlu1 %2357  ;;  %2531 = vrot.lane.b32.xlu0 %v4737_v25, %s4166_s8 }
 0x3ff   : > { %8719 = vst [vmem:[#allocation244_spill] sm:$0xff] %v6364_v28 }
 0x400   : > { %2537 = vrot.lane.b32.xlu1 %v4779_v2, %s4166_s8  ;;  %v6370_v59 = vpop.permute.xlu0 %2355 }
 0x401   : > { %8720 = vst [vmem:[#allocation245_spill] sm:$0xff] %v6370_v59 }
 0x402   : > { %v6372_v26 = vpop.permute.xlu1 %2361  ;;  %2535 = vrot.lane.b32.xlu0 %v4792_v49, %s4166_s8 }
 0x403   : > { %8721 = vst [vmem:[#allocation246_spill] sm:$0xff] %v6372_v26  ;;  %v8726_v26 = vrot.slane %v4893_v10, 2 }
 0x404   : > { %2541 = vrot.lane.b32.xlu1 %v4818_v23, %s4166_s8  ;;  %v6378_v30 = vpop.permute.xlu0 %2359 }
 0x405   : > { %8722 = vst [vmem:[#allocation247_spill] sm:$0xff] %v6378_v30 }
 0x406   : > { %v6380_v35 = vpop.permute.xlu1 %2365  ;;  %2539 = vrot.lane.b32.xlu0 %v4822_v43, %s4166_s8 }
 0x407   : > { %8723 = vst [vmem:[#allocation248_spill] sm:$0xff] %v6380_v35 }
 0x408   : > { %2545 = vrot.lane.b32.xlu1 %v4847_v31, %s4166_s8  ;;  %v6386_v28 = vpop.permute.xlu0 %2363  ;;  %v2003_v31 = vsel %vm682_vm1, %v4658_v45, %v5045_v37 }
 0x409   : > { %8724 = vst [vmem:[#allocation249_spill] sm:$0xff] %v6386_v28  ;;  %v8730_v28 = vrot.slane %v4688_v54, 2  ;;  %v2019_v37 = vsel %vm715_vm2, %v2003_v31, %v5072_v40 }
 0x40a   : > { %v6388_v59 = vpop.permute.xlu1 %2369  ;;  %2543 = vrot.lane.b32.xlu0 %v4855_v22, %s4166_s8 }
 0x40b   : > { %8725 = vst [vmem:[#allocation250_spill] sm:$0xff] %v6388_v59 }
 0x40c   : > { %2581 = vrot.lane.b32.xlu1 %v8726_v26, %s4164_s29  ;;  %v6395_v30 = vpop.permute.xlu0 %2367  ;;  %v2004_v26 = vsel %vm682_vm1, %v4653_v7, %v5039_v5 }
 0x40d   : > { %8727 = vst [vmem:[#allocation251_spill] sm:$0xff] %v6395_v30  ;;  %v2020_v5 = vsel %vm715_vm2, %v2004_v26, %v5063_v55  ;;  %v6454_v55 = vsel %vm748_vm3, %v2019_v37, %v5096_v44  ;;  %v8739_v44 = vrot.slane %v4658_v45, 4  ;;  %v8741_v26 = vrot.slane %v4717_v3, 4 }
 0x40e   : > { %v6397_v35 = vpop.permute.xlu1 %2373  ;;  %2579 = vrot.lane.b32.xlu0 %v8729_v16, %s4164_s29  ;;  %v2012_v16 = vsel %vm682_vm1, %v4707_v52, %v5051_v8  ;;  %v8742_v37 = vrot.slane %v4774_v14, 2 }
 0x40f   : > { %8728 = vst [vmem:[#allocation252_spill] sm:$0xff] %v6397_v35  ;;  %v8734_v35 = vrot.slane %v4722_v39, 2  ;;  %v2028_v30 = vsel %vm715_vm2, %v2012_v16, %v5075_v38  ;;  %v8736_v38 = vrot.slane %v4653_v7, 4 }
 0x410   : > { %2585 = vrot.lane.b32.xlu1 %v8730_v28, %s4164_s29  ;;  %v6405_v59 = vpop.permute.xlu0 %2371  ;;  %v8733_v28 = vrot.slane %v4694_v53, 2 }
 0x411   : > { %8731 = vst [vmem:[#allocation253_spill] sm:$0xff] %v6405_v59  ;;  %v8811_v59 = vld [vmem:[#allocation93_spill] sm:$0xff] }
 0x412   : > { %v6415_v17 = vpop.permute.xlu1 %2377  ;;  %2583 = vrot.lane.b32.xlu0 %v8733_v28, %s4164_s29  ;;  %v2011_v28 = vsel %vm682_vm1, %v4717_v3, %v5060_v57  ;;  %v6450_v57 = vsel %vm748_vm3, %v2020_v5, %v5087_v48  ;;  %v8738_v48 = vrot.slane %v4732_v60, 2 }
 0x413   : > { %8732 = vst [vmem:[#allocation254_spill] sm:$0xff] %v6415_v17  ;;  %v2027_v8 = vsel %vm715_vm2, %v2011_v28, %v5084_v47  ;;  %v2052_v47 = vsel %vm682_vm1, %v8736_v38, %v5111_v24  ;;  %v2059_v24 = vsel %vm682_vm1, %v8741_v26, %v5132_v32 }
 0x414   : > { %2589 = vrot.lane.b32.xlu1 %v8734_v35, %s4164_s29  ;;  %v6440_v22 = vpop.permute.xlu0 %2375  ;;  %v6458_v35 = vsel %vm748_vm3, %v2028_v30, %v5099_v34  ;;  %v6462_v31 = vsel %vm748_vm3, %v2027_v8, %v5108_v4  ;;  %v2051_v34 = vsel %vm682_vm1, %v8739_v44, %v5120_v63  ;;  %v8740_v4 = vrot.slane %v4707_v52, 4  ;;  %v8748_v8 = vld [vmem:[#allocation40_spill] sm:$0xff]  ;;  %v8751_v44 = vld [vmem:[#allocation43_spill] sm:$0xff] }
 0x415   : > { %8735 = vst [vmem:[#allocation255_spill] sm:$0xff] %v6440_v22  ;;  %v2068_v16 = vsel %vm715_vm2, %v2052_v47, %v5135_v41  ;;  %v2067_v28 = vsel %vm715_vm2, %v2051_v34, %v5144_v42  ;;  %v2075_v63 = vsel %vm715_vm2, %v2059_v24, %v5156_v20  ;;  %v2014_v38 = vsel %vm682_vm1, %v4751_v11, %v8748_v8  ;;  %v8749_v47 = vld [vmem:[#allocation41_spill] sm:$0xff]  ;;  %v8807_v22 = vld [vmem:[#allocation90_spill] sm:$0xff] }
 0x416   : > { %v6468_v40 = vpop.permute.xlu1 %2381  ;;  %2587 = vrot.lane.b32.xlu0 %v8738_v48, %s4164_s29  ;;  %v2060_v30 = vsel %vm682_vm1, %v8740_v4, %v5123_v18  ;;  %v6495_v18 = vsel %vm748_vm3, %v2068_v16, %v5159_v51  ;;  %v6504_v41 = vsel %vm748_vm3, %v2067_v28, %v5168_v29  ;;  %v6512_v42 = vsel %vm748_vm3, %v2075_v63, %v5180_v12  ;;  %v8747_v51 = vld [vmem:[#allocation38_spill] sm:$0xff]  ;;  %v8755_v24 = vld [vmem:[#allocation45_spill] sm:$0xff]  ;;  %v8757_v63 = vld [vmem:[#allocation47_spill] sm:$0xff] }
 0x417   : > { %8737 = vst [vmem:[#allocation256_spill] sm:$0xff] %v6468_v40  ;;  %v2076_v5 = vsel %vm715_vm2, %v2060_v30, %v5147_v21  ;;  %8744 = vst [vmem:[#allocation258_spill] sm:$0xff] %v6504_v41  ;;  %v2006_v20 = vsel %vm682_vm1, %v4677_v27, %v8747_v51  ;;  %v2005_v29 = vsel %vm682_vm1, %v4682_v15, %v8749_v47  ;;  %v8750_v48 = vld [vmem:[#allocation42_spill] sm:$0xff]  ;;  %v8753_v4 = vrot.slane %v4787_v50, 2  ;;  %v8754_v30 = vld [vmem:[#allocation44_spill] sm:$0xff] }
 0x418   : > { %2593 = vrot.lane.b32.xlu1 %v8742_v37, %s4164_s29  ;;  %v6500_v32 = vpop.permute.xlu0 %2379  ;;  %v6508_v21 = vsel %vm748_vm3, %v2076_v5, %v5171_v1  ;;  %8746 = vst [vmem:[#allocation260_spill] sm:$0xff] %v6512_v42  ;;  %v2022_v1 = vsel %vm715_vm2, %v2006_v20, %v8750_v48  ;;  %v2013_v12 = vsel %vm682_vm1, %v4764_v62, %v8751_v44  ;;  %v8756_v28 = vld [vmem:[#allocation46_spill] sm:$0xff]  ;;  %v8758_v51 = vld [vmem:[#allocation48_spill] sm:$0xff]  ;;  %v8759_v8 = vld [vmem:[#allocation49_spill] sm:$0xff] }
 0x419   : > { %8743 = vst [vmem:[#allocation257_spill] sm:$0xff] %v6500_v32  ;;  %8745 = vst [vmem:[#allocation259_spill] sm:$0xff] %v6508_v21  ;;  %v2030_v26 = vsel %vm715_vm2, %v2014_v38, %v8754_v30  ;;  %v2021_v16 = vsel %vm715_vm2, %v2005_v29, %v8755_v24  ;;  %v6539_v5 = vsel %vm748_vm3, %v2022_v1, %v8756_v28  ;;  %v8760_v48 = vld [vmem:[#allocation50_spill] sm:$0xff]  ;;  %v8761_v38 = vrot.slane %v4677_v27, 4  ;;  %v8762_v44 = vld [vmem:[#allocation51_spill] sm:$0xff] }
 0x41a   : > { %v6528_v34 = vpop.permute.xlu1 %2385  ;;  %2591 = vrot.lane.b32.xlu0 %v8753_v4, %s4164_s29  ;;  %v2029_v37 = vsel %vm715_vm2, %v2013_v12, %v8757_v63  ;;  %v6545_v20 = vsel %vm748_vm3, %v2030_v26, %v8758_v51  ;;  %v6549_v47 = vsel %vm748_vm3, %v2021_v16, %v8759_v8  ;;  %v8763_v12 = vrot.slane %v4727_v61, 2  ;;  %v8765_v30 = vld [vmem:[#allocation52_spill] sm:$0xff]  ;;  %v8767_v16 = vld [vmem:[#allocation53_spill] sm:$0xff]  ;;  %v8769_v51 = vld [vmem:[#allocation54_spill] sm:$0xff] }
 0x41b   : > { %8752 = vst [vmem:[#allocation38_spill] sm:$0xff] %v6528_v34  ;;  %v2054_v29 = vsel %vm682_vm1, %v8761_v38, %v8760_v48  ;;  %v6557_v1 = vsel %vm748_vm3, %v2029_v37, %v8762_v44  ;;  %v8766_v26 = vrot.slane %v4751_v11, 4  ;;  %v8768_v28 = vrot.slane %v4682_v15, 4  ;;  %v8770_v8 = vld [vmem:[#allocation55_spill] sm:$0xff]  ;;  %v8772_v44 = vld [vmem:[#allocation56_spill] sm:$0xff] }
 0x41c   : > { %2597 = vrot.lane.b32.xlu1 %v8763_v12, %s4164_s29  ;;  %v6562_v4 = vpop.permute.xlu0 %2383  ;;  %v2070_v37 = vsel %vm715_vm2, %v2054_v29, %v8769_v51  ;;  %v8771_v48 = vrot.slane %v4764_v62, 4  ;;  %v8776_v42 = vld [vmem:[#allocation59_spill] sm:$0xff]  ;;  %v8777_v29 = vrot.slane %v4737_v25, 2  ;;  %v8778_v51 = vld [vmem:[#allocation60_spill] sm:$0xff] }
 0x41d   : > { %8764 = vst [vmem:[#allocation40_spill] sm:$0xff] %v6562_v4  ;;  %v2062_v24 = vsel %vm682_vm1, %v8766_v26, %v8765_v30  ;;  %v2053_v63 = vsel %vm682_vm1, %v8768_v28, %v8767_v16  ;;  %v8774_v30 = vld [vmem:[#allocation58_spill] sm:$0xff]  ;;  %v8796_v32 = vld [vmem:[#allocation84_spill] sm:$0xff] }
 0x41e   : > { %v2061_v38 = vsel %vm682_vm1, %v8771_v48, %v8770_v8  ;;  %v2078_v12 = vsel %vm715_vm2, %v2062_v24, %v8772_v44  ;;  %v2069_v0 = vsel %vm715_vm2, %v2053_v63, %v8773_v19  ;;  %v6584_v26 = vsel %vm748_vm3, %v2070_v37, %v8774_v30  ;;  %v6588_v28 = vpop.permute.xlu1 %2421  ;;  %2595 = vrot.lane.b32.xlu0 %v8777_v29, %s4164_s29  ;;  %v8780_v24 = vld [vmem:[#allocation61_spill] sm:$0xff]  ;;  %v8782_v63 = vld [vmem:[#allocation63_spill] sm:$0xff]  ;;  %v8784_v48 = vld [vmem:[#allocation72_spill] sm:$0xff] }
 0x41f   : > { %8775 = vst [vmem:[#allocation41_spill] sm:$0xff] %v6584_v26  ;;  %v2077_v16 = vsel %vm715_vm2, %v2061_v38, %v8776_v42  ;;  %v6595_v8 = vsel %vm748_vm3, %v2078_v12, %v8778_v51  ;;  %v6599_v19 = vsel %vm748_vm3, %v2069_v0, %v8780_v24  ;;  %v2008_v42 = vsel %vm682_vm1, %v4702_v56, %v8784_v48  ;;  %v8785_v38 = vld [vmem:[#allocation74_spill] sm:$0xff]  ;;  %v8786_v30 = vld [vmem:[#allocation75_spill] sm:$0xff]  ;;  %v8787_v29 = vld [vmem:[#allocation76_spill] sm:$0xff] }
 0x420   : > { %8779 = vst [vmem:[#allocation42_spill] sm:$0xff] %v6595_v8  ;;  %8781 = vst [vmem:[#allocation43_spill] sm:$0xff] %v6599_v19  ;;  %v6603_v37 = vsel %vm748_vm3, %v2077_v16, %v8782_v63  ;;  %v2016_v44 = vsel %vm682_vm1, %v4795_v9, %v8785_v38  ;;  %v2007_v12 = vsel %vm682_vm1, %v4712_v13, %v8786_v30  ;;  %v8788_v51 = vld [vmem:[#allocation77_spill] sm:$0xff]  ;;  %v8789_v24 = vrot.slane %v4779_v2, 2  ;;  %v6622_v63 = vpop.permute.xlu0 %2419  ;;  %v8790_v48 = vld [vmem:[#allocation78_spill] sm:$0xff] }
 0x421   : > { %8783 = vst [vmem:[#allocation44_spill] sm:$0xff] %v6603_v37  ;;  %v2024_v0 = vsel %vm715_vm2, %v2008_v42, %v8787_v29  ;;  %v2015_v16 = vsel %vm682_vm1, %v4803_v33, %v8788_v51  ;;  %v2032_v38 = vsel %vm715_vm2, %v2016_v44, %v8790_v48  ;;  %v8791_v37 = vld [vmem:[#allocation79_spill] sm:$0xff]  ;;  %v8792_v30 = vld [vmem:[#allocation80_spill] sm:$0xff]  ;;  %v8793_v42 = vld [vmem:[#allocation81_spill] sm:$0xff]  ;;  %v8797_v44 = vrot.slane %v4702_v56, 4 }
 0x422   : > { %2601 = vrot.lane.b32.xlu1 %v8789_v24, %s4164_s29  ;;  %v2023_v8 = vsel %vm715_vm2, %v2007_v12, %v8791_v37  ;;  %v6630_v21 = vsel %vm748_vm3, %v2024_v0, %v8792_v30  ;;  %v2031_v29 = vsel %vm715_vm2, %v2015_v16, %v8793_v42  ;;  %v8794_v51 = vld [vmem:[#allocation82_spill] sm:$0xff]  ;;  %v8795_v24 = vld [vmem:[#allocation83_spill] sm:$0xff]  ;;  %v8798_v12 = vld [vmem:[#allocation85_spill] sm:$0xff]  ;;  %v6650_v48 = vpop.permute.xlu1 %2425  ;;  %v8799_v16 = vrot.slane %v4792_v49, 2 }
 0x423   : > { %v6636_v4 = vsel %vm748_vm3, %v2032_v38, %v8794_v51  ;;  %v6640_v34 = vsel %vm748_vm3, %v2023_v8, %v8795_v24  ;;  %v2056_v37 = vsel %vm682_vm1, %v8797_v44, %v8796_v32  ;;  %v6648_v0 = vsel %vm748_vm3, %v2031_v29, %v8798_v12  ;;  %v8800_v38 = vld [vmem:[#allocation86_spill] sm:$0xff]  ;;  %v8802_v42 = vld [vmem:[#allocation87_spill] sm:$0xff]  ;;  %v8804_v24 = vld [vmem:[#allocation88_spill] sm:$0xff] }
 0x424   : > { %2599 = vrot.lane.b32.xlu0 %v8799_v16, %s4164_s29  ;;  %v8801_v30 = vrot.slane %v4795_v9, 4  ;;  %v8803_v51 = vrot.slane %v4712_v13, 4  ;;  %v2072_v29 = vsel %vm715_vm2, %v2056_v37, %v8804_v24  ;;  %v8805_v44 = vld [vmem:[#allocation89_spill] sm:$0xff]  ;;  %v8806_v12 = vrot.slane %v4803_v33, 4  ;;  %v8808_v19 = vld [vmem:[#allocation91_spill] sm:$0xff]  ;;  %v8814_v24 = vld [vmem:[#allocation94_spill] sm:$0xff] }
 0x425   : > { %v8812_v37 = vrot.slane %v4818_v23, 2  ;;  %v8832_v26 = vld [vmem:[#allocation116_spill] sm:$0xff]  ;;  %v8844_v23 = vld [vmem:[#allocation121_spill] sm:$0xff] }
 0x426   : > { %v2064_v8 = vsel %vm682_vm1, %v8801_v30, %v8800_v38  ;;  %v2055_v32 = vsel %vm682_vm1, %v8803_v51, %v8802_v42  ;;  %v2063_v40 = vsel %vm682_vm1, %v8806_v12, %v8805_v44  ;;  %v8809_v38 = vld [vmem:[#allocation92_spill] sm:$0xff]  ;;  %v6682_v51 = vpop.permute.xlu0 %2423 }
 0x427   : > { %v2080_v16 = vsel %vm715_vm2, %v2064_v8, %v8807_v22  ;;  %v2071_v17 = vsel %vm715_vm2, %v2055_v32, %v8808_v19  ;;  %v6675_v30 = vsel %vm748_vm3, %v2072_v29, %v8809_v38  ;;  %v2079_v42 = vsel %vm715_vm2, %v2063_v40, %v8811_v59  ;;  %2605 = vrot.lane.b32.xlu1 %v8812_v37, %s4164_s29  ;;  %v8816_v22 = vld [vmem:[#allocation95_spill] sm:$0xff]  ;;  %v8818_v8 = vld [vmem:[#allocation97_spill] sm:$0xff]  ;;  %v8820_v29 = vld [vmem:[#allocation106_spill] sm:$0xff] }
 0x428   : > { %8810 = vst [vmem:[#allocation45_spill] sm:$0xff] %v6675_v30  ;;  %8813 = vst [vmem:[#allocation46_spill] sm:$0xff] %v6682_v51  ;;  %v6686_v44 = vsel %vm748_vm3, %v2080_v16, %v8814_v24  ;;  %v6690_v19 = vsel %vm748_vm3, %v2071_v17, %v8816_v22  ;;  %v6694_v32 = vsel %vm748_vm3, %v2079_v42, %v8818_v8  ;;  %v8821_v40 = vld [vmem:[#allocation108_spill] sm:$0xff]  ;;  %v8822_v38 = vld [vmem:[#allocation109_spill] sm:$0xff]  ;;  %v6707_v24 = vpop.permute.xlu1 %2429  ;;  %v8825_v42 = vrot.slane %v4822_v43, 2 }
 0x429   : > { %8815 = vst [vmem:[#allocation47_spill] sm:$0xff] %v6686_v44  ;;  %8817 = vst [vmem:[#allocation48_spill] sm:$0xff] %v6690_v19  ;;  %v2010_v59 = vsel %vm682_vm1, %v4742_v46, %v8820_v29  ;;  %v2018_v12 = vsel %vm682_vm1, %v4831_v6, %v8821_v40  ;;  %v2009_v16 = vsel %vm682_vm1, %v4756_v36, %v8822_v38  ;;  %v8823_v37 = vld [vmem:[#allocation110_spill] sm:$0xff]  ;;  %v8826_v22 = vld [vmem:[#allocation111_spill] sm:$0xff] }
 0x42a   : > { %8819 = vst [vmem:[#allocation49_spill] sm:$0xff] %v6694_v32  ;;  %v2026_v17 = vsel %vm715_vm2, %v2010_v59, %v8823_v37  ;;  %8824 = vst [vmem:[#allocation50_spill] sm:$0xff] %v6707_v24  ;;  %2603 = vrot.lane.b32.xlu0 %v8825_v42, %s4164_s29  ;;  %v8827_v8 = vld [vmem:[#allocation24_spill] sm:$0xff]  ;;  %v8829_v44 = vld [vmem:[#allocation113_spill] sm:$0xff] }
 0x42b   : > { %v2017_v29 = vsel %vm682_vm1, %v8827_v8, %v8826_v22  ;;  %v8828_v32 = vld [vmem:[#allocation112_spill] sm:$0xff]  ;;  %v2025_v19 = vsel %vm715_vm2, %v2009_v16, %v8829_v44  ;;  %v8830_v38 = vld [vmem:[#allocation114_spill] sm:$0xff]  ;;  %v8831_v59 = vld [vmem:[#allocation115_spill] sm:$0xff] }
 0x42c   : > { %v2034_v40 = vsel %vm715_vm2, %v2018_v12, %v8828_v32  ;;  %v6721_v30 = vsel %vm748_vm3, %v2026_v17, %v8830_v38  ;;  %v2033_v37 = vsel %vm715_vm2, %v2017_v29, %v8831_v59  ;;  %v8834_v43 = vld [vmem:[#allocation117_spill] sm:$0xff]  ;;  %v8835_v24 = vld [vmem:[#allocation118_spill] sm:$0xff]  ;;  %v8836_v32 = vrot.slane %v4742_v46, 4  ;;  %v6740_v17 = vpop.permute.xlu0 %2427  ;;  %v8840_v29 = vld [vmem:[#allocation119_spill] sm:$0xff] }
 0x42d   : > { %v6727_v42 = vsel %vm748_vm3, %v2034_v40, %v8832_v26  ;;  %v6731_v22 = vsel %vm748_vm3, %v2025_v19, %v8834_v43  ;;  %v8837_v12 = vld [vmem:[#allocation25_spill] sm:$0xff]  ;;  %8839 = vst [vmem:[#allocation52_spill] sm:$0xff] %v6740_v17  ;;  %v6744_v38 = vsel %vm748_vm3, %v2033_v37, %v8840_v29  ;;  %v8842_v26 = vld [vmem:[#allocation120_spill] sm:$0xff]  ;;  %v8843_v40 = vrot.slane %v4831_v6, 4  ;;  %v8847_v17 = vld [vmem:[#allocation123_spill] sm:$0xff] }
 0x42e   : > { %8833 = vst [vmem:[#allocation51_spill] sm:$0xff] %v6727_v42  ;;  %v2058_v44 = vsel %vm682_vm1, %v8836_v32, %v8835_v24  ;;  %v8838_v16 = vrot.slane %v8837_v12, 2  ;;  %8841 = vst [vmem:[#allocation53_spill] sm:$0xff] %v6744_v38  ;;  %v4167_v19 = vmov 1983009808   ;;  %v3353_v42 = vlaneseq  ;;  %v8849_v38 = vld [vmem:[#allocation124_spill] sm:$0xff] }
 0x42f   : > { %v2066_v43 = vsel %vm682_vm1, %v8843_v40, %v8842_v26  ;;  %v3351_v59 = vunpack.c.l.s4 %v4167_v19  ;;  %v8845_v24 = vrot.slane %v4756_v36, 4  ;;  %v8848_v37 = vrot.slane %v8827_v8, 4  ;;  %v6762_v26 = vpop.permute.xlu1 %2433  ;;  %v8851_v40 = vld [vmem:[#allocation26_spill] sm:$0xff]  ;;  %v8853_v51 = vld [vmem:[#allocation125_spill] sm:$0xff] }
 0x430   : > { %2609 = vrot.lane.b32.xlu1 %v8838_v16, %s4164_s29  ;;  %v8846_v16 = vld [vmem:[#allocation122_spill] sm:$0xff]  ;;  %v2082_v41 = vsel %vm715_vm2, %v2066_v43, %v8849_v38  ;;  %8850 = vst [vmem:[#allocation54_spill] sm:$0xff] %v6762_v26  ;;  %v8852_v19 = vrot.slane %v8851_v40, 2  ;;  %v8860_v43 = vld [vmem:[#allocation129_spill] sm:$0xff]  ;;  %v8863_v40 = vld [vmem:[#allocation196_spill] sm:$0xff]  ;;  %v8878_v26 = vrot.slane %v4756_v36, 1 }
 0x431   : > { %v2057_v32 = vsel %vm682_vm1, %v8845_v24, %v8844_v23  ;;  %v2074_v12 = vsel %vm715_vm2, %v2058_v44, %v8846_v16  ;;  %v2065_v29 = vsel %vm682_vm1, %v8848_v37, %v8847_v17  ;;  %v8854_v24 = vld [vmem:[#allocation126_spill] sm:$0xff]  ;;  %v8856_v16 = vld [vmem:[#allocation127_spill] sm:$0xff]  ;;  %v8858_v17 = vld [vmem:[#allocation128_spill] sm:$0xff] }
 0x432   : > { %2607 = vrot.lane.b32.xlu0 %v8852_v19, %s4164_s29  ;;  %v2073_v23 = vsel %vm715_vm2, %v2057_v32, %v8853_v51  ;;  %v6771_v44 = vsel %vm748_vm3, %v2074_v12, %v8854_v24  ;;  %v6775_v49 = vsel %vm715_vm2, %v2065_v29, %v8856_v16  ;;  %v6779_v38 = vsel %vm748_vm3, %v2082_v41, %v8858_v17  ;;  %v8865_v32 = vld [vmem:[#allocation197_spill] sm:$0xff]  ;;  %v8867_v16 = vld [vmem:[#allocation198_spill] sm:$0xff] }
 0x433   : > { %8855 = vst [vmem:[#allocation55_spill] sm:$0xff] %v6771_v44  ;;  %8857 = vst [vmem:[#allocation56_spill] sm:$0xff] %v6775_v49  ;;  %v6783_v37 = vsel %vm748_vm3, %v2073_v23, %v8860_v43  ;;  %v8862_v19 = vrot.slane %v4653_v7, 1  ;;  %v8864_v12 = vrot.slane %v4658_v45, 1  ;;  %v8866_v29 = vrot.slane %v4677_v27, 1  ;;  %v6800_v23 = vpop.permute.xlu0 %2431  ;;  %v8871_v49 = vld [vmem:[#allocation199_spill] sm:$0xff] }
 0x434   : > { %8859 = vst [vmem:[#allocation57_spill] sm:$0xff] %v6779_v38  ;;  %8861 = vst [vmem:[#allocation58_spill] sm:$0xff] %v6783_v37  ;;  %v8868_v17 = vrot.slane %v4893_v10, 3  ;;  %v8870_v43 = vrot.slane %v4682_v15, 1  ;;  %v8873_v38 = vld [vmem:[#allocation200_spill] sm:$0xff]  ;;  %v3354_v37 = vshrl.u32 %v3353_v42, 7 }
 0x435   : > { %v2836_v51 = vsel %vm682_vm1, %v8863_v40, %v8862_v19  ;;  %v2835_v24 = vsel %vm682_vm1, %v8865_v32, %v8864_v12  ;;  %v2838_v41 = vsel %vm682_vm1, %v8867_v16, %v8866_v29  ;;  %8869 = vst [vmem:[#allocation59_spill] sm:$0xff] %v6800_v23  ;;  %v8872_v19 = vrot.slane %v4702_v56, 1  ;;  %v8875_v16 = vld [vmem:[#allocation201_spill] sm:$0xff]  ;;  %v8877_v10 = vld [vmem:[#allocation202_spill] sm:$0xff] }
 0x436   : > { %2629 = vrot.lane.b32.xlu1 %v8868_v17, %s4165_s16  ;;  %v2837_v40 = vsel %vm682_vm1, %v8871_v49, %v8870_v43  ;;  %v3352_v32 = vunpack.c.0.s8 %v3351_v59  ;;  %v8874_v29 = vrot.slane %v4712_v13, 1  ;;  %v8876_v17 = vrot.slane %v4742_v46, 1  ;;  %v8879_v49 = vld [vmem:[#allocation203_spill] sm:$0xff]  ;;  %v6826_v59 = vpop.permute.xlu1 %2437  ;;  %v8887_v36 = vld [vmem:[#allocation206_spill] sm:$0xff] }
 0x437   : > { %v2840_v12 = vsel %vm682_vm1, %v8873_v38, %v8872_v19  ;;  %v2841_v43 = vsel %vm682_vm1, %v8879_v49, %v8878_v26  ;;  %v8880_v56 = vrot.slane %v4707_v52, 1  ;;  %v8881_v38 = vld [vmem:[#allocation204_spill] sm:$0xff]  ;;  %8882 = vst [vmem:[#allocation60_spill] sm:$0xff] %v6826_v59  ;;  %v8883_v19 = vrot.slane %v4669_v58, 3  ;;  %v8889_v52 = vld [vmem:[#allocation207_spill] sm:$0xff] }
 0x438   : > { %v2839_v44 = vsel %vm682_vm1, %v8875_v16, %v8874_v29  ;;  %v2842_v23 = vsel %vm682_vm1, %v8877_v10, %v8876_v17  ;;  %v8884_v29 = vrot.slane %v4717_v3, 1  ;;  %v8885_v16 = vld [vmem:[#allocation205_spill] sm:$0xff]  ;;  %v8886_v17 = vrot.slane %v4751_v11, 1  ;;  %v8891_v59 = vld [vmem:[#allocation208_spill] sm:$0xff]  ;;  %v8895_v11 = vld [vmem:[#allocation210_spill] sm:$0xff] }
 0x439   : > { %v2844_v42 = vsel %vm682_vm1, %v8881_v38, %v8880_v56  ;;  %2627 = vrot.lane.b32.xlu0 %v8883_v19, %s4165_s16  ;;  %v8888_v49 = vrot.slane %v4764_v62, 1  ;;  %v8890_v38 = vrot.slane %v4795_v9, 1  ;;  %v8892_v58 = vrot.slane %v4803_v33, 1  ;;  %v8893_v3 = vld [vmem:[#allocation209_spill] sm:$0xff]  ;;  %v8897_v62 = vld [vmem:[#allocation211_spill] sm:$0xff] }
 0x43a   : > { %v2843_v10 = vsel %vm682_vm1, %v8885_v16, %v8884_v29  ;;  %v2846_v26 = vsel %vm682_vm1, %v8887_v36, %v8886_v17  ;;  %v8894_v16 = vrot.slane %v4831_v6, 1  ;;  %v8896_v17 = vrot.slane %v8827_v8, 1  ;;  %v8902_v6 = vld [vmem:[#allocation214_spill] sm:$0xff] }
 0x43b   : > { %v2845_v56 = vsel %vm682_vm1, %v8889_v52, %v8888_v49  ;;  %v2848_v19 = vsel %vm682_vm1, %v8891_v59, %v8890_v38  ;;  %v2847_v29 = vsel %vm682_vm1, %v8893_v3, %v8892_v58  ;;  %v8898_v49 = vld [vmem:[#allocation212_spill] sm:$0xff]  ;;  %v8899_v59 = vrot.slane %v4688_v54, 3  ;;  %v6864_v38 = vpop.permute.xlu0 %2435  ;;  %v8901_v58 = vld [vmem:[#allocation213_spill] sm:$0xff]  ;;  %v8908_v54 = vld [vmem:[#allocation219_spill] sm:$0xff] }
 0x43c   : > { %v2850_v36 = vsel %vm682_vm1, %v8895_v11, %v8894_v16  ;;  %v2849_v52 = vsel %vm682_vm1, %v8897_v62, %v8896_v17  ;;  %v2852_v9 = vsel %vm715_vm2, %v2836_v51, %v8898_v49  ;;  %8900 = vst [vmem:[#allocation61_spill] sm:$0xff] %v6864_v38  ;;  %v2851_v3 = vsel %vm715_vm2, %v2835_v24, %v8901_v58  ;;  %v8903_v16 = vld [vmem:[#allocation215_spill] sm:$0xff]  ;;  %v8905_v62 = vld [vmem:[#allocation216_spill] sm:$0xff]  ;;  %v8906_v17 = vld [vmem:[#allocation217_spill] sm:$0xff]  ;;  %v6882_v58 = vpop.permute.xlu1 %2441 }
 0x43d   : > { %2633 = vrot.lane.b32.xlu1 %v8899_v59, %s4165_s16  ;;  %v2854_v11 = vsel %vm715_vm2, %v2838_v41, %v8902_v6  ;;  %v2853_v8 = vsel %vm715_vm2, %v2837_v40, %v8903_v16  ;;  %v6872_v33 = vsub.s32 %v3352_v32, %v3354_v37  ;;  %v2856_v51 = vsel %vm715_vm2, %v2840_v12, %v8905_v62  ;;  %v8907_v59 = vld [vmem:[#allocation218_spill] sm:$0xff]  ;;  %v8910_v37 = vld [vmem:[#allocation220_spill] sm:$0xff]  ;;  %v8911_v40 = vld [vmem:[#allocation221_spill] sm:$0xff] }
 0x43e   : > { %v2855_v49 = vsel %vm715_vm2, %v2839_v44, %v8906_v17  ;;  %v2858_v38 = vsel %vm715_vm2, %v2842_v23, %v8907_v59  ;;  %v2857_v24 = vsel %vm715_vm2, %v2841_v43, %v8908_v54  ;;  %v8909_v6 = vrot.slane %v4694_v53, 3  ;;  %v8912_v32 = vld [vmem:[#allocation222_spill] sm:$0xff]  ;;  %v8913_v16 = vld [vmem:[#allocation228_spill] sm:$0xff]  ;;  %v8914_v62 = vld [vmem:[#allocation223_spill] sm:$0xff] }
 0x43f   : > { %8904 = vst [vmem:[#allocation63_spill] sm:$0xff] %v6872_v33  ;;  %v2860_v41 = vsel %vm715_vm2, %v2844_v42, %v8910_v37  ;;  %v2859_v12 = vsel %vm715_vm2, %v2843_v10, %v8911_v40  ;;  %v2862_v44 = vsel %vm715_vm2, %v2846_v26, %v8912_v32  ;;  %v2868_v23 = vsel %vm748_vm3, %v2852_v9, %v8913_v16  ;;  %v8915_v43 = vld [vmem:[#allocation224_spill] sm:$0xff]  ;;  %v8916_v59 = vld [vmem:[#allocation229_spill] sm:$0xff]  ;;  %v8917_v53 = vld [vmem:[#allocation230_spill] sm:$0xff]  ;;  %v6906_v26 = vpop.permute.xlu0 %2439 }
 0x440   : > { %2631 = vrot.lane.b32.xlu0 %v8909_v6, %s4165_s16  ;;  %v2861_v54 = vsel %vm715_vm2, %v2845_v56, %v8914_v62  ;;  %v2864_v17 = vsel %vm715_vm2, %v2848_v19, %v8915_v43  ;;  %v2867_v6 = vsel %vm748_vm3, %v2851_v3, %v8916_v59  ;;  %v2870_v42 = vsel %vm748_vm3, %v2854_v11, %v8917_v53  ;;  %v8919_v37 = vld [vmem:[#allocation225_spill] sm:$0xff]  ;;  %v8920_v40 = vld [vmem:[#allocation226_spill] sm:$0xff]  ;;  %v8921_v32 = vld [vmem:[#allocation231_spill] sm:$0xff] }
 0x441   : > { %v8918_v10 = vrot.slane %v4722_v39, 3  ;;  %v2863_v9 = vsel %vm715_vm2, %v2847_v29, %v8919_v37  ;;  %v2866_v56 = vsel %vm715_vm2, %v2850_v36, %v8920_v40  ;;  %v2869_v19 = vsel %vm748_vm3, %v2853_v8, %v8921_v32  ;;  %v8922_v16 = vld [vmem:[#allocation232_spill] sm:$0xff]  ;;  %v8923_v62 = vld [vmem:[#allocation227_spill] sm:$0xff]  ;;  %v8924_v43 = vld [vmem:[#allocation233_spill] sm:$0xff]  ;;  %v6922_v29 = vpop.permute.xlu1 %2445 }
 0x442   : > { %v2872_v3 = vsel %vm748_vm3, %v2856_v51, %v8922_v16  ;;  %v2865_v53 = vsel %vm715_vm2, %v2849_v52, %v8923_v62  ;;  %v3095_v11 = vrot.slane %v2868_v23, 7  ;;  %v2871_v59 = vsel %vm748_vm3, %v2855_v49, %v8924_v43  ;;  %v8927_v40 = vld [vmem:[#allocation235_spill] sm:$0xff]  ;;  %v8928_v32 = vld [vmem:[#allocation236_spill] sm:$0xff]  ;;  %v8929_v49 = vld [vmem:[#allocation237_spill] sm:$0xff] }
 0x443   : > { %2637 = vrot.lane.b32.xlu1 %v8918_v10, %s4165_s16  ;;  %v8925_v10 = vld [vmem:[#allocation234_spill] sm:$0xff]  ;;  %v8926_v36 = vrot.slane %v4732_v60, 3  ;;  %v3091_v8 = vrot.slane %v2867_v6, 7  ;;  %v3103_v37 = vrot.slane %v2870_v42, 7  ;;  %v2873_v51 = vsel %vm748_vm3, %v2857_v24, %v8927_v40  ;;  %v6938_v6 = vpop.permute.xlu0 %2443  ;;  %v8932_v24 = vld [vmem:[#allocation239_spill] sm:$0xff] }
 0x444   : > { %v2874_v39 = vsel %vm748_vm3, %v2858_v38, %v8925_v10  ;;  %v2876_v52 = vsel %vm748_vm3, %v2860_v41, %v8928_v32  ;;  %v3099_v23 = vrot.slane %v2869_v19, 7  ;;  %v3111_v16 = vrot.slane %v2872_v3, 7  ;;  %v8930_v38 = vld [vmem:[#allocation238_spill] sm:$0xff]  ;;  %v8933_v41 = vld [vmem:[#allocation240_spill] sm:$0xff]  ;;  %v8934_v32 = vld [vmem:[#allocation241_spill] sm:$0xff] }
 0x445   : > { %2635 = vrot.lane.b32.xlu0 %v8926_v36, %s4165_s16  ;;  %v2875_v62 = vsel %vm748_vm3, %v2859_v12, %v8929_v49  ;;  %v2878_v43 = vsel %vm748_vm3, %v2862_v44, %v8930_v38  ;;  %v8931_v10 = vrot.slane %v4774_v14, 3  ;;  %v3107_v42 = vrot.slane %v2871_v59, 7  ;;  %v6950_v38 = vpop.permute.xlu1 %2449 }
 0x446   : > { %v3119_v36 = vrot.slane %v2874_v39, 7  ;;  %v2877_v40 = vsel %vm748_vm3, %v2861_v54, %v8932_v24  ;;  %v2880_v19 = vsel %vm748_vm3, %v2864_v17, %v8933_v41  ;;  %v6946_v12 = vsel %vm3219_vm4, %v6450_v57, %v3095_v11 }
 0x447   : > { %2641 = vrot.lane.b32.xlu1 %v8931_v10, %s4165_s16  ;;  %v3115_v3 = vrot.slane %v2873_v51, 7  ;;  %v3127_v44 = vrot.slane %v2876_v52, 7  ;;  %v2879_v49 = vsel %vm748_vm3, %v2863_v9, %v8934_v32  ;;  %v8935_v39 = vrot.slane %v4787_v50, 3  ;;  %v8945_v32 = vld [vmem:[#allocation246_spill] sm:$0xff] }
 0x448   : > { %v3220_v54 = vsel %vm3219_vm4, %v6454_v55, %v3091_v8  ;;  %v6959_v17 = vsel %vm3219_vm4, %v6539_v5, %v3103_v37  ;;  %v3123_v57 = vrot.slane %v2875_v62, 7  ;;  %v3135_v11 = vrot.slane %v2878_v43, 7  ;;  %v6972_v55 = vpop.permute.xlu0 %2447  ;;  %v8938_v37 = vld [vmem:[#allocation244_spill] sm:$0xff] }
 0x449   : > { %2639 = vrot.lane.b32.xlu0 %v8935_v39, %s4165_s16  ;;  %v6963_v59 = vsel %vm3219_vm4, %v6549_v47, %v3099_v23  ;;  %v6967_v9 = vsel %vm3219_vm4, %v6630_v21, %v3111_v16  ;;  %v3131_v51 = vrot.slane %v2877_v40, 7  ;;  %v3143_v52 = vrot.slane %v2880_v19, 7 }
 0x44a   : > { %v8936_v10 = vrot.slane %v4727_v61, 3  ;;  %v6976_v5 = vsel %vm3219_vm4, %v6640_v34, %v3107_v42  ;;  %v6980_v47 = vsel %vm3219_vm4, %v6721_v30, %v3119_v36  ;;  %v3139_v8 = vrot.slane %v2879_v49, 7  ;;  %v8939_v34 = vld [vmem:[#allocation242_spill] sm:$0xff]  ;;  %v2470_v42 = vpop.permute.xlu1 %2469 }
 0x44b   : > { %v8937_v21 = vrot.slane %v4653_v7, 5  ;;  %v6988_v16 = vsel %vm3219_vm4, %v6731_v22, %v3115_v3  ;;  %v6992_v62 = vsel %vm3219_vm4, %v6458_v35, %v3127_v44  ;;  %v6996_v43 = vsel %vm748_vm3, %v2866_v56, %v8939_v34  ;;  %v8942_v56 = vld [vmem:[#allocation245_spill] sm:$0xff] }
 0x44c   : > { %2645 = vrot.lane.b32.xlu1 %v8936_v10, %s4165_s16  ;;  %v8940_v7 = vrot.slane %v4737_v25, 3  ;;  %v7005_v22 = vsel %vm3219_vm4, %v6462_v31, %v3123_v57  ;;  %v7009_v35 = vsel %vm3219_vm4, %v6545_v20, %v3135_v11  ;;  %v8941_v36 = vrot.slane %v4658_v45, 5  ;;  %v2468_v19 = vpop.permute.xlu0 %2467 }
 0x44d   : > { %v2884_v23 = vsel %vm682_vm1, %v8938_v37, %v8937_v21  ;;  %v7018_v40 = vsel %vm3219_vm4, %v6557_v1, %v3131_v51  ;;  %v7022_v41 = vsel %vm3219_vm4, %v6636_v4, %v3143_v52  ;;  %v8943_v45 = vrot.slane %v4779_v2, 3  ;;  %v8947_v52 = vld [vmem:[#allocation18_spill] sm:$0xff]  ;;  %v8951_v37 = vld [vmem:[#allocation5_spill] sm:$0xff] }
 0x44e   : > { %v2900_v30 = vsel %vm715_vm2, %v2884_v23, %v6588_v28  ;;  %2643 = vrot.lane.b32.xlu0 %v8940_v7, %s4165_s16  ;;  %v2883_v24 = vsel %vm682_vm1, %v8942_v56, %v8941_v36  ;;  %v7031_v3 = vsel %vm3219_vm4, %v6648_v0, %v3139_v8  ;;  %v3151_v1 = vrot.slane %v6996_v43, 7  ;;  %v2474_v51 = vpop.permute.xlu1 %2473  ;;  %v8950_v8 = vld [vmem:[#allocation247_spill] sm:$0xff]  ;;  %v8953_v23 = vld [vmem:[#allocation248_spill] sm:$0xff]  ;;  %v8957_v36 = vld [vmem:[#allocation250_spill] sm:$0xff] }
 0x44f   : > { %v2916_v28 = vsel %vm748_vm3, %v2900_v30, %v2470_v42  ;;  %v2899_v31 = vsel %vm715_vm2, %v2883_v24, %v6622_v63  ;;  %v8944_v44 = vrot.slane %v4677_v27, 5  ;;  %v8946_v63 = vld [vmem:[#allocation243_spill] sm:$0xff]  ;;  %v8948_v27 = vrot.slane %v8947_v52, 3  ;;  %v8955_v30 = vld [vmem:[#allocation249_spill] sm:$0xff]  ;;  %v8958_v56 = vld [vmem:[#allocation46_spill] sm:$0xff] }
 0x450   : > { %v3096_v20 = vrot.slane %v2916_v28, 7  ;;  %2649 = vrot.lane.b32.xlu1 %v8943_v45, %s4165_s16  ;;  %v2915_v49 = vsel %vm748_vm3, %v2899_v31, %v2468_v19  ;;  %v7041_v39 = vsel %vm748_vm3, %v2865_v53, %v8946_v63  ;;  %v8949_v10 = vrot.slane %v4682_v15, 5  ;;  %v8959_v28 = vld [vmem:[#allocation258_spill] sm:$0xff]  ;;  %v8960_v45 = vld [vmem:[#allocation21_spill] sm:$0xff]  ;;  %v2472_v19 = vpop.permute.xlu0 %2471 }
 0x451   : > { %v2886_v4 = vsel %vm682_vm1, %v8945_v32, %v8944_v44  ;;  %v3092_v11 = vrot.slane %v2915_v49, 7  ;;  %v8952_v53 = vrot.slane %v8951_v37, 5  ;;  %v8956_v7 = vrot.slane %v4742_v46, 5  ;;  %v8962_v44 = vld [vmem:[#allocation13_spill] sm:$0xff] }
 0x452   : > { %v2902_v57 = vsel %vm715_vm2, %v2886_v4, %v6650_v48  ;;  %v3225_v0 = vsel %vm3219_vm4, %v6495_v18, %v3096_v20  ;;  %2647 = vrot.lane.b32.xlu0 %v8948_v27, %s4165_s16  ;;  %v2885_v21 = vsel %vm682_vm1, %v8950_v8, %v8949_v10  ;;  %v8954_v48 = vrot.slane %v4712_v13, 5  ;;  %v8964_v4 = vld [vmem:[#allocation251_spill] sm:$0xff]  ;;  %v8967_v10 = vld [vmem:[#allocation252_spill] sm:$0xff]  ;;  %v8968_v8 = vld [vmem:[#allocation50_spill] sm:$0xff] }
 0x453   : > { %v2888_v34 = vsel %vm682_vm1, %v8953_v23, %v8952_v53  ;;  %v2918_v42 = vsel %vm748_vm3, %v2902_v57, %v2474_v51  ;;  %v2890_v15 = vsel %vm682_vm1, %v8957_v36, %v8956_v7  ;;  %v2901_v24 = vsel %vm715_vm2, %v2885_v21, %v8958_v56  ;;  %v8965_v51 = vld [vmem:[#allocation6_spill] sm:$0xff]  ;;  %v8969_v37 = vld [vmem:[#allocation41_spill] sm:$0xff] }
 0x454   : > { %v2887_v18 = vsel %vm682_vm1, %v8955_v30, %v8954_v48  ;;  %v3221_v31 = vsel %vm3219_vm4, %v8959_v28, %v3092_v11  ;;  %v3104_v20 = vrot.slane %v2918_v42, 7  ;;  %v8961_v13 = vrot.slane %v8960_v45, 3  ;;  %v2478_v48 = vpop.permute.xlu1 %2477  ;;  %v8970_v30 = vld [vmem:[#allocation22_spill] sm:$0xff] }
 0x455   : > { %v8963_v32 = vrot.slane %v8962_v44, 5  ;;  %v3365_v49 = vcombine.low %v6946_v12, %v3225_v0  ;;  %v3348_v63 = vcombine.low %v3220_v54, %v3221_v31  ;;  %v2917_v57 = vsel %vm748_vm3, %v2901_v24, %v2472_v19  ;;  %v8972_v12 = vld [vmem:[#allocation7_spill] sm:$0xff]  ;;  %v8974_v0 = vld [vmem:[#allocation253_spill] sm:$0xff]  ;;  %v8975_v24 = vld [vmem:[#allocation12_spill] sm:$0xff] }
 0x456   : > { %2653 = vrot.lane.b32.xlu1 %v8961_v13, %s4165_s16  ;;  %v8966_v27 = vrot.slane %v8965_v51, 5  ;;  %v2904_v21 = vsel %vm715_vm2, %v2888_v34, %v8968_v8  ;;  %v3233_v53 = vsel %vm3219_vm4, %v8969_v37, %v3104_v20  ;;  %v3100_v23 = vrot.slane %v2917_v57, 7  ;;  %v8977_v31 = vld [vmem:[#allocation254_spill] sm:$0xff]  ;;  %v8978_v13 = vld [vmem:[#allocation52_spill] sm:$0xff]  ;;  %v8979_v44 = vld [vmem:[#allocation43_spill] sm:$0xff] }
 0x457   : > { %v2889_v46 = vsel %vm682_vm1, %v8964_v4, %v8963_v32  ;;  %v8971_v42 = vrot.slane %v8970_v30, 3  ;;  %v8973_v54 = vrot.slane %v8972_v12, 5  ;;  %v3356_v36 = vrot.slane %v3348_v63, %v6872_v33  ;;  %v8980_v57 = vld [vmem:[#allocation25_spill] sm:$0xff]  ;;  %v2476_v63 = vpop.permute.xlu0 %2475  ;;  %v8988_v12 = vld [vmem:[#allocation54_spill] sm:$0xff] }
 0x458   : > { %v2892_v11 = vsel %vm682_vm1, %v8967_v10, %v8966_v27  ;;  %v3399_v56 = vcombine.low %v6959_v17, %v3233_v53  ;;  %v2920_v34 = vsel %vm748_vm3, %v2904_v21, %v2478_v48  ;;  %v8976_v28 = vrot.slane %v8975_v24, 5  ;;  %v8982_v17 = vld [vmem:[#allocation14_spill] sm:$0xff]  ;;  %v8984_v10 = vld [vmem:[#allocation255_spill] sm:$0xff] }
 0x459   : > { %2651 = vrot.lane.b32.xlu0 %v8971_v42, %s4165_s16  ;;  %v2891_v7 = vsel %vm682_vm1, %v8974_v0, %v8973_v54  ;;  %v2903_v19 = vsel %vm715_vm2, %v2887_v18, %v8978_v13  ;;  %v3229_v32 = vsel %vm3219_vm4, %v8979_v44, %v3100_v23  ;;  %v3112_v4 = vrot.slane %v2920_v34, 7  ;;  %v8985_v53 = vld [vmem:[#allocation19_spill] sm:$0xff]  ;;  %v8987_v23 = vld [vmem:[#allocation256_spill] sm:$0xff]  ;;  %v8989_v0 = vld [vmem:[#allocation45_spill] sm:$0xff] }
 0x45a   : > { %v2894_v20 = vsel %vm682_vm1, %v8977_v31, %v8976_v28  ;;  %v8981_v51 = vrot.slane %v8980_v57, 3  ;;  %v8983_v27 = vrot.slane %v8982_v17, 5  ;;  %v3373_v21 = vrot.slane %v3365_v49, %v6872_v33  ;;  %v2482_v28 = vpop.permute.xlu1 %2481  ;;  %v8990_v31 = vld [vmem:[#allocation26_spill] sm:$0xff]  ;;  %v8995_v17 = vld [vmem:[#allocation59_spill] sm:$0xff] }
 0x45b   : > { %v3382_v37 = vcombine.low %v6963_v59, %v3229_v32  ;;  %v2919_v18 = vsel %vm748_vm3, %v2903_v19, %v2476_v63  ;;  %v8986_v48 = vrot.slane %v8985_v53, 5  ;;  %v2906_v54 = vsel %vm715_vm2, %v2890_v15, %v8988_v12  ;;  %v8992_v32 = vld [vmem:[#allocation20_spill] sm:$0xff]  ;;  %v8994_v63 = vld [vmem:[#allocation257_spill] sm:$0xff]  ;;  %v8999_v12 = vld [vmem:[#allocation23_spill] sm:$0xff] }
 0x45c   : > { %2657 = vrot.lane.b32.xlu1 %v8981_v51, %s4165_s16  ;;  %v2893_v8 = vsel %vm682_vm1, %v8984_v10, %v8983_v27  ;;  %v3241_v34 = vsel %vm3219_vm4, %v8989_v0, %v3112_v4  ;;  %v3108_v24 = vrot.slane %v2919_v18, 7  ;;  %v8991_v49 = vrot.slane %v8990_v31, 3  ;;  %v8996_v27 = vld [vmem:[#allocation48_spill] sm:$0xff] }
 0x45d   : > { %v2896_v42 = vsel %vm682_vm1, %v8987_v23, %v8986_v48  ;;  %v3975_v59 = vcombine.low %v3356_v36, %v3373_v21  ;;  %v3407_v13 = vrot.slane %v3399_v56, %v6872_v33  ;;  %v3390_v19 = vrot.slane %v3382_v37, %v6872_v33  ;;  %v8997_v36 = vld [vmem:[#allocation27_spill] sm:$0xff]  ;;  %v2480_v21 = vpop.permute.xlu0 %2479 }
 0x45e   : > { %2655 = vrot.lane.b32.xlu0 %v8991_v49, %s4165_s16  ;;  %v2922_v44 = vsel %vm748_vm3, %v2906_v54, %v2482_v28  ;;  %v8993_v51 = vrot.slane %v8992_v32, 5  ;;  %v2905_v4 = vsel %vm715_vm2, %v2889_v46, %v8995_v17  ;;  %v3237_v10 = vsel %vm3219_vm4, %v8996_v27, %v3108_v24  ;;  %v9001_v46 = vld [vmem:[#allocation38_spill] sm:$0xff]  ;;  %v9002_v28 = vld [vmem:[#allocation60_spill] sm:$0xff]  ;;  %v9003_v49 = vld [vmem:[#allocation55_spill] sm:$0xff] }
 0x45f   : > { %v3120_v18 = vrot.slane %v2922_v44, 7  ;;  %v8998_v56 = vrot.slane %v8997_v36, 4  ;;  %v3977_v37 = vcombine.low %v3390_v19, %v3407_v13  ;;  %v3433_v53 = vcombine.low %v6967_v9, %v3241_v34  ;;  %v9004_v13 = vld [vmem:[#allocation2_spill] sm:$0xff]  ;;  %v9006_v17 = vld [vmem:[#allocation24_spill] sm:$0xff] }
 0x460   : > { %v2895_v15 = vsel %vm682_vm1, %v8994_v63, %v8993_v51  ;;  %v3416_v48 = vcombine.low %v6976_v5, %v3237_v10  ;;  %v2921_v23 = vsel %vm748_vm3, %v2905_v4, %v2480_v21  ;;  %v9000_v54 = vrot.slane %v8999_v12, 5  ;;  %v2486_v51 = vpop.permute.xlu1 %2485  ;;  %v9008_v4 = vld [vmem:[#allocation40_spill] sm:$0xff] }
 0x461   : > { %2677 = vrot.lane.b32.xlu1 %v8998_v56, %s4166_s8  ;;  %v2908_v24 = vsel %vm715_vm2, %v2892_v11, %v9002_v28  ;;  %v3249_v44 = vsel %vm3219_vm4, %v9003_v49, %v3120_v18  ;;  %v3116_v32 = vrot.slane %v2921_v23, 7  ;;  %v9005_v9 = vrot.slane %v9004_v13, 4  ;;  %v9009_v18 = vld [vmem:[#allocation58_spill] sm:$0xff]  ;;  %v9013_v49 = vld [vmem:[#allocation259_spill] sm:$0xff] }
 0x462   : > { %v2898_v0 = vsel %vm682_vm1, %v9001_v46, %v9000_v54  ;;  %v3630_v5 = vrot.slane %v3975_v59, %v6872_v33  ;;  %v3644_v34 = vrot.slane %v3977_v37, %v6872_v33  ;;  %v3424_v19 = vrot.slane %v3416_v48, %v6872_v33  ;;  %v9010_v59 = vld [vmem:[#allocation3_spill] sm:$0xff]  ;;  %v2484_v37 = vpop.permute.xlu0 %2483  ;;  %v9012_v48 = vld [vmem:[#allocation61_spill] sm:$0xff] }
 0x463   : > { %2675 = vrot.lane.b32.xlu0 %v9005_v9, %s4166_s8  ;;  %v2924_v63 = vsel %vm748_vm3, %v2908_v24, %v2486_v51  ;;  %v9007_v11 = vrot.slane %v9006_v17, 5  ;;  %v3467_v10 = vcombine.low %v6980_v47, %v3249_v44  ;;  %v3245_v56 = vsel %vm3219_vm4, %v9009_v18, %v3116_v32  ;;  %v9014_v51 = vld [vmem:[#allocation4_spill] sm:$0xff] }
 0x464   : > { %v3128_v21 = vrot.slane %v2924_v63, 7  ;;  %v9011_v23 = vrot.slane %v9010_v59, 4  ;;  %v2907_v12 = vsel %vm715_vm2, %v2891_v7, %v9012_v48  ;;  %v3652_v54 = vcombine.low %v3630_v5, %v3644_v34  ;;  %v2490_v32 = vpop.permute.xlu1 %2489 }
 0x465   : > { %v7164_v27 = vsel %vm682_vm1, %v9008_v4, %v9007_v11  ;;  %v3653_v46 = vcombine.high %v3630_v5, %v3644_v34  ;;  %v3441_v28 = vrot.slane %v3433_v53, %v6872_v33  ;;  %v2910_v24 = vsel %vm715_vm2, %v2894_v20, %v6882_v58  ;;  %v9016_v11 = vld [vmem:[#allocation8_spill] sm:$0xff] }
 0x466   : > { %2681 = vrot.lane.b32.xlu1 %v9011_v23, %s4166_s8  ;;  %v3450_v47 = vcombine.low %v6988_v16, %v3245_v56  ;;  %v3257_v44 = vsel %vm3219_vm4, %v9013_v49, %v3128_v21  ;;  %v2923_v7 = vsel %vm748_vm3, %v2907_v12, %v2484_v37  ;;  %v9015_v53 = vrot.slane %v9014_v51, 4  ;;  %v2488_v18 = vpop.permute.xlu0 %2487 }
 0x467   : > { %v4005_v9 = vpack.c.bf16 %v3653_v46, %v3652_v54  ;;  %v3979_v58 = vcombine.low %v3424_v19, %v3441_v28  ;;  %v3501_v20 = vcombine.low %v6992_v62, %v3257_v44  ;;  %v3124_v5 = vrot.slane %v2923_v7, 7  ;;  %v9018_v62 = vld [vmem:[#allocation260_spill] sm:$0xff]  ;;  %v9020_v54 = vld [vmem:[#allocation42_spill] sm:$0xff] }
 0x468   : > { %2679 = vrot.lane.b32.xlu0 %v9015_v53, %s4166_s8  ;;  %v2909_v34 = vsel %vm715_vm2, %v2893_v8, %v6906_v26  ;;  %v3475_v16 = vrot.slane %v3467_v10, %v6872_v33  ;;  %v3458_v63 = vrot.slane %v3450_v47, %v6872_v33  ;;  %v2926_v17 = vsel %vm748_vm3, %v2910_v24, %v2490_v32  ;;  %v2494_v48 = vpop.permute.xlu1 %2493  ;;  %v9021_v24 = vld [vmem:[#allocation44_spill] sm:$0xff] }
 0x469   : > { %v9017_v4 = vrot.slane %v9016_v11, 4  ;;  %v2912_v19 = vsel %vm715_vm2, %v2896_v42, %v6922_v29  ;;  %3828 = vst [vmem:[%s7180_s18] sm:$0xff] %v4005_v9  ;;  %v3253_v56 = vsel %vm3219_vm4, %v9018_v62, %v3124_v5  ;;  %v3136_v21 = vrot.slane %v2926_v17, 7  ;;  %v9024_v17 = vld [vmem:[#allocation47_spill] sm:$0xff] }
 0x46a   : > { %v2925_v26 = vsel %vm748_vm3, %v2909_v34, %v2488_v18  ;;  %v2911_v8 = vsel %vm715_vm2, %v2895_v15, %v6938_v6  ;;  %v3981_v10 = vcombine.low %v3458_v63, %v3475_v16  ;;  %v3484_v23 = vcombine.low %v7005_v22, %v3253_v56  ;;  %v2492_v44 = vpop.permute.xlu0 %2491 }
 0x46b   : > { %2685 = vrot.lane.b32.xlu1 %v9017_v4, %s4166_s8  ;;  %v3132_v37 = vrot.slane %v2925_v26, 7  ;;  %v9019_v12 = vrot.slane %v4732_v60, 4  ;;  %v3666_v29 = vrot.slane %v3979_v58, %v6872_v33  ;;  %v3509_v42 = vrot.slane %v3501_v20, %v6872_v33 }
 0x46c   : > { %v3265_v46 = vsel %vm3219_vm4, %v9020_v54, %v3136_v21  ;;  %v2928_v28 = vsel %vm748_vm3, %v2912_v19, %v2494_v48  ;;  %v3680_v6 = vrot.slane %v3981_v10, %v6872_v33  ;;  %v3492_v15 = vrot.slane %v3484_v23, %v6872_v33  ;;  %v2498_v34 = vpop.permute.xlu1 %2497  ;;  %v9026_v10 = vld [vmem:[#allocation49_spill] sm:$0xff]  ;;  %v9030_v54 = vld [vmem:[#allocation131_spill] sm:$0xff] }
 0x46d   : > { %2683 = vrot.lane.b32.xlu0 %v9019_v12, %s4166_s8  ;;  %v3535_v22 = vcombine.low %v7009_v35, %v3265_v46  ;;  %v3261_v47 = vsel %vm3219_vm4, %v9021_v24, %v3132_v37  ;;  %v9022_v49 = vrot.slane %v4774_v14, 4  ;;  %v2914_v7 = vsel %vm715_vm2, %v2898_v0, %v6950_v38  ;;  %v9028_v48 = vld [vmem:[#allocation57_spill] sm:$0xff]  ;;  %v9031_v46 = vld [vmem:[#allocation56_spill] sm:$0xff] }
 0x46e   : > { %v3518_v32 = vcombine.low %v7018_v40, %v3261_v47  ;;  %v3144_v53 = vrot.slane %v2928_v28, 7  ;;  %v2927_v9 = vsel %vm748_vm3, %v2911_v8, %v2492_v44  ;;  %v3688_v58 = vcombine.low %v3666_v29, %v3680_v6  ;;  %v2496_v21 = vpop.permute.xlu0 %2495 }
 0x46f   : > { %2689 = vrot.lane.b32.xlu1 %v9022_v49, %s4166_s8  ;;  %v3689_v20 = vcombine.high %v3666_v29, %v3680_v6  ;;  %v3983_v5 = vcombine.low %v3492_v15, %v3509_v42  ;;  %v3543_v35 = vrot.slane %v3535_v22, %v6872_v33  ;;  %v9023_v16 = vrot.slane %v4787_v50, 4  ;;  %v9032_v15 = vld [vmem:[#allocation53_spill] sm:$0xff] }
 0x470   : > { %v3526_v63 = vrot.slane %v3518_v32, %v6872_v33  ;;  %v3273_v38 = vsel %vm3219_vm4, %v9024_v17, %v3144_v53  ;;  %v3140_v40 = vrot.slane %v2927_v9, 7  ;;  %v2930_v0 = vsel %vm748_vm3, %v2914_v7, %v2498_v34  ;;  %v2518_v42 = vpop.permute.xlu1 %2517 }
 0x471   : > { %2687 = vrot.lane.b32.xlu0 %v9023_v16, %s4166_s8  ;;  %v3147_v4 = vrot.slane %v7041_v39, 7  ;;  %v2913_v18 = vsel %vm715_vm2, %v7164_v27, %v6972_v55  ;;  %v4007_v19 = vpack.c.bf16 %v3689_v20, %v3688_v58  ;;  %v3152_v62 = vrot.slane %v2930_v0, 7  ;;  %v9027_v39 = vld [vmem:[#allocation51_spill] sm:$0xff] }
 0x472   : > { %v9025_v56 = vrot.slane %v4727_v61, 4  ;;  %v3985_v26 = vcombine.low %v3526_v63, %v3543_v35  ;;  %v3569_v8 = vcombine.low %v7022_v41, %v3273_v38  ;;  %v3269_v23 = vsel %vm3219_vm4, %v9026_v10, %v3140_v40  ;;  %v2516_v44 = vpop.permute.xlu0 %2515 }
 0x473   : > { %v2929_v37 = vsel %vm748_vm3, %v2913_v18, %v2496_v21  ;;  %v3280_v55 = vsel %vm3219_vm4, %v9027_v39, %v3151_v1  ;;  %3830 = vst [vmem:[%s7180_s18 + $0x10] sm:$0xff] %v4007_v19  ;;  %v3552_v27 = vcombine.low %v7031_v3, %v3269_v23  ;;  %v3281_v12 = vsel %vm3219_vm4, %v9028_v48, %v3152_v62 }
 0x474   : > { %2693 = vrot.lane.b32.xlu1 %v9025_v56, %s4166_s8  ;;  %v3148_v29 = vrot.slane %v2929_v37, 7  ;;  %v9029_v41 = vrot.slane %v4737_v25, 4  ;;  %v2097_v28 = vsel %vm748_vm3, %v9031_v46, %v9030_v54  ;;  %v3702_v43 = vrot.slane %v3983_v5, %v6872_v33  ;;  %v2522_v20 = vpop.permute.xlu1 %2521 }
 0x475   : > { %v3716_v1 = vrot.slane %v3985_v26, %v6872_v33  ;;  %v3603_v6 = vcombine.low %v3280_v55, %v3281_v12  ;;  %v8394_v3 = vrot.slane %v8947_v52, 4  ;;  %v3276_v22 = vsel %vm3219_vm4, %v9032_v15, %v3147_v4 }
 0x476   : > { %2691 = vrot.lane.b32.xlu0 %v9029_v41, %s4166_s8  ;;  %v3560_v24 = vrot.slane %v3552_v27, %v6872_v33  ;;  %v3277_v47 = vsel %vm3219_vm4, %v2097_v28, %v3148_v29  ;;  %v9033_v49 = vrot.slane %v4779_v2, 4  ;;  %v3577_v53 = vrot.slane %v3569_v8, %v6872_v33  ;;  %v2520_v17 = vpop.permute.xlu0 %2519 }
 0x477   : > { %v3724_v7 = vcombine.low %v3702_v43, %v3716_v1  ;;  %v3725_v32 = vcombine.high %v3702_v43, %v3716_v1  ;;  %v3586_v9 = vcombine.low %v3276_v22, %v3277_v47  ;;  %v8393_v58 = vrot.slane %v8960_v45, 4 }
 0x478   : > { %2697 = vrot.lane.b32.xlu1 %v9033_v49, %s4166_s8  ;;  %v3987_v35 = vcombine.low %v3560_v24, %v3577_v53  ;;  %v3611_v34 = vrot.slane %v3603_v6, %v6872_v33  ;;  %v8392_v63 = vrot.slane %v8970_v30, 4  ;;  %v8391_v40 = vrot.slane %v8980_v57, 4  ;;  %v2526_v0 = vpop.permute.xlu1 %2525 }
 0x479   : > { %v4009_v5 = vpack.c.bf16 %v3725_v32, %v3724_v7  ;;  %v3594_v16 = vrot.slane %v3586_v9, %v6872_v33  ;;  %v8390_v19 = vrot.slane %v8990_v31, 4  ;;  %v9034_v10 = vrot.slane %v8997_v36, 6 }
 0x47a   : > { %2695 = vrot.lane.b32.xlu0 %v8394_v3, %s4166_s8  ;;  %v3738_v4 = vrot.slane %v3987_v35, %v6872_v33  ;;  %v2524_v62 = vpop.permute.xlu0 %2523  ;;  %v9035_v39 = vrot.slane %v9004_v13, 6  ;;  %v9036_v55 = vrot.slane %v9010_v59, 6  ;;  %v9037_v12 = vrot.slane %v9014_v51, 6  ;;  %v9104_v3 = vld [vmem:[#allocation34_spill] sm:$0xff] }
 0x47b   : > { %3832 = vst [vmem:[%s7180_s18 + $0x20] sm:$0xff] %v4009_v5  ;;  %v3989_v38 = vcombine.low %v3594_v16, %v3611_v34  ;;  %v9038_v29 = vrot.slane %v9016_v11, 6  ;;  %v9039_v46 = vrot.slane %v4732_v60, 6  ;;  %v9040_v28 = vrot.slane %v4774_v14, 6 }
 0x47c   : > { %2701 = vrot.lane.b32.xlu1 %v8393_v58, %s4166_s8  ;;  %v2530_v26 = vpop.permute.xlu1 %2529  ;;  %v9041_v6 = vrot.slane %v4787_v50, 6  ;;  %v9042_v15 = vrot.slane %v4727_v61, 6  ;;  %v9043_v24 = vrot.slane %v8997_v36, 1  ;;  %v9044_v7 = vrot.slane %v4737_v25, 6 }
 0x47d   : > { %v3752_v18 = vrot.slane %v3989_v38, %v6872_v33  ;;  %v9045_v53 = vrot.slane %v9004_v13, 1  ;;  %v9046_v5 = vrot.slane %v4779_v2, 6 }
 0x47e   : > { %2699 = vrot.lane.b32.xlu0 %v8392_v63, %s4166_s8  ;;  %v2528_v23 = vpop.permute.xlu0 %2527  ;;  %v2932_v47 = vsel %vm682_vm1, %v2518_v42, %v9043_v24  ;;  %v9047_v42 = vrot.slane %v9010_v59, 1  ;;  %v9103_v63 = vld [vmem:[#allocation33_spill] sm:$0xff] }
 0x47f   : > { %v3760_v56 = vcombine.low %v3738_v4, %v3752_v18  ;;  %v3761_v21 = vcombine.high %v3738_v4, %v3752_v18  ;;  %v2931_v9 = vsel %vm682_vm1, %v2516_v44, %v9045_v53  ;;  %v9048_v4 = vrot.slane %v8947_v52, 6 }
 0x480   : > { %2705 = vrot.lane.b32.xlu1 %v8391_v40, %s4166_s8  ;;  %v2534_v37 = vpop.permute.xlu1 %2533  ;;  %v2934_v16 = vsel %vm682_vm1, %v2522_v20, %v9047_v42  ;;  %v9049_v44 = vrot.slane %v9014_v51, 1  ;;  %v9051_v20 = vrot.slane %v9016_v11, 1 }
 0x481   : > { %v4011_v8 = vpack.c.bf16 %v3761_v21, %v3760_v56  ;;  %v9050_v21 = vrot.slane %v8960_v45, 6 }
 0x482   : > { %2703 = vrot.lane.b32.xlu0 %v8390_v19, %s4166_s8  ;;  %v2532_v27 = vpop.permute.xlu0 %2531  ;;  %v2933_v56 = vsel %vm682_vm1, %v2520_v17, %v9049_v44  ;;  %v9053_v17 = vrot.slane %v4732_v60, 1  ;;  %v9102_v19 = vld [vmem:[#allocation32_spill] sm:$0xff] }
 0x483   : > { %3834 = vst [vmem:[%s7180_s18 + $0x30] sm:$0xff] %v4011_v8 }
 0x484   : > { %2741 = vrot.lane.b32.xlu1 %v9034_v10, %s4164_s29  ;;  %v2538_v48 = vpop.permute.xlu1 %2537 }
 0x486   : > { %2739 = vrot.lane.b32.xlu0 %v9035_v39, %s4164_s29  ;;  %v2536_v41 = vpop.permute.xlu0 %2535  ;;  %v2936_v39 = vsel %vm682_vm1, %v2526_v0, %v9051_v20  ;;  %v9055_v0 = vrot.slane %v4774_v14, 1 }
 0x488   : > { %2745 = vrot.lane.b32.xlu1 %v9036_v55, %s4164_s29  ;;  %v2542_v54 = vpop.permute.xlu1 %2541  ;;  %v2938_v24 = vsel %vm682_vm1, %v2530_v26, %v9055_v0  ;;  %v9059_v26 = vrot.slane %v4727_v61, 1 }
 0x48a   : > { %2743 = vrot.lane.b32.xlu0 %v9037_v12, %s4164_s29  ;;  %v2540_v43 = vpop.permute.xlu0 %2539  ;;  %v9052_v12 = vrot.slane %v8970_v30, 6  ;;  %v2940_v42 = vsel %vm682_vm1, %v2534_v37, %v9059_v26  ;;  %v9063_v37 = vrot.slane %v4779_v2, 1 }
 0x48c   : > { %2749 = vrot.lane.b32.xlu1 %v9038_v29, %s4164_s29  ;;  %v2546_v1 = vpop.permute.xlu1 %2545  ;;  %v2942_v20 = vsel %vm682_vm1, %v2538_v48, %v9063_v37  ;;  %v9067_v48 = vrot.slane %v8960_v45, 1 }
 0x48e   : > { %2747 = vrot.lane.b32.xlu0 %v9039_v46, %s4164_s29  ;;  %v2544_v22 = vpop.permute.xlu0 %2543  ;;  %v2935_v46 = vsel %vm682_vm1, %v2524_v62, %v9053_v17  ;;  %v9057_v62 = vrot.slane %v4787_v50, 1  ;;  %v2944_v0 = vsel %vm682_vm1, %v2542_v54, %v9067_v48  ;;  %v9071_v54 = vrot.slane %v8980_v57, 1 }
 0x490   : > { %2753 = vrot.lane.b32.xlu1 %v9040_v28, %s4164_s29  ;;  %v2582_v49 = vpop.permute.xlu1 %2581  ;;  %v9054_v28 = vrot.slane %v8980_v57, 6  ;;  %v2937_v53 = vsel %vm682_vm1, %v2528_v23, %v9057_v62  ;;  %v9061_v23 = vrot.slane %v4737_v25, 1  ;;  %v2946_v26 = vsel %vm682_vm1, %v2546_v1, %v9071_v54 }
 0x491   : > { %v7330_v32 = vsel %vm715_vm2, %v2932_v47, %v2582_v49  ;;  %v9056_v49 = vrot.slane %v8990_v31, 6  ;;  %v9075_v1 = vrot.slane %v4737_v25, 7 }
 0x492   : > { %2751 = vrot.lane.b32.xlu0 %v9041_v6, %s4164_s29  ;;  %v2580_v35 = vpop.permute.xlu0 %2579  ;;  %v2939_v44 = vsel %vm682_vm1, %v2532_v27, %v9061_v23  ;;  %v9065_v27 = vrot.slane %v8947_v52, 1 }
 0x493   : > { %v7339_v34 = vsel %vm715_vm2, %v2931_v9, %v2580_v35  ;;  %v9058_v9 = vrot.slane %v8997_v36, 7 }
 0x494   : > { %2757 = vrot.lane.b32.xlu1 %v9042_v15, %s4164_s29  ;;  %v2586_v38 = vpop.permute.xlu1 %2585  ;;  %v2941_v17 = vsel %vm682_vm1, %v2536_v41, %v9065_v27  ;;  %v9069_v41 = vrot.slane %v8970_v30, 1 }
 0x495   : > { %v2950_v18 = vsel %vm715_vm2, %v2934_v16, %v2586_v38  ;;  %v9060_v38 = vrot.slane %v9004_v13, 7 }
 0x496   : > { %2755 = vrot.lane.b32.xlu0 %v9044_v7, %s4164_s29  ;;  %v2584_v8 = vpop.permute.xlu0 %2583  ;;  %v2943_v62 = vsel %vm682_vm1, %v2540_v43, %v9069_v41  ;;  %v9073_v43 = vrot.slane %v8990_v31, 1 }
 0x497   : > { %v2949_v10 = vsel %vm715_vm2, %v2933_v56, %v2584_v8  ;;  %v9062_v56 = vrot.slane %v9010_v59, 7 }
 0x498   : > { %2761 = vrot.lane.b32.xlu1 %v9046_v5, %s4164_s29  ;;  %v2590_v55 = vpop.permute.xlu1 %2589  ;;  %v2945_v23 = vsel %vm682_vm1, %v2544_v22, %v9073_v43 }
 0x499   : > { %v2952_v29 = vsel %vm715_vm2, %v2936_v39, %v2590_v55  ;;  %v9064_v55 = vrot.slane %v9014_v51, 7 }
 0x49a   : > { %2759 = vrot.lane.b32.xlu0 %v9048_v4, %s4164_s29  ;;  %v2588_v6 = vpop.permute.xlu0 %2587 }
 0x49b   : > { %v2951_v15 = vsel %vm715_vm2, %v2935_v46, %v2588_v6  ;;  %v9066_v46 = vrot.slane %v9016_v11, 7 }
 0x49c   : > { %2765 = vrot.lane.b32.xlu1 %v9050_v21, %s4164_s29  ;;  %v2594_v47 = vpop.permute.xlu1 %2593 }
 0x49d   : > { %v2954_v7 = vsel %vm715_vm2, %v2938_v24, %v2594_v47  ;;  %v9068_v47 = vrot.slane %v4732_v60, 7 }
 0x49e   : > { %2763 = vrot.lane.b32.xlu0 %v9052_v12, %s4164_s29  ;;  %v2592_v5 = vpop.permute.xlu0 %2591 }
 0x49f   : > { %v2953_v35 = vsel %vm715_vm2, %v2937_v53, %v2592_v5  ;;  %v9070_v53 = vrot.slane %v4774_v14, 7 }
 0x4a0   : > { %2769 = vrot.lane.b32.xlu1 %v9054_v28, %s4164_s29  ;;  %v2598_v16 = vpop.permute.xlu1 %2597 }
 0x4a1   : > { %v2956_v4 = vsel %vm715_vm2, %v2940_v42, %v2598_v16  ;;  %v9072_v16 = vrot.slane %v4787_v50, 7 }
 0x4a2   : > { %2767 = vrot.lane.b32.xlu0 %v9056_v49, %s4164_s29  ;;  %v2596_v21 = vpop.permute.xlu0 %2595 }
 0x4a3   : > { %v2955_v8 = vsel %vm715_vm2, %v2939_v44, %v2596_v21  ;;  %v9074_v44 = vrot.slane %v4727_v61, 7 }
 0x4a4   : > { %2789 = vrot.lane.b32.xlu1 %v9058_v9, %s4165_s16  ;;  %v2602_v39 = vpop.permute.xlu1 %2601 }
 0x4a5   : > { %v2958_v12 = vsel %vm715_vm2, %v2942_v20, %v2602_v39  ;;  %v9076_v39 = vrot.slane %v4779_v2, 7 }
 0x4a6   : > { %2787 = vrot.lane.b32.xlu0 %v9060_v38, %s4165_s16  ;;  %v2600_v28 = vpop.permute.xlu0 %2599 }
 0x4a7   : > { %v2957_v6 = vsel %vm715_vm2, %v2941_v17, %v2600_v28  ;;  %v9077_v17 = vrot.slane %v8947_v52, 7 }
 0x4a8   : > { %2793 = vrot.lane.b32.xlu1 %v9062_v56, %s4165_s16  ;;  %v2606_v24 = vpop.permute.xlu1 %2605 }
 0x4a9   : > { %v2960_v49 = vsel %vm715_vm2, %v2944_v0, %v2606_v24 }
 0x4aa   : > { %2791 = vrot.lane.b32.xlu0 %v9064_v55, %s4165_s16  ;;  %v2604_v9 = vpop.permute.xlu0 %2603 }
 0x4ab   : > { %v2959_v5 = vsel %vm715_vm2, %v2943_v62, %v2604_v9 }
 0x4ac   : > { %2797 = vrot.lane.b32.xlu1 %v9066_v46, %s4165_s16  ;;  %v2610_v42 = vpop.permute.xlu1 %2609 }
 0x4ad   : > { %v2962_v38 = vsel %vm715_vm2, %v2946_v26, %v2610_v42 }
 0x4ae   : > { %2795 = vrot.lane.b32.xlu0 %v9068_v47, %s4165_s16  ;;  %v2608_v56 = vpop.permute.xlu0 %2607 }
 0x4af   : > { %v2961_v21 = vsel %vm715_vm2, %v2945_v23, %v2608_v56 }
 0x4b0   : > { %2801 = vrot.lane.b32.xlu1 %v9070_v53, %s4165_s16  ;;  %v2630_v37 = vpop.permute.xlu1 %2629 }
 0x4b1   : > { %v7444_v20 = vsel %vm748_vm3, %v7330_v32, %v2630_v37  ;;  %v9078_v32 = vrot.slane %v8960_v45, 7 }
 0x4b2   : > { %2799 = vrot.lane.b32.xlu0 %v9072_v16, %s4165_s16  ;;  %v2628_v22 = vpop.permute.xlu0 %2627 }
 0x4b3   : > { %v7451_v55 = vsel %vm748_vm3, %v7339_v34, %v2628_v22  ;;  %v9079_v34 = vrot.slane %v8970_v30, 7 }
 0x4b4   : > { %2805 = vrot.lane.b32.xlu1 %v9074_v44, %s4165_s16  ;;  %v2634_v27 = vpop.permute.xlu1 %2633 }
 0x4b5   : > { %v7457_v46 = vsel %vm748_vm3, %v2950_v18, %v2634_v27  ;;  %v9080_v18 = vrot.slane %v8980_v57, 7 }
 0x4b6   : > { %2803 = vrot.lane.b32.xlu0 %v9075_v1, %s4165_s16  ;;  %v2632_v28 = vpop.permute.xlu0 %2631 }
 0x4b7   : > { %v7463_v48 = vsel %vm748_vm3, %v2949_v10, %v2632_v28  ;;  %v9081_v10 = vrot.slane %v8990_v31, 7 }
 0x4b8   : > { %2809 = vrot.lane.b32.xlu1 %v9076_v39, %s4165_s16  ;;  %v2638_v0 = vpop.permute.xlu1 %2637 }
 0x4b9   : > { %v7469_v24 = vsel %vm748_vm3, %v2952_v29, %v2638_v0 }
 0x4ba   : > { %2807 = vrot.lane.b32.xlu0 %v9077_v17, %s4165_s16  ;;  %v2636_v47 = vpop.permute.xlu0 %2635 }
 0x4bb   : > { %v7475_v41 = vsel %vm748_vm3, %v2951_v15, %v2636_v47 }
 0x4bc   : > { %2813 = vrot.lane.b32.xlu1 %v9078_v32, %s4165_s16  ;;  %v2642_v62 = vpop.permute.xlu1 %2641 }
 0x4bd   : > { %v7481_v53 = vsel %vm748_vm3, %v2954_v7, %v2642_v62 }
 0x4be   : > { %2811 = vrot.lane.b32.xlu0 %v9079_v34, %s4165_s16  ;;  %v2640_v9 = vpop.permute.xlu0 %2639 }
 0x4bf   : > { %v7484_v29 = vsel %vm748_vm3, %v2953_v35, %v2640_v9 }
 0x4c0   : > { %2817 = vrot.lane.b32.xlu1 %v9080_v18, %s4165_s16  ;;  %v2646_v54 = vpop.permute.xlu1 %2645 }
 0x4c1   : > { %v7487_v26 = vsel %vm748_vm3, %v2956_v4, %v2646_v54  ;;  %v9098_v54 = vld [vmem:[#allocation28_spill] sm:$0xff] }
 0x4c2   : > { %2815 = vrot.lane.b32.xlu0 %v9081_v10, %s4165_s16  ;;  %v2644_v42 = vpop.permute.xlu0 %2643 }
 0x4c3   : > { %v7490_v15 = vsel %vm748_vm3, %v2955_v8, %v2644_v42  ;;  %v2100_v42 = vsel %vm682_vm1, %v8997_v36, %v9098_v54 }
 0x4c4   : > { %v2650_v16 = vpop.permute.xlu1 %2649  ;;  %v2116_v40 = vsel %vm715_vm2, %v2100_v42, %v9102_v19  ;;  %v9109_v19 = vld [vmem:[#allocation62_spill] sm:$0xff]  ;;  %v9110_v42 = vld [vmem:[#allocation39_spill] sm:$0xff] }
 0x4c5   : > { %v7493_v43 = vsel %vm748_vm3, %v2958_v12, %v2650_v16  ;;  %v9099_v16 = vld [vmem:[#allocation29_spill] sm:$0xff] }
 0x4c6   : > { %v2648_v23 = vpop.permute.xlu0 %2647 }
 0x4c7   : > { %v7496_v7 = vsel %vm748_vm3, %v2957_v6, %v2648_v23  ;;  %v2099_v23 = vsel %vm682_vm1, %v9004_v13, %v9099_v16  ;;  %v9106_v16 = vld [vmem:[#allocation35_spill] sm:$0xff] }
 0x4c8   : > { %v2654_v44 = vpop.permute.xlu1 %2653  ;;  %v2115_v58 = vsel %vm715_vm2, %v2099_v23, %v9103_v63  ;;  %v2102_v63 = vsel %vm682_vm1, %v9010_v59, %v9109_v19  ;;  %v9111_v23 = vld [vmem:[#allocation64_spill] sm:$0xff] }
 0x4c9   : > { %v7499_v35 = vsel %vm748_vm3, %v2960_v49, %v2654_v44  ;;  %v9100_v44 = vld [vmem:[#allocation30_spill] sm:$0xff] }
 0x4cb   : > { %v2652_v56 = vpop.permute.xlu0 %2651 }
 0x4cc   : > { %v7502_v4 = vsel %vm748_vm3, %v2959_v5, %v2652_v56  ;;  %v2108_v56 = vsel %vm682_vm1, %v4727_v61, %v9100_v44 }
 0x4cd   : > { %v2124_v54 = vsel %vm715_vm2, %v2108_v56, %v9104_v3  ;;  %v2110_v56 = vsel %vm682_vm1, %v4779_v2, %v9111_v23  ;;  %v9118_v23 = vld [vmem:[#allocation70_spill] sm:$0xff] }
 0x4ce   : > { %v2658_v37 = vpop.permute.xlu1 %2657 }
 0x4cf   : > { %v7505_v8 = vsel %vm748_vm3, %v2962_v38, %v2658_v37  ;;  %v9101_v37 = vld [vmem:[#allocation31_spill] sm:$0xff] }
 0x4d0   : > { %9082 = vst [vmem:[#allocation72_spill] sm:$0xff] %v7505_v8  ;;  %v2656_v1 = vpop.permute.xlu0 %2655  ;;  %v9195_v8 = vld [vmem:[#allocation170_spill] sm:$0xff] }
 0x4d1   : > { %v7508_v12 = vsel %vm748_vm3, %v2961_v21, %v2656_v1  ;;  %v2107_v1 = vsel %vm682_vm1, %v4737_v25, %v9101_v37 }
 0x4d2   : > { %9083 = vst [vmem:[#allocation74_spill] sm:$0xff] %v7508_v12 }
 0x4d3   : > { %v7510_v39 = vpop.permute.xlu1 %2677 }
 0x4d5   : > { %v7512_v6 = vpop.permute.xlu0 %2675 }
 0x4d8   : > { %v7514_v22 = vpop.permute.xlu1 %2681 }
 0x4d9   : > { %9084 = vst [vmem:[#allocation75_spill] sm:$0xff] %v7514_v22 }
 0x4da   : > { %v7516_v49 = vpop.permute.xlu0 %2679 }
 0x4db   : > { %9085 = vst [vmem:[#allocation76_spill] sm:$0xff] %v7516_v49  ;;  %v9140_v49 = vld [vmem:[#allocation138_spill] sm:$0xff] }
 0x4dd   : > { %v7518_v27 = vpop.permute.xlu1 %2685 }
 0x4de   : > { %9086 = vst [vmem:[#allocation77_spill] sm:$0xff] %v7518_v27 }
 0x4df   : > { %v7520_v5 = vpop.permute.xlu0 %2683 }
 0x4e0   : > { %9087 = vst [vmem:[#allocation78_spill] sm:$0xff] %v7520_v5  ;;  %v9131_v5 = vld [vmem:[#allocation130_spill] sm:$0xff] }
 0x4e1   : > { %v7522_v17 = vpop.permute.xlu1 %2689 }
 0x4e2   : > { %9088 = vst [vmem:[#allocation79_spill] sm:$0xff] %v7522_v17 }
 0x4e3   : > { %v7524_v38 = vpop.permute.xlu0 %2687 }
 0x4e4   : > { %9089 = vst [vmem:[#allocation80_spill] sm:$0xff] %v7524_v38  ;;  %v9122_v38 = vld [vmem:[#allocation98_spill] sm:$0xff] }
 0x4e6   : > { %v7526_v32 = vpop.permute.xlu1 %2693 }
 0x4e7   : > { %9090 = vst [vmem:[#allocation81_spill] sm:$0xff] %v7526_v32  ;;  %v9121_v32 = vld [vmem:[#allocation96_spill] sm:$0xff] }
 0x4e8   : > { %v7528_v21 = vpop.permute.xlu0 %2691 }
 0x4e9   : > { %9091 = vst [vmem:[#allocation82_spill] sm:$0xff] %v7528_v21 }
 0x4ea   : > { %v7530_v28 = vpop.permute.xlu1 %2697 }
 0x4eb   : > { %9092 = vst [vmem:[#allocation83_spill] sm:$0xff] %v7530_v28 }
 0x4ec   : > { %v7532_v0 = vpop.permute.xlu0 %2695 }
 0x4ed   : > { %9093 = vst [vmem:[#allocation84_spill] sm:$0xff] %v7532_v0  ;;  %v9116_v0 = vld [vmem:[#allocation68_spill] sm:$0xff] }
 0x4ee   : > { %v7534_v34 = vpop.permute.xlu1 %2701 }
 0x4ef   : > { %9094 = vst [vmem:[#allocation85_spill] sm:$0xff] %v7534_v34  ;;  %v9108_v34 = vld [vmem:[#allocation37_spill] sm:$0xff] }
 0x4f0   : > { %v7536_v18 = vpop.permute.xlu0 %2699  ;;  %v7574_v37 = vsel %vm748_vm3, %v2115_v58, %v9108_v34 }
 0x4f1   : > { %9095 = vst [vmem:[#allocation86_spill] sm:$0xff] %v7536_v18  ;;  %v9107_v18 = vld [vmem:[#allocation36_spill] sm:$0xff] }
 0x4f2   : > { %v7538_v47 = vpop.permute.xlu1 %2705  ;;  %v7570_v44 = vsel %vm748_vm3, %v2116_v40, %v9107_v18  ;;  %v9113_v18 = vld [vmem:[#allocation66_spill] sm:$0xff] }
 0x4f3   : > { %9096 = vst [vmem:[#allocation87_spill] sm:$0xff] %v7538_v47  ;;  %v2123_v47 = vsel %vm715_vm2, %v2107_v1, %v9106_v16  ;;  %v9112_v1 = vld [vmem:[#allocation65_spill] sm:$0xff]  ;;  %v2118_v58 = vsel %vm715_vm2, %v2102_v63, %v9113_v18  ;;  %v9115_v16 = vld [vmem:[#allocation67_spill] sm:$0xff] }
 0x4f4   : > { %v7540_v62 = vpop.permute.xlu0 %2703  ;;  %v7581_v3 = vsel %vm748_vm3, %v2123_v47, %v9110_v42  ;;  %v2101_v40 = vsel %vm682_vm1, %v9014_v51, %v9112_v1  ;;  %v2109_v19 = vsel %vm682_vm1, %v8947_v52, %v9115_v16  ;;  %v2126_v47 = vsel %vm715_vm2, %v2110_v56, %v9116_v0  ;;  %v9117_v42 = vld [vmem:[#allocation69_spill] sm:$0xff]  ;;  %v9119_v1 = vld [vmem:[#allocation71_spill] sm:$0xff] }
 0x4f5   : > { %9097 = vst [vmem:[#allocation88_spill] sm:$0xff] %v7540_v62  ;;  %v2117_v28 = vsel %vm715_vm2, %v2101_v40, %v9117_v42  ;;  %v7602_v21 = vsel %vm748_vm3, %v2118_v58, %v9118_v23  ;;  %v2125_v33 = vsel %vm715_vm2, %v2109_v19, %v9119_v1  ;;  %v9120_v63 = vld [vmem:[#allocation73_spill] sm:$0xff]  ;;  %v2104_v16 = vsel %vm682_vm1, %v9016_v11, %v9121_v32  ;;  %v9124_v40 = vld [vmem:[#allocation99_spill] sm:$0xff]  ;;  %v9125_v42 = vld [vmem:[#allocation100_spill] sm:$0xff] }
 0x4f6   : > { %v7542_v10 = vpop.permute.xlu1 %2741  ;;  %v7608_v18 = vsel %vm748_vm3, %v2117_v28, %v9120_v63  ;;  %v2112_v0 = vsel %vm682_vm1, %v8960_v45, %v9122_v38  ;;  %v2103_v58 = vsel %vm682_vm1, %v4732_v60, %v9124_v40  ;;  %v2120_v19 = vsel %vm715_vm2, %v2104_v16, %v9125_v42  ;;  %v9126_v23 = vld [vmem:[#allocation101_spill] sm:$0xff]  ;;  %v9127_v1 = vld [vmem:[#allocation102_spill] sm:$0xff]  ;;  %v9128_v63 = vld [vmem:[#allocation103_spill] sm:$0xff] }
 0x4f7   : > { %v2111_v28 = vsel %vm682_vm1, %v8970_v30, %v9126_v23  ;;  %v2128_v32 = vsel %vm715_vm2, %v2112_v0, %v9127_v1  ;;  %v2119_v17 = vsel %vm715_vm2, %v2103_v58, %v9128_v63  ;;  %v9129_v38 = vld [vmem:[#allocation104_spill] sm:$0xff]  ;;  %v2106_v16 = vsel %vm682_vm1, %v4774_v14, %v9131_v5  ;;  %v9133_v23 = vld [vmem:[#allocation107_spill] sm:$0xff]  ;;  %v9135_v1 = vld [vmem:[#allocation133_spill] sm:$0xff] }
 0x4f8   : > { %v7544_v9 = vpop.permute.xlu0 %2739  ;;  %v7643_v27 = vsel %vm748_vm3, %v2119_v17, %v9133_v23  ;;  %v9134_v0 = vld [vmem:[#allocation132_spill] sm:$0xff]  ;;  %v9136_v63 = vld [vmem:[#allocation134_spill] sm:$0xff]  ;;  %v9139_v17 = vld [vmem:[#allocation137_spill] sm:$0xff] }
 0x4f9   : > { %v2114_v58 = vsel %vm682_vm1, %v8980_v57, %v9134_v0 }
 0x4fa   : > { %v7564_v62 = vpop.permute.xlu1 %2745 }
 0x4fb   : > { %9105 = vst [vmem:[#allocation89_spill] sm:$0xff] %v7564_v62 }
 0x4fc   : > { %v7591_v34 = vpop.permute.xlu0 %2743 }
 0x4fd   : > { %9114 = vst [vmem:[#allocation90_spill] sm:$0xff] %v7591_v34  ;;  %v9130_v34 = vld [vmem:[#allocation105_spill] sm:$0xff] }
 0x4fe   : > { %v7616_v56 = vpop.permute.xlu1 %2749  ;;  %v2127_v40 = vsel %vm715_vm2, %v2111_v28, %v9130_v34  ;;  %v2122_v34 = vsel %vm715_vm2, %v2106_v16, %v9136_v63  ;;  %v9137_v28 = vld [vmem:[#allocation135_spill] sm:$0xff]  ;;  %v9143_v16 = vld [vmem:[#allocation140_spill] sm:$0xff] }
 0x4ff   : > { %9123 = vst [vmem:[#allocation91_spill] sm:$0xff] %v7616_v56  ;;  %v7632_v56 = vsel %vm748_vm3, %v2120_v19, %v9129_v38  ;;  %v2105_v19 = vsel %vm682_vm1, %v4787_v50, %v9135_v1  ;;  %v2113_v5 = vsel %vm682_vm1, %v8990_v31, %v9137_v28  ;;  %v9138_v38 = vld [vmem:[#allocation136_spill] sm:$0xff]  ;;  %v7662_v0 = vsel %vm748_vm3, %v2122_v34, %v9140_v49  ;;  %v9142_v1 = vld [vmem:[#allocation139_spill] sm:$0xff]  ;;  %v9144_v28 = vld [vmem:[#allocation141_spill] sm:$0xff] }
 0x500   : > { %v7639_v42 = vpop.permute.xlu0 %2747  ;;  %v2121_v23 = vsel %vm715_vm2, %v2105_v19, %v9139_v17  ;;  %v2129_v12 = vsel %vm715_vm2, %v2113_v5, %v9142_v1  ;;  %v7670_v63 = vsel %vm748_vm3, %v2124_v54, %v9143_v16  ;;  %v9147_v34 = vld [vmem:[#allocation144_spill] sm:$0xff]  ;;  %v9148_v5 = vld [vmem:[#allocation145_spill] sm:$0xff]  ;;  %v9150_v1 = vld [vmem:[#allocation146_spill] sm:$0xff] }
 0x501   : > { %9132 = vst [vmem:[#allocation92_spill] sm:$0xff] %v7639_v42  ;;  %v2130_v42 = vsel %vm715_vm2, %v2114_v58, %v9138_v38  ;;  %v7674_v22 = vsel %vm748_vm3, %v2121_v23, %v9144_v28  ;;  %v9145_v58 = vld [vmem:[#allocation142_spill] sm:$0xff]  ;;  %v9146_v38 = vld [vmem:[#allocation143_spill] sm:$0xff]  ;;  %v7686_v17 = vsel %vm748_vm3, %v2128_v32, %v9147_v34  ;;  %v7690_v54 = vsel %vm748_vm3, %v2127_v40, %v9148_v5 }
 0x502   : > { %v7664_v62 = vpop.permute.xlu1 %2753  ;;  %v7678_v19 = vsel %vm748_vm3, %v2126_v47, %v9145_v58  ;;  %v7682_v49 = vsel %vm748_vm3, %v2125_v33, %v9146_v38  ;;  %9149 = vst [vmem:[#allocation94_spill] sm:$0xff] %v7690_v54  ;;  %v7694_v23 = vsel %vm748_vm3, %v2130_v42, %v9150_v1  ;;  %v9153_v47 = vld [vmem:[#allocation147_spill] sm:$0xff]  ;;  %v9155_v33 = vld [vmem:[#allocation148_spill] sm:$0xff]  ;;  %v9156_v58 = vrot.slane %v8997_v36, 4  ;;  %v9157_v38 = vld [vmem:[#allocation149_spill] sm:$0xff] }
 0x503   : > { %9141 = vst [vmem:[#allocation93_spill] sm:$0xff] %v7664_v62  ;;  %9151 = vst [vmem:[#allocation95_spill] sm:$0xff] %v7694_v23  ;;  %v7700_v28 = vsel %vm748_vm3, %v2129_v12, %v9153_v47  ;;  %v9158_v34 = vrot.slane %v9004_v13, 4  ;;  %v9159_v5 = vld [vmem:[#allocation150_spill] sm:$0xff]  ;;  %v9160_v42 = vrot.slane %v9010_v59, 4  ;;  %v9161_v23 = vld [vmem:[#allocation151_spill] sm:$0xff] }
 0x504   : > { %v7696_v16 = vpop.permute.xlu0 %2751  ;;  %9154 = vst [vmem:[#allocation106_spill] sm:$0xff] %v7700_v28  ;;  %v2148_v32 = vsel %vm682_vm1, %v9156_v58, %v9155_v33  ;;  %v9162_v54 = vrot.slane %v9014_v51, 4  ;;  %v9163_v47 = vld [vmem:[#allocation152_spill] sm:$0xff]  ;;  %v9164_v28 = vrot.slane %v9016_v11, 4  ;;  %v9165_v58 = vld [vmem:[#allocation153_spill] sm:$0xff]  ;;  %v9168_v62 = vrot.slane %v4774_v14, 4 }
 0x505   : > { %9152 = vst [vmem:[#allocation97_spill] sm:$0xff] %v7696_v16  ;;  %v2147_v40 = vsel %vm682_vm1, %v9158_v34, %v9157_v38  ;;  %v2150_v1 = vsel %vm682_vm1, %v9160_v42, %v9159_v5  ;;  %v9166_v16 = vrot.slane %v4732_v60, 4  ;;  %v9167_v34 = vld [vmem:[#allocation154_spill] sm:$0xff]  ;;  %v9170_v51 = vld [vmem:[#allocation155_spill] sm:$0xff]  ;;  %v9172_v11 = vld [vmem:[#allocation156_spill] sm:$0xff] }
 0x506   : > { %v2149_v12 = vsel %vm682_vm1, %v9162_v54, %v9161_v23  ;;  %v2152_v33 = vsel %vm682_vm1, %v9164_v28, %v9163_v47  ;;  %v2154_v5 = vsel %vm682_vm1, %v9168_v62, %v9167_v34  ;;  %v7730_v42 = vpop.permute.xlu1 %2757  ;;  %v9171_v54 = vrot.slane %v4787_v50, 4  ;;  %v9174_v60 = vld [vmem:[#allocation157_spill] sm:$0xff]  ;;  %v9176_v14 = vld [vmem:[#allocation158_spill] sm:$0xff] }
 0x507   : > { %v2151_v38 = vsel %vm682_vm1, %v9166_v16, %v9165_v58  ;;  %9169 = vst [vmem:[#allocation108_spill] sm:$0xff] %v7730_v42  ;;  %v9173_v28 = vrot.slane %v4727_v61, 4  ;;  %v9175_v16 = vrot.slane %v4737_v25, 4  ;;  %v9177_v62 = vrot.slane %v4779_v2, 4  ;;  %v9178_v42 = vld [vmem:[#allocation159_spill] sm:$0xff]  ;;  %v9191_v59 = vld [vmem:[#allocation166_spill] sm:$0xff] }
 0x508   : > { %v2153_v23 = vsel %vm682_vm1, %v9171_v54, %v9170_v51  ;;  %v9179_v50 = vrot.slane %v8947_v52, 4  ;;  %v9180_v54 = vld [vmem:[#allocation160_spill] sm:$0xff]  ;;  %v9181_v61 = vrot.slane %v8960_v45, 4  ;;  %v9183_v25 = vrot.slane %v8970_v30, 4  ;;  %v9187_v52 = vld [vmem:[#allocation163_spill] sm:$0xff] }
 0x509   : > { %v2156_v47 = vsel %vm682_vm1, %v9173_v28, %v9172_v11  ;;  %v2155_v58 = vsel %vm682_vm1, %v9175_v16, %v9174_v60  ;;  %v2158_v34 = vsel %vm682_vm1, %v9177_v62, %v9176_v14  ;;  %v9182_v28 = vld [vmem:[#allocation161_spill] sm:$0xff]  ;;  %v9184_v16 = vld [vmem:[#allocation162_spill] sm:$0xff]  ;;  %v9185_v2 = vrot.slane %v8980_v57, 4  ;;  %v7764_v62 = vpop.permute.xlu0 %2755  ;;  %v9189_v45 = vld [vmem:[#allocation164_spill] sm:$0xff] }
 0x50a   : > { %v2157_v51 = vsel %vm682_vm1, %v9179_v50, %v9178_v42  ;;  %v2160_v11 = vsel %vm682_vm1, %v9181_v61, %v9180_v54  ;;  %v2159_v60 = vsel %vm682_vm1, %v9183_v25, %v9182_v28  ;;  %9186 = vst [vmem:[#allocation109_spill] sm:$0xff] %v7764_v62  ;;  %v9188_v50 = vrot.slane %v8990_v31, 4  ;;  %v9190_v54 = vld [vmem:[#allocation165_spill] sm:$0xff]  ;;  %v9192_v28 = vld [vmem:[#allocation167_spill] sm:$0xff] }
 0x50b   : > { %v2162_v14 = vsel %vm682_vm1, %v9185_v2, %v9184_v16  ;;  %v2164_v61 = vsel %vm715_vm2, %v2148_v32, %v9189_v45  ;;  %v2163_v30 = vsel %vm715_vm2, %v2147_v40, %v9190_v54  ;;  %v2166_v25 = vsel %vm715_vm2, %v2150_v1, %v9191_v59  ;;  %v9193_v2 = vld [vmem:[#allocation168_spill] sm:$0xff]  ;;  %v9194_v62 = vld [vmem:[#allocation169_spill] sm:$0xff]  ;;  %v9197_v45 = vld [vmem:[#allocation171_spill] sm:$0xff] }
 0x50c   : > { %v2161_v42 = vsel %vm682_vm1, %v9188_v50, %v9187_v52  ;;  %v2165_v57 = vsel %vm715_vm2, %v2149_v12, %v9192_v28  ;;  %v2168_v16 = vsel %vm715_vm2, %v2152_v33, %v9193_v2  ;;  %v2167_v31 = vsel %vm715_vm2, %v2151_v38, %v9194_v62  ;;  %v7784_v50 = vpop.permute.xlu1 %2761  ;;  %v9198_v40 = vld [vmem:[#allocation172_spill] sm:$0xff]  ;;  %v9199_v1 = vld [vmem:[#allocation173_spill] sm:$0xff]  ;;  %v9200_v54 = vld [vmem:[#allocation174_spill] sm:$0xff] }
 0x50d   : > { %v2170_v52 = vsel %vm715_vm2, %v2154_v5, %v9195_v8  ;;  %9196 = vst [vmem:[#allocation110_spill] sm:$0xff] %v7784_v50  ;;  %v2169_v32 = vsel %vm715_vm2, %v2153_v23, %v9197_v45  ;;  %v2172_v59 = vsel %vm715_vm2, %v2156_v47, %v9198_v40  ;;  %v2171_v12 = vsel %vm715_vm2, %v2155_v58, %v9199_v1  ;;  %v9201_v28 = vld [vmem:[#allocation175_spill] sm:$0xff]  ;;  %v9202_v62 = vld [vmem:[#allocation176_spill] sm:$0xff]  ;;  %v9203_v5 = vld [vmem:[#allocation177_spill] sm:$0xff]  ;;  %v7802_v45 = vpop.permute.xlu0 %2759 }
 0x50e   : > { %v2174_v33 = vsel %vm715_vm2, %v2158_v34, %v9200_v54  ;;  %v2173_v38 = vsel %vm715_vm2, %v2157_v51, %v9201_v28  ;;  %v2176_v8 = vsel %vm715_vm2, %v2160_v11, %v9202_v62  ;;  %v2175_v2 = vsel %vm715_vm2, %v2159_v60, %v9203_v5  ;;  %v9204_v50 = vld [vmem:[#allocation178_spill] sm:$0xff]  ;;  %v9205_v47 = vld [vmem:[#allocation179_spill] sm:$0xff]  ;;  %v9206_v40 = vld [vmem:[#allocation180_spill] sm:$0xff] }
 0x50f   : > { %v2178_v23 = vsel %vm715_vm2, %v2162_v14, %v9204_v50  ;;  %v7806_v58 = vsel %vm715_vm2, %v2161_v42, %v9205_v47  ;;  %v2180_v34 = vsel %vm748_vm3, %v2164_v61, %v9206_v40  ;;  %v9207_v1 = vld [vmem:[#allocation181_spill] sm:$0xff]  ;;  %v9208_v11 = vld [vmem:[#allocation182_spill] sm:$0xff]  ;;  %v9209_v60 = vld [vmem:[#allocation183_spill] sm:$0xff] }
 0x510   : > { %v7812_v51 = vsel %vm748_vm3, %v2163_v30, %v9207_v1  ;;  %v7816_v54 = vsel %vm748_vm3, %v2166_v25, %v9208_v11  ;;  %v7820_v14 = vsel %vm748_vm3, %v2165_v57, %v9209_v60  ;;  %v9210_v50 = vld [vmem:[#allocation184_spill] sm:$0xff]  ;;  %v9211_v42 = vld [vmem:[#allocation185_spill] sm:$0xff]  ;;  %v9212_v61 = vld [vmem:[#allocation186_spill] sm:$0xff]  ;;  %v7834_v5 = vpop.permute.xlu1 %2765 }
 0x511   : > { %v7824_v28 = vsel %vm748_vm3, %v2168_v16, %v9210_v50  ;;  %v7828_v62 = vsel %vm748_vm3, %v2167_v31, %v9211_v42  ;;  %v7832_v30 = vsel %vm748_vm3, %v2170_v52, %v9212_v61  ;;  %v9213_v25 = vld [vmem:[#allocation187_spill] sm:$0xff]  ;;  %v9214_v57 = vld [vmem:[#allocation188_spill] sm:$0xff]  ;;  %v9215_v16 = vld [vmem:[#allocation189_spill] sm:$0xff]  ;;  %v3097_v31 = vrot.slane %v7444_v20, 7 }
 0x512   : > { %v7838_v47 = vsel %vm748_vm3, %v2169_v32, %v9213_v25  ;;  %v7842_v40 = vsel %vm748_vm3, %v2172_v59, %v9214_v57  ;;  %v7846_v1 = vsel %vm748_vm3, %v2171_v12, %v9215_v16  ;;  %v9216_v11 = vld [vmem:[#allocation190_spill] sm:$0xff]  ;;  %v9217_v60 = vld [vmem:[#allocation191_spill] sm:$0xff]  ;;  %v3093_v32 = vrot.slane %v7451_v55, 7  ;;  %v7859_v59 = vpop.permute.xlu0 %2763  ;;  %v9218_v61 = vld [vmem:[#allocation192_spill] sm:$0xff] }
 0x513   : > { %v7851_v52 = vsel %vm748_vm3, %v2174_v33, %v9216_v11  ;;  %v7855_v50 = vsel %vm748_vm3, %v2173_v38, %v9217_v60  ;;  %v3105_v42 = vrot.slane %v7457_v46, 7  ;;  %v7863_v12 = vsel %vm748_vm3, %v2176_v8, %v9218_v61  ;;  %v9219_v57 = vld [vmem:[#allocation193_spill] sm:$0xff]  ;;  %v9220_v8 = vld [vmem:[#allocation194_spill] sm:$0xff] }
 0x514   : > { %v3101_v20 = vrot.slane %v7463_v48, 7  ;;  %v3113_v25 = vrot.slane %v7469_v24, 7  ;;  %v3109_v33 = vrot.slane %v7475_v41, 7  ;;  %v7870_v38 = vsel %vm748_vm3, %v2175_v2, %v9219_v57  ;;  %v7875_v11 = vpop.permute.xlu1 %2769  ;;  %v9227_v57 = vld [vmem:[#allocation74_spill] sm:$0xff] }
 0x515   : > { %v3121_v55 = vrot.slane %v7481_v53, 7  ;;  %v3117_v46 = vrot.slane %v7484_v29, 7  ;;  %v3129_v16 = vrot.slane %v7487_v26, 7  ;;  %v7879_v60 = vsel %vm748_vm3, %v2178_v23, %v9220_v8 }
 0x516   : > { %v3226_v48 = vsel %vm3219_vm4, %v7570_v44, %v3097_v31  ;;  %v3125_v24 = vrot.slane %v7490_v15, 7  ;;  %v3137_v41 = vrot.slane %v7493_v43, 7  ;;  %v3222_v53 = vsel %vm3219_vm4, %v7574_v37, %v3093_v32  ;;  %v7893_v23 = vpop.permute.xlu0 %2767 }
 0x517   : > { %v7889_v29 = vsel %vm3219_vm4, %v7602_v21, %v3105_v42  ;;  %v3133_v26 = vrot.slane %v7496_v7, 7  ;;  %v3145_v2 = vrot.slane %v7499_v35, 7  ;;  %v7897_v44 = vsel %vm3219_vm4, %v7608_v18, %v3101_v20  ;;  %v9223_v42 = vld [vmem:[#allocation72_spill] sm:$0xff] }
 0x518   : > { %v7901_v15 = vsel %vm3219_vm4, %v7632_v56, %v3113_v25  ;;  %v7905_v43 = vsel %vm3219_vm4, %v7643_v27, %v3109_v33  ;;  %v9221_v21 = vrot.slane %v8997_v36, 5  ;;  %v7913_v35 = vsel %vm3219_vm4, %v7662_v0, %v3121_v55  ;;  %v2790_v56 = vpop.permute.xlu1 %2789  ;;  %v9226_v25 = vld [vmem:[#allocation75_spill] sm:$0xff] }
 0x519   : > { %v7917_v37 = vsel %vm3219_vm4, %v7674_v22, %v3117_v46  ;;  %v7921_v18 = vsel %vm3219_vm4, %v7670_v63, %v3129_v16  ;;  %v7927_v36 = vsel %vm3219_vm4, %v7581_v3, %v3125_v24  ;;  %v9222_v0 = vrot.slane %v9004_v13, 5  ;;  %v9229_v24 = vld [vmem:[#allocation4_spill] sm:$0xff] }
 0x51a   : > { %v2980_v7 = vsel %vm682_vm1, %v7510_v39, %v9221_v21  ;;  %v7931_v39 = vsel %vm3219_vm4, %v7678_v19, %v3137_v41  ;;  %v7940_v31 = vsel %vm3219_vm4, %v7682_v49, %v3133_v26  ;;  %v2788_v32 = vpop.permute.xlu0 %2787  ;;  %v3141_v13 = vrot.slane %v7502_v4, 7  ;;  %v9231_v26 = vld [vmem:[#allocation76_spill] sm:$0xff] }
 0x51b   : > { %v2996_v27 = vsel %vm715_vm2, %v2980_v7, %v7542_v10  ;;  %v2979_v22 = vsel %vm682_vm1, %v7512_v6, %v9222_v0  ;;  %v7944_v10 = vsel %vm3219_vm4, %v7686_v17, %v3145_v2  ;;  %v3153_v61 = vrot.slane %v9223_v42, 7  ;;  %v9224_v6 = vld [vmem:[#allocation3_spill] sm:$0xff]  ;;  %v9228_v17 = vld [vmem:[#allocation89_spill] sm:$0xff]  ;;  %v9232_v21 = vld [vmem:[#allocation8_spill] sm:$0xff] }
 0x51c   : > { %v3012_v63 = vsel %vm748_vm3, %v2996_v27, %v2790_v56  ;;  %v2995_v3 = vsel %vm715_vm2, %v2979_v22, %v7544_v9  ;;  %v9225_v20 = vrot.slane %v9224_v6, 5  ;;  %v3149_v55 = vrot.slane %v9227_v57, 7  ;;  %v2794_v8 = vpop.permute.xlu1 %2793  ;;  %v9234_v27 = vld [vmem:[#allocation77_spill] sm:$0xff]  ;;  %v9280_v42 = vld [vmem:[#allocation106_spill] sm:$0xff] }
 0x51d   : > { %v3098_v19 = vrot.slane %v3012_v63, 7  ;;  %v3011_v49 = vsel %vm748_vm3, %v2995_v3, %v2788_v32  ;;  %v9230_v41 = vrot.slane %v9229_v24, 5  ;;  %v9233_v7 = vrot.slane %v9232_v21, 5  ;;  %v9235_v63 = vld [vmem:[#allocation10_spill] sm:$0xff]  ;;  %v9241_v24 = vld [vmem:[#allocation79_spill] sm:$0xff] }
 0x51e   : > { %v2982_v33 = vsel %vm682_vm1, %v9226_v25, %v9225_v20  ;;  %v3094_v16 = vrot.slane %v3011_v49, 7  ;;  %v9236_v3 = vrot.slane %v9235_v63, 5  ;;  %v9237_v32 = vld [vmem:[#allocation78_spill] sm:$0xff]  ;;  %v9239_v49 = vld [vmem:[#allocation15_spill] sm:$0xff] }
 0x51f   : > { %v2998_v46 = vsel %vm715_vm2, %v2982_v33, %v9228_v17  ;;  %v3227_v9 = vsel %vm3219_vm4, %v2180_v34, %v3098_v19  ;;  %v2981_v2 = vsel %vm682_vm1, %v9231_v26, %v9230_v41  ;;  %v2984_v56 = vsel %vm682_vm1, %v9234_v27, %v9233_v7  ;;  %v9238_v19 = vld [vmem:[#allocation90_spill] sm:$0xff]  ;;  %v2792_v33 = vpop.permute.xlu0 %2791  ;;  %v9245_v7 = vld [vmem:[#allocation9_spill] sm:$0xff] }
 0x520   : > { %v3366_v0 = vcombine.low %v3226_v48, %v3227_v9  ;;  %v3014_v22 = vsel %vm748_vm3, %v2998_v46, %v2794_v8  ;;  %v2983_v34 = vsel %vm682_vm1, %v9237_v32, %v9236_v3  ;;  %v2997_v6 = vsel %vm715_vm2, %v2981_v2, %v9238_v19  ;;  %v9242_v9 = vld [vmem:[#allocation17_spill] sm:$0xff]  ;;  %v9244_v8 = vld [vmem:[#allocation80_spill] sm:$0xff]  ;;  %v2798_v32 = vpop.permute.xlu1 %2797  ;;  %v9249_v19 = vld [vmem:[#allocation63_spill] sm:$0xff] }
 0x521   : > { %v3223_v20 = vsel %vm3219_vm4, %v7812_v51, %v3094_v16  ;;  %v3106_v25 = vrot.slane %v3014_v22, 7  ;;  %v9240_v17 = vrot.slane %v9239_v49, 5  ;;  %v9243_v46 = vrot.slane %v9242_v9, 5  ;;  %v9247_v27 = vld [vmem:[#allocation81_spill] sm:$0xff]  ;;  %v9248_v16 = vld [vmem:[#allocation91_spill] sm:$0xff] }
 0x522   : > { %v3349_v26 = vcombine.low %v3222_v53, %v3223_v20  ;;  %v3013_v21 = vsel %vm748_vm3, %v2997_v6, %v2792_v33  ;;  %v9246_v2 = vrot.slane %v9245_v7, 5  ;;  %v3000_v22 = vsel %vm715_vm2, %v2984_v56, %v9248_v16  ;;  %v9250_v20 = vld [vmem:[#allocation11_spill] sm:$0xff]  ;;  %v9257_v16 = vld [vmem:[#allocation18_spill] sm:$0xff] }
 0x523   : > { %v2986_v48 = vsel %vm682_vm1, %v9241_v24, %v9240_v17  ;;  %v2985_v41 = vsel %vm682_vm1, %v9244_v8, %v9243_v46  ;;  %v3235_v63 = vsel %vm3219_vm4, %v7816_v54, %v3106_v25  ;;  %v3102_v3 = vrot.slane %v3013_v21, 7  ;;  %v9252_v24 = vld [vmem:[#allocation82_spill] sm:$0xff]  ;;  %v9253_v46 = vld [vmem:[#allocation92_spill] sm:$0xff]  ;;  %v2796_v8 = vpop.permute.xlu0 %2795 }
 0x524   : > { %v2988_v51 = vsel %vm682_vm1, %v9247_v27, %v9246_v2  ;;  %v3380_v49 = vrot.slane %v3366_v0, %v9249_v19  ;;  %v3363_v17 = vrot.slane %v3349_v26, %v9249_v19  ;;  %v3400_v53 = vcombine.low %v7889_v29, %v3235_v63  ;;  %v9254_v0 = vld [vmem:[#allocation16_spill] sm:$0xff]  ;;  %v9256_v26 = vld [vmem:[#allocation83_spill] sm:$0xff] }
 0x525   : > { %v3016_v6 = vsel %vm748_vm3, %v3000_v22, %v2798_v32  ;;  %v9251_v33 = vrot.slane %v9250_v20, 5  ;;  %v2999_v56 = vsel %vm715_vm2, %v2983_v34, %v9253_v46  ;;  %v3231_v54 = vsel %vm3219_vm4, %v7820_v14, %v3102_v3  ;;  %v9259_v63 = vld [vmem:[#allocation84_spill] sm:$0xff]  ;;  %v9260_v32 = vld [vmem:[#allocation93_spill] sm:$0xff]  ;;  %v2802_v20 = vpop.permute.xlu1 %2801 }
 0x526   : > { %v3114_v25 = vrot.slane %v3016_v6, 7  ;;  %v9255_v21 = vrot.slane %v9254_v0, 5  ;;  %v3976_v7 = vcombine.low %v3363_v17, %v3380_v49  ;;  %v3383_v2 = vcombine.low %v7897_v44, %v3231_v54 }
 0x527   : > { %v2987_v9 = vsel %vm682_vm1, %v9252_v24, %v9251_v33  ;;  %v3015_v27 = vsel %vm748_vm3, %v2999_v56, %v2796_v8  ;;  %v9258_v22 = vrot.slane %v9257_v16, 5  ;;  %v3002_v14 = vsel %vm715_vm2, %v2986_v48, %v9260_v32  ;;  %v9261_v24 = vld [vmem:[#allocation21_spill] sm:$0xff]  ;;  %v2800_v0 = vpop.permute.xlu0 %2799 }
 0x528   : > { %v2990_v29 = vsel %vm682_vm1, %v9256_v26, %v9255_v21  ;;  %v3243_v3 = vsel %vm3219_vm4, %v7824_v28, %v3114_v25  ;;  %v3110_v6 = vrot.slane %v3015_v27, 7  ;;  %v3414_v33 = vrot.slane %v3400_v53, %v9249_v19  ;;  %v9263_v56 = vld [vmem:[#allocation85_spill] sm:$0xff]  ;;  %v9265_v53 = vld [vmem:[#allocation22_spill] sm:$0xff] }
 0x529   : > { %v2989_v34 = vsel %vm682_vm1, %v9259_v63, %v9258_v22  ;;  %v3397_v49 = vrot.slane %v3383_v2, %v9249_v19  ;;  %v3434_v44 = vcombine.low %v7901_v15, %v3243_v3  ;;  %v3018_v17 = vsel %vm748_vm3, %v3002_v14, %v2802_v20  ;;  %v9264_v8 = vld [vmem:[#allocation97_spill] sm:$0xff]  ;;  %v9267_v26 = vld [vmem:[#allocation86_spill] sm:$0xff]  ;;  %v9268_v22 = vld [vmem:[#allocation108_spill] sm:$0xff]  ;;  %v2806_v14 = vpop.permute.xlu1 %2805 }
 0x52a   : > { %v9262_v46 = vrot.slane %v9261_v24, 5  ;;  %v3001_v48 = vsel %vm715_vm2, %v2985_v41, %v9264_v8  ;;  %v3239_v28 = vsel %vm3219_vm4, %v7828_v62, %v3110_v6  ;;  %v3122_v25 = vrot.slane %v3018_v17, 7  ;;  %v9271_v17 = vld [vmem:[#allocation87_spill] sm:$0xff] }
 0x52b   : > { %v9266_v21 = vrot.slane %v9265_v53, 5  ;;  %v3978_v2 = vcombine.low %v3397_v49, %v3414_v33  ;;  %v3417_v27 = vcombine.low %v7905_v43, %v3239_v28  ;;  %v3017_v16 = vsel %vm748_vm3, %v3001_v48, %v2800_v0  ;;  %v9269_v33 = vld [vmem:[#allocation25_spill] sm:$0xff]  ;;  %v9275_v53 = vld [vmem:[#allocation88_spill] sm:$0xff] }
 0x52c   : > { %v2992_v54 = vsel %vm682_vm1, %v9263_v56, %v9262_v46  ;;  %v3004_v63 = vsel %vm715_vm2, %v2988_v51, %v9268_v22  ;;  %v3637_v41 = vrot.slane %v3976_v7, %v9249_v19  ;;  %v3251_v62 = vsel %vm3219_vm4, %v7832_v30, %v3122_v25  ;;  %v2804_v46 = vpop.permute.xlu0 %2803  ;;  %v9272_v56 = vld [vmem:[#allocation109_spill] sm:$0xff]  ;;  %v9273_v25 = vld [vmem:[#allocation26_spill] sm:$0xff] }
 0x52d   : > { %v2991_v15 = vsel %vm682_vm1, %v9267_v26, %v9266_v21  ;;  %v3118_v32 = vrot.slane %v3017_v16, 7  ;;  %v3651_v3 = vrot.slane %v3978_v2, %v9249_v19  ;;  %v3448_v6 = vrot.slane %v3434_v44, %v9249_v19  ;;  %v2810_v2 = vpop.permute.xlu1 %2809 }
 0x52e   : > { %v3431_v20 = vrot.slane %v3417_v27, %v9249_v19  ;;  %v3020_v43 = vsel %vm748_vm3, %v3004_v63, %v2806_v14  ;;  %v9270_v49 = vrot.slane %v9269_v33, 5  ;;  %v3468_v7 = vcombine.low %v7913_v35, %v3251_v62  ;;  %v9276_v27 = vld [vmem:[#allocation110_spill] sm:$0xff] }
 0x52f   : > { %v3247_v30 = vsel %vm3219_vm4, %v7838_v47, %v3118_v32  ;;  %v3130_v24 = vrot.slane %v3020_v43, 7  ;;  %v3003_v8 = vsel %vm715_vm2, %v2987_v9, %v9272_v56  ;;  %v3654_v44 = vcombine.low %v3637_v41, %v3651_v3 }
 0x530   : > { %v2994_v51 = vsel %vm682_vm1, %v9271_v17, %v9270_v49  ;;  %v3655_v48 = vcombine.high %v3637_v41, %v3651_v3  ;;  %v3980_v28 = vcombine.low %v3431_v20, %v3448_v6  ;;  %v9274_v0 = vrot.slane %v9273_v25, 5 }
 0x531   : > { %v3451_v26 = vcombine.low %v7917_v37, %v3247_v30  ;;  %v3259_v35 = vsel %vm3219_vm4, %v7842_v40, %v3130_v24  ;;  %v3019_v47 = vsel %vm748_vm3, %v3003_v8, %v2804_v46  ;;  %v3006_v9 = vsel %vm715_vm2, %v2990_v29, %v9276_v27  ;;  %v2808_v40 = vpop.permute.xlu0 %2807  ;;  %v2814_v43 = vpop.permute.xlu1 %2813  ;;  %v9278_v27 = vld [vmem:[#allocation95_spill] sm:$0xff] }
 0x532   : > { %v2993_v21 = vsel %vm682_vm1, %v9275_v53, %v9274_v0  ;;  %v4006_v16 = vpack.c.bf16 %v3655_v48, %v3654_v44  ;;  %v3502_v22 = vcombine.low %v7921_v18, %v3259_v35  ;;  %v3126_v63 = vrot.slane %v3019_v47, 7 }
 0x533   : > { %v3005_v41 = vsel %vm715_vm2, %v2989_v34, %v7802_v45  ;;  %v3482_v62 = vrot.slane %v3468_v7, %v9249_v19  ;;  %v3465_v37 = vrot.slane %v3451_v26, %v9249_v19  ;;  %v3022_v32 = vsel %vm748_vm3, %v3006_v9, %v2810_v2  ;;  %v9277_v26 = vld [vmem:[#allocation94_spill] sm:$0xff]  ;;  %v9279_v9 = vld [vmem:[#allocation195_spill] sm:$0xff] }
 0x534   : > { %v3008_v14 = vsel %vm715_vm2, %v2992_v54, %v7834_v5  ;;  %3829 = vst [vmem:[%s7180_s18 + $0x8] sm:$0xff] %v4006_v16  ;;  %v3255_v29 = vsel %vm3219_vm4, %v7846_v1, %v3126_v63  ;;  %v3138_v3 = vrot.slane %v3022_v32, 7  ;;  %v3021_v18 = vsel %vm748_vm3, %v3005_v41, %v2808_v40 }
 0x535   : > { %v3007_v45 = vsel %vm715_vm2, %v2991_v15, %v7859_v59  ;;  %v3982_v34 = vcombine.low %v3465_v37, %v3482_v62  ;;  %v3485_v6 = vcombine.low %v7927_v36, %v3255_v29  ;;  %v3134_v20 = vrot.slane %v3021_v18, 7  ;;  %v2812_v15 = vpop.permute.xlu0 %2811  ;;  %v2818_v48 = vpop.permute.xlu1 %2817 }
 0x536   : > { %v3673_v33 = vrot.slane %v3980_v28, %v9249_v19  ;;  %v3516_v49 = vrot.slane %v3502_v22, %v9249_v19  ;;  %v3267_v5 = vsel %vm3219_vm4, %v7851_v52, %v3138_v3  ;;  %v3024_v1 = vsel %vm748_vm3, %v3008_v14, %v2814_v43 }
 0x537   : > { %v3687_v54 = vrot.slane %v3982_v34, %v9249_v19  ;;  %v3499_v17 = vrot.slane %v3485_v6, %v9249_v19  ;;  %v3536_v59 = vcombine.low %v7931_v39, %v3267_v5  ;;  %v3263_v36 = vsel %vm3219_vm4, %v7855_v50, %v3134_v20 }
 0x538   : > { %v3010_v7 = vsel %vm715_vm2, %v2994_v51, %v7875_v11  ;;  %v3519_v30 = vcombine.low %v7940_v31, %v3263_v36  ;;  %v3146_v24 = vrot.slane %v3024_v1, 7  ;;  %v3023_v52 = vsel %vm748_vm3, %v3007_v45, %v2812_v15 }
 0x539   : > { %v3690_v46 = vcombine.low %v3673_v33, %v3687_v54  ;;  %v3691_v56 = vcombine.high %v3673_v33, %v3687_v54  ;;  %v3984_v8 = vcombine.low %v3499_v17, %v3516_v49  ;;  %v3550_v44 = vrot.slane %v3536_v59, %v9249_v19  ;;  %v2816_v53 = vpop.permute.xlu0 %2815 }
 0x53a   : > { %v3533_v39 = vrot.slane %v3519_v30, %v9249_v19  ;;  %v3275_v50 = vsel %vm3219_vm4, %v7863_v12, %v3146_v24  ;;  %v3142_v28 = vrot.slane %v3023_v52, 7  ;;  %v3026_v11 = vsel %vm748_vm3, %v3010_v7, %v2818_v48 }
 0x53b   : > { %v3009_v31 = vsel %vm715_vm2, %v2993_v21, %v7893_v23  ;;  %v4008_v51 = vpack.c.bf16 %v3691_v56, %v3690_v46  ;;  %v3570_v25 = vcombine.low %v7944_v10, %v3275_v50  ;;  %v3154_v0 = vrot.slane %v3026_v11, 7 }
 0x53c   : > { %v3270_v35 = vsel %vm3219_vm4, %v9277_v26, %v3141_v13  ;;  %v3986_v47 = vcombine.low %v3533_v39, %v3550_v44  ;;  %v3271_v12 = vsel %vm3219_vm4, %v7870_v38, %v3142_v28  ;;  %v3025_v2 = vsel %vm748_vm3, %v3009_v31, %v2816_v53 }
 0x53d   : > { %v3282_v23 = vsel %vm3219_vm4, %v9278_v27, %v3153_v61  ;;  %3831 = vst [vmem:[%s7180_s18 + $0x18] sm:$0xff] %v4008_v51  ;;  %v3553_v10 = vcombine.low %v3270_v35, %v3271_v12  ;;  %v3283_v21 = vsel %vm3219_vm4, %v7879_v60, %v3154_v0  ;;  %v3150_v4 = vrot.slane %v3025_v2, 7 }
 0x53e   : > { %v2193_v13 = vsel %vm748_vm3, %v7806_v58, %v9279_v9  ;;  %v3709_v38 = vrot.slane %v3984_v8, %v9249_v19  ;;  %v3723_v16 = vrot.slane %v3986_v47, %v9249_v19  ;;  %v3604_v22 = vcombine.low %v3282_v23, %v3283_v21 }
 0x53f   : > { %v3278_v61 = vsel %vm3219_vm4, %v9280_v42, %v3149_v55  ;;  %v3584_v63 = vrot.slane %v3570_v25, %v9249_v19  ;;  %v3567_v60 = vrot.slane %v3553_v10, %v9249_v19  ;;  %v3279_v41 = vsel %vm3219_vm4, %v2193_v13, %v3150_v4 }
 0x540   : > { %v3726_v62 = vcombine.low %v3709_v38, %v3723_v16  ;;  %v3727_v37 = vcombine.high %v3709_v38, %v3723_v16  ;;  %v3587_v58 = vcombine.low %v3278_v61, %v3279_v41  ;;  %v3618_v14 = vrot.slane %v3604_v22, %v9249_v19 }
 0x541   : > { %v3988_v32 = vcombine.low %v3567_v60, %v3584_v63 }
 0x542   : > { %v4010_v40 = vpack.c.bf16 %v3727_v37, %v3726_v62  ;;  %v3601_v29 = vrot.slane %v3587_v58, %v9249_v19 }
 0x543   : > { %v3745_v55 = vrot.slane %v3988_v32, %v9249_v19 }
 0x544   : > { %3833 = vst [vmem:[%s7180_s18 + $0x28] sm:$0xff] %v4010_v40  ;;  %v3990_v57 = vcombine.low %v3601_v29, %v3618_v14 }
 0x546   : > { %v3759_v3 = vrot.slane %v3990_v57, %v9249_v19 }
 0x548   : > { %v3762_v18 = vcombine.low %v3745_v55, %v3759_v3  ;;  %v3763_v45 = vcombine.high %v3745_v55, %v3759_v3 }
 0x54a   : > { %v4012_v34 = vpack.c.bf16 %v3763_v45, %v3762_v18 }
 0x54c   : > { %3835 = vst [vmem:[%s7180_s18 + $0x38] sm:$0xff] %v4012_v34 }
 0x54d PF: > { %s16_s23 = sadd.s32 1, %s4161_s23   ;;  %s9281_s21 = smov %s4157_s22 }
 0x54e   : > { %p13_p5 = scmp.ge.s32.totalorder %s16_s23, 4   ;;  %s9282_s22 = smov %s9284_s24 }
 0x550   :  { %15 = sbr.rel (!%p13_p5) target bundleno = 2 (0x2), region = 77 }

</bundles_post_ra>
